<compile_context>
chip_gen: v6e
topology: v6e:2x2x1
jax: 0.10.0
libtpu: 0.0.40
codegen_flags: <defaults>
</compile_context>

<pallas_src>
import functools

import jax
import jax.numpy as jnp
from jax.experimental import pallas as pl
from jax.experimental.pallas import tpu as pltpu

D_IN = 512    # fc1 in/out features
D_OUT = 512   # fc2 out features


def _round_up(x, m):
    return (x + m - 1) // m * m


# ----------------------------------------------------------------------------
# Fused kernel: fc1(x1)/fc1(x2) + ReLU + fc2(concat) + sigmoid gate + blend
# ----------------------------------------------------------------------------
def _gfusion_kernel(x1_ref, x2_ref, w1_ref, b1_ref, w2a_ref, w2b_ref, b2_ref,
                    o_ref):
    # x1_ref/x2_ref: (tm, 512) activations (f32 or bf16)
    # w1_ref:        (512, 512)  fc1 weight, already transposed to (in, out)
    # w2a_ref/w2b_ref: (512, 512) halves of fc2 weight^T (x11-half / x22-half)
    # b1_ref/b2_ref: (1, 512) f32 biases
    w1 = w1_ref[...]
    b1 = b1_ref[...]

    # Shared fc1 + ReLU (f32 accumulation on the MXU, f32 epilogue).
    x11 = jnp.maximum(
        jnp.dot(x1_ref[...], w1, preferred_element_type=jnp.float32) + b1, 0.0)
    x22 = jnp.maximum(
        jnp.dot(x2_ref[...], w1, preferred_element_type=jnp.float32) + b1, 0.0)

    # fc2 on the (virtual) concat: cat(x11, x22) @ W2^T == x11@W2a^T + x22@W2b^T.
    mm_dtype = w2a_ref.dtype
    x3 = (jnp.dot(x11.astype(mm_dtype), w2a_ref[...],
                  preferred_element_type=jnp.float32)
          + jnp.dot(x22.astype(mm_dtype), w2b_ref[...],
                    preferred_element_type=jnp.float32)
          + b2_ref[...])

    gate = jax.nn.sigmoid(x3)                      # EUP transcendental
    o_ref[...] = x11 * gate + x22 * (1.0 - gate)   # f32 VPU blend


# ----------------------------------------------------------------------------
# Wrapper
# ----------------------------------------------------------------------------
def gfusion_forward(x1, x2, params, *, block_m=256, mxu_dtype=jnp.float32):
    """Fused GfusionNet forward. x1, x2: (B, 512) f32 -> (B, 512) f32."""
    B, d = x1.shape
    assert d == D_IN and x2.shape == (B, D_IN)

    # Layout glue (host side): transpose weights to (in, out) and split fc2
    # so the concat never materializes.
    w1t = jnp.transpose(params["w1"]).astype(mxu_dtype)          # (512, 512)
    w2t = jnp.transpose(params["w2"])                            # (1024, 512)
    w2a = w2t[:D_IN].astype(mxu_dtype)                           # acts on x11
    w2b = w2t[D_IN:].astype(mxu_dtype)                           # acts on x22
    b1 = params["b1"].reshape(1, D_OUT).astype(jnp.float32)
    b2 = params["b2"].reshape(1, D_OUT).astype(jnp.float32)

    # Batch tiling: tm is a multiple of 8 sublanes (256 = MXU-aligned when the
    # batch is large); pad B up so the grid divides evenly, slice afterwards.
    tm = min(block_m, _round_up(B, 8))
    Bp = _round_up(B, tm)
    if Bp != B:
        pad = ((0, Bp - B), (0, 0))
        x1p = jnp.pad(x1, pad)
        x2p = jnp.pad(x2, pad)
    else:
        x1p, x2p = x1, x2
    x1p = x1p.astype(mxu_dtype)
    x2p = x2p.astype(mxu_dtype)

    grid = (Bp // tm,)
    out = pl.pallas_call(
        _gfusion_kernel,
        out_shape=jax.ShapeDtypeStruct((Bp, D_OUT), jnp.float32),
        grid=grid,
        in_specs=[
            pl.BlockSpec((tm, D_IN), lambda i: (i, 0)),      # x1 tile
            pl.BlockSpec((tm, D_IN), lambda i: (i, 0)),      # x2 tile
            pl.BlockSpec((D_IN, D_OUT), lambda i: (0, 0)),   # W1^T (resident)
            pl.BlockSpec((1, D_OUT), lambda i: (0, 0)),      # b1
            pl.BlockSpec((D_IN, D_OUT), lambda i: (0, 0)),   # W2a^T (resident)
            pl.BlockSpec((D_IN, D_OUT), lambda i: (0, 0)),   # W2b^T (resident)
            pl.BlockSpec((1, D_OUT), lambda i: (0, 0)),      # b2
        ],
        out_specs=pl.BlockSpec((tm, D_OUT), lambda i: (i, 0)),
        compiler_params=pltpu.CompilerParams(
            # Batch tiles are independent -> shard across both v7x TensorCores.
            dimension_semantics=("parallel",),
        ),
    )(x1p, x2p, w1t, b1, w2a, w2b, b2)
    return out[:B]


# ----------------------------------------------------------------------------
# Parameters (PyTorch nn.Linear default init) + pure-JAX reference
# ----------------------------------------------------------------------------
def init_params(key):
    k1, k2, k3, k4 = jax.random.split(key, 4)
    lim1 = 1.0 / jnp.sqrt(jnp.float32(D_IN))
    lim2 = 1.0 / jnp.sqrt(jnp.float32(2 * D_IN))
    return {
        "w1": jax.random.uniform(k1, (D_OUT, D_IN), jnp.float32, -lim1, lim1),
        "b1": jax.random.uniform(k2, (D_OUT,), jnp.float32, -lim1, lim1),
        "w2": jax.random.uniform(k3, (D_OUT, 2 * D_IN), jnp.float32, -lim2, lim2),
        "b2": jax.random.uniform(k4, (D_OUT,), jnp.float32, -lim2, lim2),
    }


def gfusion_reference(x1, x2, params):
    x11 = jax.nn.relu(x1 @ params["w1"].T + params["b1"])
    x22 = jax.nn.relu(x2 @ params["w1"].T + params["b1"])
    x3 = jnp.concatenate([x11, x22], axis=1) @ params["w2"].T + params["b2"]
    gate = jax.nn.sigmoid(x3)
    return x11 * gate + x22 * (1.0 - gate)


if __name__ == "__main__":
    key = jax.random.PRNGKey(0)
    kx1, kx2, kp = jax.random.split(key, 3)

    B = 4  # small batch; feature dim 512 is fixed by the module (fc1: 512->512)
    x1 = jax.random.normal(kx1, (B, D_IN), jnp.float32)
    x2 = jax.random.normal(kx2, (B, D_IN), jnp.float32)
    params = init_params(kp)

    # f32 path: matches the PyTorch module's numerics.
    fwd = jax.jit(functools.partial(gfusion_forward, block_m=256))
    out = jax.block_until_ready(fwd(x1, x2, params))
    ref = gfusion_reference(x1, x2, params)
    assert out.shape == (B, D_OUT), out.shape
    assert jnp.allclose(out, ref, atol=1e-4, rtol=1e-4), \
        float(jnp.max(jnp.abs(out - ref)))

    # bf16-MXU path (perf option from the review): bf16 matmul operands,
    # f32 accumulation + f32 epilogue; looser tolerance.
    fwd_bf16 = jax.jit(functools.partial(
        gfusion_forward, block_m=256, mxu_dtype=jnp.bfloat16))
    out_bf16 = jax.block_until_ready(fwd_bf16(x1, x2, params))
    assert jnp.allclose(out_bf16, ref, atol=5e-2, rtol=5e-2)

    print("KERNEL_OK")
</pallas_src>

<mosaic_0001>
module attributes {stable_mosaic.version = 11 : i64} {
  func.func @_gfusion_kernel(%arg0: i32, %arg1: memref<8x512xf32, #tpu.memory_space<vmem>>, %arg2: memref<8x512xf32, #tpu.memory_space<vmem>>, %arg3: memref<512x512xf32, #tpu.memory_space<vmem>>, %arg4: memref<1x512xf32, #tpu.memory_space<vmem>>, %arg5: memref<512x512xf32, #tpu.memory_space<vmem>>, %arg6: memref<512x512xf32, #tpu.memory_space<vmem>>, %arg7: memref<1x512xf32, #tpu.memory_space<vmem>>, %arg8: memref<8x512xf32, #tpu.memory_space<vmem>>) attributes {dimension_semantics = [#tpu.dimension_semantics<parallel>], iteration_bounds = array<i64: 1>, scalar_prefetch = 0 : i64, scratch_operands = 0 : i64, tpu.core_type = #tpu.core_type<tc>, window_params = [{transform_indices = @transform_0, window_bounds = array<i64: 8, 512>}, {transform_indices = @transform_1, window_bounds = array<i64: 8, 512>}, {pipeline_mode = #tpu.pipeline_mode<synchronous>, transform_indices = @transform_2, window_bounds = array<i64: 512, 512>}, {pipeline_mode = #tpu.pipeline_mode<synchronous>, transform_indices = @transform_3, window_bounds = array<i64: 1, 512>}, {pipeline_mode = #tpu.pipeline_mode<synchronous>, transform_indices = @transform_4, window_bounds = array<i64: 512, 512>}, {pipeline_mode = #tpu.pipeline_mode<synchronous>, transform_indices = @transform_5, window_bounds = array<i64: 512, 512>}, {pipeline_mode = #tpu.pipeline_mode<synchronous>, transform_indices = @transform_6, window_bounds = array<i64: 1, 512>}, {transform_indices = @transform_7, window_bounds = array<i64: 8, 512>}]} {
    %c0 = arith.constant 0 : index
    %c0_0 = arith.constant 0 : index
    %0 = vector.load %arg3[%c0, %c0_0] : memref<512x512xf32, #tpu.memory_space<vmem>>, vector<512x512xf32>
    %c0_1 = arith.constant 0 : index
    %c0_2 = arith.constant 0 : index
    %1 = vector.load %arg4[%c0_1, %c0_2] : memref<1x512xf32, #tpu.memory_space<vmem>>, vector<1x512xf32>
    %c0_3 = arith.constant 0 : index
    %c0_4 = arith.constant 0 : index
    %2 = vector.load %arg1[%c0_3, %c0_4] : memref<8x512xf32, #tpu.memory_space<vmem>>, vector<8x512xf32>
    %cst = arith.constant dense<0.000000e+00> : vector<8x512xf32>
    %3 = tpu.matmul %2, %0, %cst {dimension_numbers = #tpu.dot_dimension_numbers<[1], [0], [0], [1], [0, 0, 1, 1], [], []>} : vector<8x512xf32>, vector<512x512xf32>, vector<8x512xf32> -> vector<8x512xf32>
    %4 = vector.broadcast %1 : vector<1x512xf32> to vector<8x512xf32>
    %5 = arith.addf %3, %4 : vector<8x512xf32>
    %cst_5 = arith.constant 0.000000e+00 : f32
    %6 = vector.broadcast %cst_5 : f32 to vector<8x512xf32>
    %7 = arith.maximumf %5, %6 : vector<8x512xf32>
    %c0_6 = arith.constant 0 : index
    %c0_7 = arith.constant 0 : index
    %8 = vector.load %arg2[%c0_6, %c0_7] : memref<8x512xf32, #tpu.memory_space<vmem>>, vector<8x512xf32>
    %cst_8 = arith.constant dense<0.000000e+00> : vector<8x512xf32>
    %9 = tpu.matmul %8, %0, %cst_8 {dimension_numbers = #tpu.dot_dimension_numbers<[1], [0], [0], [1], [0, 0, 1, 1], [], []>} : vector<8x512xf32>, vector<512x512xf32>, vector<8x512xf32> -> vector<8x512xf32>
    %10 = vector.broadcast %1 : vector<1x512xf32> to vector<8x512xf32>
    %11 = arith.addf %9, %10 : vector<8x512xf32>
    %cst_9 = arith.constant 0.000000e+00 : f32
    %12 = vector.broadcast %cst_9 : f32 to vector<8x512xf32>
    %13 = arith.maximumf %11, %12 : vector<8x512xf32>
    %c0_10 = arith.constant 0 : index
    %c0_11 = arith.constant 0 : index
    %14 = vector.load %arg5[%c0_10, %c0_11] : memref<512x512xf32, #tpu.memory_space<vmem>>, vector<512x512xf32>
    %cst_12 = arith.constant dense<0.000000e+00> : vector<8x512xf32>
    %15 = tpu.matmul %7, %14, %cst_12 {dimension_numbers = #tpu.dot_dimension_numbers<[1], [0], [0], [1], [0, 0, 1, 1], [], []>} : vector<8x512xf32>, vector<512x512xf32>, vector<8x512xf32> -> vector<8x512xf32>
    %c0_13 = arith.constant 0 : index
    %c0_14 = arith.constant 0 : index
    %16 = vector.load %arg6[%c0_13, %c0_14] : memref<512x512xf32, #tpu.memory_space<vmem>>, vector<512x512xf32>
    %cst_15 = arith.constant dense<0.000000e+00> : vector<8x512xf32>
    %17 = tpu.matmul %13, %16, %cst_15 {dimension_numbers = #tpu.dot_dimension_numbers<[1], [0], [0], [1], [0, 0, 1, 1], [], []>} : vector<8x512xf32>, vector<512x512xf32>, vector<8x512xf32> -> vector<8x512xf32>
    %18 = arith.addf %15, %17 : vector<8x512xf32>
    %c0_16 = arith.constant 0 : index
    %c0_17 = arith.constant 0 : index
    %19 = vector.load %arg7[%c0_16, %c0_17] : memref<1x512xf32, #tpu.memory_space<vmem>>, vector<1x512xf32>
    %20 = vector.broadcast %19 : vector<1x512xf32> to vector<8x512xf32>
    %21 = arith.addf %18, %20 : vector<8x512xf32>
    %22 = arith.negf %21 : vector<8x512xf32>
    %23 = math.exp %22 : vector<8x512xf32>
    %cst_18 = arith.constant 1.000000e+00 : f32
    %24 = vector.broadcast %cst_18 : f32 to vector<8x512xf32>
    %25 = arith.addf %24, %23 : vector<8x512xf32>
    %26 = arith.divf %24, %25 : vector<8x512xf32>
    %27 = arith.mulf %7, %26 : vector<8x512xf32>
    %cst_19 = arith.constant 1.000000e+00 : f32
    %28 = vector.broadcast %cst_19 : f32 to vector<8x512xf32>
    %29 = arith.subf %28, %26 : vector<8x512xf32>
    %30 = arith.mulf %13, %29 : vector<8x512xf32>
    %31 = arith.addf %27, %30 : vector<8x512xf32>
    %c0_20 = arith.constant 0 : index
    %c0_21 = arith.constant 0 : index
    %32 = vector.load %arg8[%c0_20, %c0_21] : memref<8x512xf32, #tpu.memory_space<vmem>>, vector<8x512xf32>
    tpu.vector_store %arg8[%c0_20, %c0_21], %31 {strides = array<i32>} : memref<8x512xf32, #tpu.memory_space<vmem>>, vector<8x512xf32>,
    return
  }
  func.func @transform_0(%arg0: i32) -> (i32, i32) {
    %c0_i32 = arith.constant 0 : i32
    %c0_i32_0 = arith.constant 0 : i32
    return %arg0, %c0_i32 : i32, i32
  }
  func.func @transform_1(%arg0: i32) -> (i32, i32) {
    %c0_i32 = arith.constant 0 : i32
    %c0_i32_0 = arith.constant 0 : i32
    return %arg0, %c0_i32 : i32, i32
  }
  func.func @transform_2(%arg0: i32) -> (i32, i32) {
    %c0_i32 = arith.constant 0 : i32
    %c0_i32_0 = arith.constant 0 : i32
    %c0_i32_1 = arith.constant 0 : i32
    return %c0_i32, %c0_i32_0 : i32, i32
  }
  func.func @transform_3(%arg0: i32) -> (i32, i32) {
    %c0_i32 = arith.constant 0 : i32
    %c0_i32_0 = arith.constant 0 : i32
    %c0_i32_1 = arith.constant 0 : i32
    return %c0_i32, %c0_i32_0 : i32, i32
  }
  func.func @transform_4(%arg0: i32) -> (i32, i32) {
    %c0_i32 = arith.constant 0 : i32
    %c0_i32_0 = arith.constant 0 : i32
    %c0_i32_1 = arith.constant 0 : i32
    return %c0_i32, %c0_i32_0 : i32, i32
  }
  func.func @transform_5(%arg0: i32) -> (i32, i32) {
    %c0_i32 = arith.constant 0 : i32
    %c0_i32_0 = arith.constant 0 : i32
    %c0_i32_1 = arith.constant 0 : i32
    return %c0_i32, %c0_i32_0 : i32, i32
  }
  func.func @transform_6(%arg0: i32) -> (i32, i32) {
    %c0_i32 = arith.constant 0 : i32
    %c0_i32_0 = arith.constant 0 : i32
    %c0_i32_1 = arith.constant 0 : i32
    return %c0_i32, %c0_i32_0 : i32, i32
  }
  func.func @transform_7(%arg0: i32) -> (i32, i32) {
    %c0_i32 = arith.constant 0 : i32
    %c0_i32_0 = arith.constant 0 : i32
    return %arg0, %c0_i32 : i32, i32
  }
}

</mosaic_0001>

<bundles_post_ra>
// kernel: gfusion_forward.1
= control target key start
LH: loop header
LB: loop body
LE: loop exit
PB: predicated region body
PF: predicated region fallthrough
CT: control target
= control target key end

     0   :  { %s5600_s2 = inlined_call_operand.vmem [shape: f32[512,512], index: 2, kind: input, shape index: {}]   ;;  %s5601_s0 = inlined_call_operand.vmem [shape: f32[8,512], index: 0, kind: input, shape index: {}]   ;;  %s5602_s1 = inlined_call_operand.vmem [shape: f32[8,512], index: 1, kind: input, shape index: {}]   ;;  %s5603_s3 = inlined_call_operand.vmem [shape: f32[1,512], index: 3, kind: input, shape index: {}]   ;;  %s5604_s5 = inlined_call_operand.vmem [shape: f32[512,512], index: 5, kind: input, shape index: {}]   ;;  %s5605_s4 = inlined_call_operand.vmem [shape: f32[512,512], index: 4, kind: input, shape index: {}]   ;;  %s5606_s6 = inlined_call_operand.vmem [shape: f32[1,512], index: 6, kind: input, shape index: {}]   ;;  %s5607_s7 = inlined_call_operand.vmem [shape: f32[8,512], index: 7, kind: output, shape index: {}]  }
   0x1   :  { %v87_v0 = vld [vmem:[%s5600_s2 + $0x1e8] sm:$0xff]  ;;  %v86_v2 = vld [vmem:[%s5600_s2 + $0x1e0] sm:$0xff] }
   0x2   :  { %v215_v1 = vld [vmem:[%s5600_s2 + $0x5e8] sm:$0xff]  ;;  %308 = vmatprep.subr.mxu0 %v87_v0  ;;  %v214_v3 = vld [vmem:[%s5600_s2 + $0x5e0] sm:$0xff] }
   0x3   :  { %379 = vmatprep.subr.mxu1 %v215_v1  ;;  %v83_v4 = vld [vmem:[%s5600_s2 + $0x1c8] sm:$0xff]  ;;  %309 = vmatpush1.msra.mxu0 %v86_v2  ;;  %v82_v6 = vld [vmem:[%s5600_s2 + $0x1c0] sm:$0xff] }
   0x4   :  { %v211_v5 = vld [vmem:[%s5600_s2 + $0x5c8] sm:$0xff]  ;;  %380 = vmatpush1.msra.mxu1 %v214_v3  ;;  %v210_v7 = vld [vmem:[%s5600_s2 + $0x5c0] sm:$0xff]  ;;  %310 = vmatprep.subr.mxu0 %v83_v4 }
   0x5   :  { %v79_v8 = vld [vmem:[%s5600_s2 + $0x1a8] sm:$0xff]  ;;  %381 = vmatprep.subr.mxu1 %v211_v5  ;;  %v78_v10 = vld [vmem:[%s5600_s2 + $0x1a0] sm:$0xff]  ;;  %311 = vmatpush1.msra.mxu0 %v82_v6 }
   0x6   :  { %v207_v9 = vld [vmem:[%s5600_s2 + $0x5a8] sm:$0xff]  ;;  %v206_v11 = vld [vmem:[%s5600_s2 + $0x5a0] sm:$0xff]  ;;  %382 = vmatpush1.msra.mxu1 %v210_v7  ;;  %312 = vmatprep.subr.mxu0 %v79_v8 }
   0x7   :  { %v75_v12 = vld [vmem:[%s5600_s2 + $0x188] sm:$0xff]  ;;  %383 = vmatprep.subr.mxu1 %v207_v9  ;;  %v74_v14 = vld [vmem:[%s5600_s2 + $0x180] sm:$0xff]  ;;  %313 = vmatpush1.msra.mxu0 %v78_v10 }
   0x8   :  { %v203_v13 = vld [vmem:[%s5600_s2 + $0x588] sm:$0xff]  ;;  %v202_v15 = vld [vmem:[%s5600_s2 + $0x580] sm:$0xff]  ;;  %384 = vmatpush1.msra.mxu1 %v206_v11  ;;  %314 = vmatprep.subr.mxu0 %v75_v12 }
   0x9   :  { %v71_v16 = vld [vmem:[%s5600_s2 + $0x168] sm:$0xff]  ;;  %385 = vmatprep.subr.mxu1 %v203_v13  ;;  %v2177_v18 = vld [vmem:[%s5600_s2 + $0x160] sm:$0xff]  ;;  %315 = vmatpush1.msra.mxu0 %v74_v14 }
   0xa   :  { %v199_v17 = vld [vmem:[%s5600_s2 + $0x568] sm:$0xff]  ;;  %v2182_v19 = vld [vmem:[%s5600_s2 + $0x560] sm:$0xff]  ;;  %386 = vmatpush1.msra.mxu1 %v202_v15  ;;  %316 = vmatprep.subr.mxu0 %v71_v16 }
   0xb   :  { %v2187_v20 = vld [vmem:[%s5600_s2 + $0x148] sm:$0xff]  ;;  %387 = vmatprep.subr.mxu1 %v199_v17  ;;  %v2197_v22 = vld [vmem:[%s5600_s2 + $0x140] sm:$0xff]  ;;  %317 = vmatpush1.msra.mxu0 %v2177_v18 }
   0xc   :  { %v2192_v21 = vld [vmem:[%s5600_s2 + $0x548] sm:$0xff]  ;;  %v2202_v23 = vld [vmem:[%s5600_s2 + $0x540] sm:$0xff]  ;;  %388 = vmatpush1.msra.mxu1 %v2182_v19  ;;  %318 = vmatprep.subr.mxu0 %v2187_v20 }
   0xd   :  { %v2209_v24 = vld [vmem:[%s5600_s2 + $0x128] sm:$0xff]  ;;  %389 = vmatprep.subr.mxu1 %v2192_v21  ;;  %v2221_v26 = vld [vmem:[%s5600_s2 + $0x120] sm:$0xff]  ;;  %319 = vmatpush1.msra.mxu0 %v2197_v22 }
   0xe   :  { %v2214_v25 = vld [vmem:[%s5600_s2 + $0x528] sm:$0xff]  ;;  %v2226_v27 = vld [vmem:[%s5600_s2 + $0x520] sm:$0xff]  ;;  %390 = vmatpush1.msra.mxu1 %v2202_v23  ;;  %320 = vmatprep.subr.mxu0 %v2209_v24 }
   0xf   :  { %v2233_v28 = vld [vmem:[%s5600_s2 + $0x108] sm:$0xff]  ;;  %391 = vmatprep.subr.mxu1 %v2214_v25  ;;  %v2245_v30 = vld [vmem:[%s5600_s2 + $0x100] sm:$0xff]  ;;  %321 = vmatpush1.msra.mxu0 %v2221_v26 }
  0x10   :  { %v2238_v29 = vld [vmem:[%s5600_s2 + $0x508] sm:$0xff]  ;;  %v2250_v31 = vld [vmem:[%s5600_s2 + $0x500] sm:$0xff]  ;;  %392 = vmatpush1.msra.mxu1 %v2226_v27  ;;  %322 = vmatprep.subr.mxu0 %v2233_v28 }
  0x11   :  { %v2257_v32 = vld [vmem:[%s5600_s2 + $0xe8] sm:$0xff]  ;;  %393 = vmatprep.subr.mxu1 %v2238_v29  ;;  %v2269_v34 = vld [vmem:[%s5600_s2 + $0xe0] sm:$0xff]  ;;  %323 = vmatpush1.msra.mxu0 %v2245_v30 }
  0x12   :  { %v2262_v33 = vld [vmem:[%s5600_s2 + $0x4e8] sm:$0xff]  ;;  %v2274_v35 = vld [vmem:[%s5600_s2 + $0x4e0] sm:$0xff]  ;;  %394 = vmatpush1.msra.mxu1 %v2250_v31  ;;  %324 = vmatprep.subr.mxu0 %v2257_v32 }
  0x13   :  { %v2281_v36 = vld [vmem:[%s5600_s2 + $0xc8] sm:$0xff]  ;;  %395 = vmatprep.subr.mxu1 %v2262_v33  ;;  %v2293_v38 = vld [vmem:[%s5600_s2 + $0xc0] sm:$0xff]  ;;  %325 = vmatpush1.msra.mxu0 %v2269_v34 }
  0x14   :  { %v2286_v37 = vld [vmem:[%s5600_s2 + $0x4c8] sm:$0xff]  ;;  %v2298_v39 = vld [vmem:[%s5600_s2 + $0x4c0] sm:$0xff]  ;;  %396 = vmatpush1.msra.mxu1 %v2274_v35  ;;  %326 = vmatprep.subr.mxu0 %v2281_v36 }
  0x15   :  { %v2305_v40 = vld [vmem:[%s5600_s2 + $0xa8] sm:$0xff]  ;;  %397 = vmatprep.subr.mxu1 %v2286_v37  ;;  %v2317_v42 = vld [vmem:[%s5600_s2 + $0xa0] sm:$0xff]  ;;  %327 = vmatpush1.msra.mxu0 %v2293_v38 }
  0x16   :  { %v2310_v41 = vld [vmem:[%s5600_s2 + $0x4a8] sm:$0xff]  ;;  %v2322_v43 = vld [vmem:[%s5600_s2 + $0x4a0] sm:$0xff]  ;;  %398 = vmatpush1.msra.mxu1 %v2298_v39  ;;  %328 = vmatprep.subr.mxu0 %v2305_v40 }
  0x17   :  { %v2329_v44 = vld [vmem:[%s5600_s2 + $0x88] sm:$0xff]  ;;  %399 = vmatprep.subr.mxu1 %v2310_v41  ;;  %v2341_v46 = vld [vmem:[%s5600_s2 + $0x80] sm:$0xff]  ;;  %329 = vmatpush1.msra.mxu0 %v2317_v42 }
  0x18   :  { %v2334_v45 = vld [vmem:[%s5600_s2 + $0x488] sm:$0xff]  ;;  %v2346_v47 = vld [vmem:[%s5600_s2 + $0x480] sm:$0xff]  ;;  %400 = vmatpush1.msra.mxu1 %v2322_v43  ;;  %330 = vmatprep.subr.mxu0 %v2329_v44 }
  0x19   :  { %v2353_v48 = vld [vmem:[%s5600_s2 + $0x68] sm:$0xff]  ;;  %401 = vmatprep.subr.mxu1 %v2334_v45  ;;  %v2365_v50 = vld [vmem:[%s5600_s2 + $0x60] sm:$0xff]  ;;  %331 = vmatpush1.msra.mxu0 %v2341_v46 }
  0x1a   :  { %v2358_v49 = vld [vmem:[%s5600_s2 + $0x468] sm:$0xff]  ;;  %v2370_v51 = vld [vmem:[%s5600_s2 + $0x460] sm:$0xff]  ;;  %402 = vmatpush1.msra.mxu1 %v2346_v47  ;;  %332 = vmatprep.subr.mxu0 %v2353_v48 }
  0x1b   :  { %v2377_v52 = vld [vmem:[%s5600_s2 + $0x48] sm:$0xff]  ;;  %403 = vmatprep.subr.mxu1 %v2358_v49  ;;  %v2389_v54 = vld [vmem:[%s5600_s2 + $0x40] sm:$0xff]  ;;  %333 = vmatpush1.msra.mxu0 %v2365_v50 }
  0x1c   :  { %v2382_v53 = vld [vmem:[%s5600_s2 + $0x448] sm:$0xff]  ;;  %v2394_v55 = vld [vmem:[%s5600_s2 + $0x440] sm:$0xff]  ;;  %404 = vmatpush1.msra.mxu1 %v2370_v51  ;;  %334 = vmatprep.subr.mxu0 %v2377_v52 }
  0x1d   :  { %v2401_v56 = vld [vmem:[%s5600_s2 + $0x28] sm:$0xff]  ;;  %405 = vmatprep.subr.mxu1 %v2382_v53  ;;  %v2413_v58 = vld [vmem:[%s5600_s2 + $0x20] sm:$0xff]  ;;  %335 = vmatpush1.msra.mxu0 %v2389_v54 }
  0x1e   :  { %v2406_v57 = vld [vmem:[%s5600_s2 + $0x428] sm:$0xff]  ;;  %v2418_v59 = vld [vmem:[%s5600_s2 + $0x420] sm:$0xff]  ;;  %406 = vmatpush1.msra.mxu1 %v2394_v55  ;;  %336 = vmatprep.subr.mxu0 %v2401_v56 }
  0x1f   :  { %v2425_v60 = vld [vmem:[%s5600_s2 + $0x8] sm:$0xff]  ;;  %407 = vmatprep.subr.mxu1 %v2406_v57  ;;  %v2437_v62 = vld [vmem:[%s5600_s2] sm:$0xff]  ;;  %337 = vmatpush1.msra.mxu0 %v2413_v58 }
  0x20   :  { %v2430_v61 = vld [vmem:[%s5600_s2 + $0x408] sm:$0xff]  ;;  %v2442_v63 = vld [vmem:[%s5600_s2 + $0x400] sm:$0xff]  ;;  %408 = vmatpush1.msra.mxu1 %v2418_v59  ;;  %338 = vmatprep.subr.mxu0 %v2425_v60 }
  0x21   :  { %v2449_v0 = vld [vmem:[%s5600_s2 + $0x3e8] sm:$0xff]  ;;  %409 = vmatprep.subr.mxu1 %v2430_v61  ;;  %v2461_v2 = vld [vmem:[%s5600_s2 + $0x3e0] sm:$0xff]  ;;  %339 = vmatpush1.msra.mxu0 %v2437_v62 }
  0x22   :  { %v2454_v1 = vld [vmem:[%s5600_s2 + $0x7e8] sm:$0xff]  ;;  %v2466_v3 = vld [vmem:[%s5600_s2 + $0x7e0] sm:$0xff]  ;;  %410 = vmatpush1.msra.mxu1 %v2442_v63  ;;  %340 = vmatprep.subr.mxu0 %v2449_v0 }
  0x23   :  { %v2473_v4 = vld [vmem:[%s5600_s2 + $0x3c8] sm:$0xff]  ;;  %411 = vmatprep.subr.mxu1 %v2454_v1  ;;  %v2485_v6 = vld [vmem:[%s5600_s2 + $0x3c0] sm:$0xff]  ;;  %341 = vmatpush2.msra.mxu0 %v2461_v2 }
  0x24   :  { %v2478_v5 = vld [vmem:[%s5600_s2 + $0x7c8] sm:$0xff]  ;;  %5788 = vst [vmem:[#allocation2_spill] sm:$0xff] %v2485_v6  ;;  %v2490_v7 = vld [vmem:[%s5600_s2 + $0x7c0] sm:$0xff]  ;;  %412 = vmatpush2.msra.mxu1 %v2466_v3  ;;  %342 = vmatprep.subr.mxu0 %v2473_v4 }
  0x25   :  { %5789 = vst [vmem:[#allocation3_spill] sm:$0xff] %v2490_v7  ;;  %v2497_v8 = vld [vmem:[%s5600_s2 + $0x3a8] sm:$0xff]  ;;  %413 = vmatprep.subr.mxu1 %v2478_v5  ;;  %v2509_v10 = vld [vmem:[%s5600_s2 + $0x3a0] sm:$0xff]  ;;  %343 = vmatpush2.msra.mxu0 %v2485_v6  ;;  %v2910_v6 = vld [vmem:[%s5600_s2 + $0x5b8] sm:$0xff] }
  0x26   :  { %5790 = vst [vmem:[#allocation4_spill] sm:$0xff] %v2497_v8  ;;  %v2502_v9 = vld [vmem:[%s5600_s2 + $0x7a8] sm:$0xff]  ;;  %5792 = vst [vmem:[#allocation6_spill] sm:$0xff] %v2509_v10  ;;  %v2514_v11 = vld [vmem:[%s5600_s2 + $0x7a0] sm:$0xff]  ;;  %414 = vmatpush2.msra.mxu1 %v2490_v7  ;;  %344 = vmatprep.subr.mxu0 %v2497_v8 }
  0x27   :  { %5791 = vst [vmem:[#allocation5_spill] sm:$0xff] %v2502_v9  ;;  %5793 = vst [vmem:[#allocation7_spill] sm:$0xff] %v2514_v11  ;;  %v2521_v12 = vld [vmem:[%s5600_s2 + $0x388] sm:$0xff]  ;;  %415 = vmatprep.subr.mxu1 %v2502_v9  ;;  %v2533_v14 = vld [vmem:[%s5600_s2 + $0x380] sm:$0xff]  ;;  %345 = vmatpush2.msra.mxu0 %v2509_v10 }
  0x28   :  { %5794 = vst [vmem:[#allocation8_spill] sm:$0xff] %v2521_v12  ;;  %v2526_v13 = vld [vmem:[%s5600_s2 + $0x788] sm:$0xff]  ;;  %5796 = vst [vmem:[#allocation10_spill] sm:$0xff] %v2533_v14  ;;  %v2538_v15 = vld [vmem:[%s5600_s2 + $0x780] sm:$0xff]  ;;  %416 = vmatpush2.msra.mxu1 %v2514_v11  ;;  %346 = vmatprep.subr.mxu0 %v2521_v12 }
  0x29   :  { %5795 = vst [vmem:[#allocation9_spill] sm:$0xff] %v2526_v13  ;;  %5797 = vst [vmem:[#allocation11_spill] sm:$0xff] %v2538_v15  ;;  %v2545_v16 = vld [vmem:[%s5600_s2 + $0x368] sm:$0xff]  ;;  %417 = vmatprep.subr.mxu1 %v2526_v13  ;;  %v2557_v10 = vld [vmem:[%s5600_s2 + $0x360] sm:$0xff]  ;;  %347 = vmatpush2.msra.mxu0 %v2533_v14 }
  0x2a   :  { %5798 = vst [vmem:[#allocation12_spill] sm:$0xff] %v2545_v16  ;;  %v2550_v17 = vld [vmem:[%s5600_s2 + $0x768] sm:$0xff]  ;;  %5800 = vst [vmem:[#allocation14_spill] sm:$0xff] %v2557_v10  ;;  %v2562_v11 = vld [vmem:[%s5600_s2 + $0x760] sm:$0xff]  ;;  %418 = vmatpush2.msra.mxu1 %v2538_v15  ;;  %348 = vmatprep.subr.mxu0 %v2545_v16 }
  0x2b   :  { %5799 = vst [vmem:[#allocation13_spill] sm:$0xff] %v2550_v17  ;;  %5801 = vst [vmem:[#allocation15_spill] sm:$0xff] %v2562_v11  ;;  %v2569_v12 = vld [vmem:[%s5600_s2 + $0x348] sm:$0xff]  ;;  %419 = vmatprep.subr.mxu1 %v2550_v17  ;;  %v2581_v14 = vld [vmem:[%s5600_s2 + $0x340] sm:$0xff]  ;;  %349 = vmatpush2.msra.mxu0 %v2557_v10 }
  0x2c   :  { %5802 = vst [vmem:[#allocation16_spill] sm:$0xff] %v2569_v12  ;;  %v2574_v13 = vld [vmem:[%s5600_s2 + $0x748] sm:$0xff]  ;;  %5804 = vst [vmem:[#allocation18_spill] sm:$0xff] %v2581_v14  ;;  %v2586_v15 = vld [vmem:[%s5600_s2 + $0x740] sm:$0xff]  ;;  %420 = vmatpush2.msra.mxu1 %v2562_v11  ;;  %350 = vmatprep.subr.mxu0 %v2569_v12 }
  0x2d   :  { %5803 = vst [vmem:[#allocation17_spill] sm:$0xff] %v2574_v13  ;;  %5805 = vst [vmem:[#allocation19_spill] sm:$0xff] %v2586_v15  ;;  %v2593_v16 = vld [vmem:[%s5600_s2 + $0x328] sm:$0xff]  ;;  %421 = vmatprep.subr.mxu1 %v2574_v13  ;;  %v2605_v10 = vld [vmem:[%s5600_s2 + $0x320] sm:$0xff]  ;;  %351 = vmatpush2.msra.mxu0 %v2581_v14 }
  0x2e   :  { %5806 = vst [vmem:[#allocation20_spill] sm:$0xff] %v2593_v16  ;;  %v2598_v17 = vld [vmem:[%s5600_s2 + $0x728] sm:$0xff]  ;;  %5808 = vst [vmem:[#allocation22_spill] sm:$0xff] %v2605_v10  ;;  %v2610_v11 = vld [vmem:[%s5600_s2 + $0x720] sm:$0xff]  ;;  %422 = vmatpush2.msra.mxu1 %v2586_v15  ;;  %352 = vmatprep.subr.mxu0 %v2593_v16 }
  0x2f   :  { %5807 = vst [vmem:[#allocation21_spill] sm:$0xff] %v2598_v17  ;;  %5809 = vst [vmem:[#allocation23_spill] sm:$0xff] %v2610_v11  ;;  %v2617_v12 = vld [vmem:[%s5600_s2 + $0x308] sm:$0xff]  ;;  %423 = vmatprep.subr.mxu1 %v2598_v17  ;;  %v2629_v14 = vld [vmem:[%s5600_s2 + $0x300] sm:$0xff]  ;;  %353 = vmatpush2.msra.mxu0 %v2605_v10 }
  0x30   :  { %5810 = vst [vmem:[#allocation24_spill] sm:$0xff] %v2617_v12  ;;  %v2622_v13 = vld [vmem:[%s5600_s2 + $0x708] sm:$0xff]  ;;  %5812 = vst [vmem:[#allocation26_spill] sm:$0xff] %v2629_v14  ;;  %v2634_v15 = vld [vmem:[%s5600_s2 + $0x700] sm:$0xff]  ;;  %424 = vmatpush2.msra.mxu1 %v2610_v11  ;;  %354 = vmatprep.subr.mxu0 %v2617_v12 }
  0x31   :  { %5811 = vst [vmem:[#allocation25_spill] sm:$0xff] %v2622_v13  ;;  %5813 = vst [vmem:[#allocation27_spill] sm:$0xff] %v2634_v15  ;;  %v2641_v16 = vld [vmem:[%s5600_s2 + $0x2e8] sm:$0xff]  ;;  %425 = vmatprep.subr.mxu1 %v2622_v13  ;;  %v2653_v10 = vld [vmem:[%s5600_s2 + $0x2e0] sm:$0xff]  ;;  %355 = vmatpush2.msra.mxu0 %v2629_v14 }
  0x32   :  { %5814 = vst [vmem:[#allocation28_spill] sm:$0xff] %v2641_v16  ;;  %v2646_v17 = vld [vmem:[%s5600_s2 + $0x6e8] sm:$0xff]  ;;  %5816 = vst [vmem:[#allocation30_spill] sm:$0xff] %v2653_v10  ;;  %v2658_v11 = vld [vmem:[%s5600_s2 + $0x6e0] sm:$0xff]  ;;  %426 = vmatpush2.msra.mxu1 %v2634_v15  ;;  %356 = vmatprep.subr.mxu0 %v2641_v16 }
  0x33   :  { %5815 = vst [vmem:[#allocation29_spill] sm:$0xff] %v2646_v17  ;;  %5817 = vst [vmem:[#allocation31_spill] sm:$0xff] %v2658_v11  ;;  %v2665_v12 = vld [vmem:[%s5600_s2 + $0x2c8] sm:$0xff]  ;;  %427 = vmatprep.subr.mxu1 %v2646_v17  ;;  %v2677_v14 = vld [vmem:[%s5600_s2 + $0x2c0] sm:$0xff]  ;;  %357 = vmatpush2.msra.mxu0 %v2653_v10 }
  0x34   :  { %5818 = vst [vmem:[#allocation32_spill] sm:$0xff] %v2665_v12  ;;  %v2670_v13 = vld [vmem:[%s5600_s2 + $0x6c8] sm:$0xff]  ;;  %5820 = vst [vmem:[#allocation34_spill] sm:$0xff] %v2677_v14  ;;  %v2682_v15 = vld [vmem:[%s5600_s2 + $0x6c0] sm:$0xff]  ;;  %428 = vmatpush2.msra.mxu1 %v2658_v11  ;;  %358 = vmatprep.subr.mxu0 %v2665_v12 }
  0x35   :  { %5819 = vst [vmem:[#allocation33_spill] sm:$0xff] %v2670_v13  ;;  %5821 = vst [vmem:[#allocation35_spill] sm:$0xff] %v2682_v15  ;;  %v2689_v16 = vld [vmem:[%s5600_s2 + $0x2a8] sm:$0xff]  ;;  %429 = vmatprep.subr.mxu1 %v2670_v13  ;;  %v2701_v10 = vld [vmem:[%s5600_s2 + $0x2a0] sm:$0xff]  ;;  %359 = vmatpush2.msra.mxu0 %v2677_v14 }
  0x36   :  { %5822 = vst [vmem:[#allocation36_spill] sm:$0xff] %v2689_v16  ;;  %v2694_v17 = vld [vmem:[%s5600_s2 + $0x6a8] sm:$0xff]  ;;  %5824 = vst [vmem:[#allocation38_spill] sm:$0xff] %v2701_v10  ;;  %v2706_v11 = vld [vmem:[%s5600_s2 + $0x6a0] sm:$0xff]  ;;  %430 = vmatpush2.msra.mxu1 %v2682_v15  ;;  %360 = vmatprep.subr.mxu0 %v2689_v16 }
  0x37   :  { %5823 = vst [vmem:[#allocation37_spill] sm:$0xff] %v2694_v17  ;;  %5825 = vst [vmem:[#allocation39_spill] sm:$0xff] %v2706_v11  ;;  %v2713_v12 = vld [vmem:[%s5600_s2 + $0x288] sm:$0xff]  ;;  %431 = vmatprep.subr.mxu1 %v2694_v17  ;;  %v2725_v14 = vld [vmem:[%s5600_s2 + $0x280] sm:$0xff]  ;;  %361 = vmatpush2.msra.mxu0 %v2701_v10 }
  0x38   :  { %5826 = vst [vmem:[#allocation40_spill] sm:$0xff] %v2713_v12  ;;  %v2718_v13 = vld [vmem:[%s5600_s2 + $0x688] sm:$0xff]  ;;  %5828 = vst [vmem:[#allocation42_spill] sm:$0xff] %v2725_v14  ;;  %v2730_v15 = vld [vmem:[%s5600_s2 + $0x680] sm:$0xff]  ;;  %432 = vmatpush2.msra.mxu1 %v2706_v11  ;;  %362 = vmatprep.subr.mxu0 %v2713_v12 }
  0x39   :  { %5827 = vst [vmem:[#allocation41_spill] sm:$0xff] %v2718_v13  ;;  %5829 = vst [vmem:[#allocation43_spill] sm:$0xff] %v2730_v15  ;;  %v2737_v16 = vld [vmem:[%s5600_s2 + $0x268] sm:$0xff]  ;;  %433 = vmatprep.subr.mxu1 %v2718_v13  ;;  %v2749_v10 = vld [vmem:[%s5600_s2 + $0x260] sm:$0xff]  ;;  %363 = vmatpush2.msra.mxu0 %v2725_v14 }
  0x3a   :  { %5830 = vst [vmem:[#allocation44_spill] sm:$0xff] %v2737_v16  ;;  %v2742_v17 = vld [vmem:[%s5600_s2 + $0x668] sm:$0xff]  ;;  %5832 = vst [vmem:[#allocation46_spill] sm:$0xff] %v2749_v10  ;;  %v2754_v11 = vld [vmem:[%s5600_s2 + $0x660] sm:$0xff]  ;;  %434 = vmatpush2.msra.mxu1 %v2730_v15  ;;  %364 = vmatprep.subr.mxu0 %v2737_v16 }
  0x3b   :  { %5831 = vst [vmem:[#allocation45_spill] sm:$0xff] %v2742_v17  ;;  %5833 = vst [vmem:[#allocation47_spill] sm:$0xff] %v2754_v11  ;;  %v2761_v12 = vld [vmem:[%s5600_s2 + $0x248] sm:$0xff]  ;;  %435 = vmatprep.subr.mxu1 %v2742_v17  ;;  %v2773_v14 = vld [vmem:[%s5600_s2 + $0x240] sm:$0xff]  ;;  %365 = vmatpush2.msra.mxu0 %v2749_v10 }
  0x3c   :  { %5834 = vst [vmem:[#allocation48_spill] sm:$0xff] %v2761_v12  ;;  %v2766_v13 = vld [vmem:[%s5600_s2 + $0x648] sm:$0xff]  ;;  %5836 = vst [vmem:[#allocation50_spill] sm:$0xff] %v2773_v14  ;;  %v2778_v15 = vld [vmem:[%s5600_s2 + $0x640] sm:$0xff]  ;;  %436 = vmatpush2.msra.mxu1 %v2754_v11  ;;  %366 = vmatprep.subr.mxu0 %v2761_v12 }
  0x3d   :  { %5835 = vst [vmem:[#allocation49_spill] sm:$0xff] %v2766_v13  ;;  %5837 = vst [vmem:[#allocation51_spill] sm:$0xff] %v2778_v15  ;;  %v2785_v16 = vld [vmem:[%s5600_s2 + $0x228] sm:$0xff]  ;;  %437 = vmatprep.subr.mxu1 %v2766_v13  ;;  %v2797_v10 = vld [vmem:[%s5600_s2 + $0x220] sm:$0xff]  ;;  %367 = vmatpush2.msra.mxu0 %v2773_v14 }
  0x3e   :  { %5838 = vst [vmem:[#allocation52_spill] sm:$0xff] %v2785_v16  ;;  %v2790_v17 = vld [vmem:[%s5600_s2 + $0x628] sm:$0xff]  ;;  %5840 = vst [vmem:[#allocation54_spill] sm:$0xff] %v2797_v10  ;;  %v2802_v11 = vld [vmem:[%s5600_s2 + $0x620] sm:$0xff]  ;;  %438 = vmatpush2.msra.mxu1 %v2778_v15  ;;  %368 = vmatprep.subr.mxu0 %v2785_v16 }
  0x3f   :  { %5839 = vst [vmem:[#allocation53_spill] sm:$0xff] %v2790_v17  ;;  %5841 = vst [vmem:[#allocation55_spill] sm:$0xff] %v2802_v11  ;;  %v2809_v12 = vld [vmem:[%s5600_s2 + $0x208] sm:$0xff]  ;;  %439 = vmatprep.subr.mxu1 %v2790_v17  ;;  %v2821_v14 = vld [vmem:[%s5600_s2 + $0x200] sm:$0xff]  ;;  %369 = vmatpush2.msra.mxu0 %v2797_v10 }
  0x40   :  { %5842 = vst [vmem:[#allocation56_spill] sm:$0xff] %v2809_v12  ;;  %v2814_v13 = vld [vmem:[%s5600_s2 + $0x608] sm:$0xff]  ;;  %5844 = vst [vmem:[#allocation58_spill] sm:$0xff] %v2821_v14  ;;  %440 = vmatpush2.msra.mxu1 %v2802_v11  ;;  %v2833_v16 = vld [vmem:[%s5600_s2 + $0x600] sm:$0xff]  ;;  %370 = vmatprep.subr.mxu0 %v2809_v12 }
  0x41   :  { %5843 = vst [vmem:[#allocation57_spill] sm:$0xff] %v2814_v13  ;;  %v2826_v15 = vld [vmem:[%s5601_s0 + $0x8] sm:$0xff]  ;;  %5845 = vst [vmem:[#allocation59_spill] sm:$0xff] %v2833_v16  ;;  %v2838_v17 = vld [vmem:[%s5601_s0] sm:$0xff]  ;;  %441 = vmatprep.subr.mxu1 %v2814_v13  ;;  %371 = vmatpush2.msra.mxu0 %v2821_v14 }
  0x42   :  { %v2845_v10 = vld [vmem:[%s5601_s0 + $0x18] sm:$0xff]  ;;  %372 = vmatprep.mubr.f32.mxu0 %v2826_v15  ;;  %v2862_v13 = vld [vmem:[%s5601_s0 + $0x10] sm:$0xff]  ;;  %442 = vmatpush2.msra.mxu1 %v2833_v16  ;;  %5855 = vst [vmem:[#allocation69_spill] sm:$0xff] %v2910_v6 }
  0x43   :  { %v2850_v11 = vld [vmem:[%s5600_s2 + $0x1f8] sm:$0xff]  ;;  %373 = vmatmul.mubr.f32.vlgmr.msra.gmra.mxu0 %v2838_v17  ;;  %v2869_v14 = vld [vmem:[%s5600_s2 + $0x1f0] sm:$0xff]  ;;  %443 = vmatprep.mubr.f32.mxu1 %v2845_v10 }
  0x44   :  { %5846 = vst [vmem:[#allocation60_spill] sm:$0xff] %v2850_v11  ;;  %v2857_v12 = vld [vmem:[%s5600_s2 + $0x5f8] sm:$0xff]  ;;  %5848 = vst [vmem:[#allocation62_spill] sm:$0xff] %v2869_v14  ;;  %v2874_v9 = vld [vmem:[%s5600_s2 + $0x5f0] sm:$0xff]  ;;  %450 = vmatprep.subr.mxu0 %v2850_v11  ;;  %444 = vmatmul.mubr.f32.vlgmr.msra.gmra.mxu1 %v2862_v13 }
  0x45   :  { %5847 = vst [vmem:[#allocation61_spill] sm:$0xff] %v2857_v12  ;;  %5849 = vst [vmem:[#allocation63_spill] sm:$0xff] %v2874_v9  ;;  %v2881_v16 = vld [vmem:[%s5600_s2 + $0x1d8] sm:$0xff]  ;;  %521 = vmatprep.subr.mxu1 %v2857_v12  ;;  %v2893_v7 = vld [vmem:[%s5600_s2 + $0x1d0] sm:$0xff]  ;;  %451 = vmatpush1.msra.mxu0 %v2869_v14 }
  0x46   :  { %5850 = vst [vmem:[#allocation64_spill] sm:$0xff] %v2881_v16  ;;  %v2886_v8 = vld [vmem:[%s5600_s2 + $0x5d8] sm:$0xff]  ;;  %5852 = vst [vmem:[#allocation66_spill] sm:$0xff] %v2893_v7  ;;  %v2898_v11 = vld [vmem:[%s5600_s2 + $0x5d0] sm:$0xff]  ;;  %522 = vmatpush1.msra.mxu1 %v2874_v9  ;;  %452 = vmatprep.subr.mxu0 %v2881_v16 }
  0x47   :  { %5851 = vst [vmem:[#allocation65_spill] sm:$0xff] %v2886_v8  ;;  %5853 = vst [vmem:[#allocation67_spill] sm:$0xff] %v2898_v11  ;;  %v2905_v12 = vld [vmem:[%s5600_s2 + $0x1b8] sm:$0xff]  ;;  %523 = vmatprep.subr.mxu1 %v2886_v8  ;;  %v2917_v14 = vld [vmem:[%s5600_s2 + $0x1b0] sm:$0xff]  ;;  %453 = vmatpush1.msra.mxu0 %v2893_v7 }
  0x48   :  { %5854 = vst [vmem:[#allocation68_spill] sm:$0xff] %v2905_v12  ;;  %5856 = vst [vmem:[#allocation70_spill] sm:$0xff] %v2917_v14  ;;  %v2922_v9 = vld [vmem:[%s5600_s2 + $0x5b0] sm:$0xff]  ;;  %524 = vmatpush1.msra.mxu1 %v2898_v11  ;;  %v2929_v16 = vld [vmem:[%s5600_s2 + $0x198] sm:$0xff]  ;;  %454 = vmatprep.subr.mxu0 %v2905_v12 }
  0x49   :  { %5857 = vst [vmem:[#allocation71_spill] sm:$0xff] %v2922_v9  ;;  %5858 = vst [vmem:[#allocation72_spill] sm:$0xff] %v2929_v16  ;;  %v2934_v8 = vld [vmem:[%s5600_s2 + $0x598] sm:$0xff]  ;;  %525 = vmatprep.subr.mxu1 %v2910_v6  ;;  %v2941_v7 = vld [vmem:[%s5600_s2 + $0x190] sm:$0xff]  ;;  %455 = vmatpush1.msra.mxu0 %v2917_v14 }
  0x4a   :  { %5859 = vst [vmem:[#allocation73_spill] sm:$0xff] %v2934_v8  ;;  %5860 = vst [vmem:[#allocation74_spill] sm:$0xff] %v2941_v7  ;;  %v2946_v11 = vld [vmem:[%s5600_s2 + $0x590] sm:$0xff]  ;;  %526 = vmatpush1.msra.mxu1 %v2922_v9  ;;  %v2953_v12 = vld [vmem:[%s5600_s2 + $0x178] sm:$0xff]  ;;  %456 = vmatprep.subr.mxu0 %v2929_v16 }
  0x4b   :  { %5861 = vst [vmem:[#allocation75_spill] sm:$0xff] %v2946_v11  ;;  %5862 = vst [vmem:[#allocation76_spill] sm:$0xff] %v2953_v12  ;;  %v2958_v6 = vld [vmem:[%s5600_s2 + $0x578] sm:$0xff]  ;;  %527 = vmatprep.subr.mxu1 %v2934_v8  ;;  %v2965_v14 = vld [vmem:[%s5600_s2 + $0x170] sm:$0xff]  ;;  %457 = vmatpush1.msra.mxu0 %v2941_v7 }
  0x4c   :  { %5863 = vst [vmem:[#allocation77_spill] sm:$0xff] %v2958_v6  ;;  %5864 = vst [vmem:[#allocation78_spill] sm:$0xff] %v2965_v14  ;;  %v2970_v9 = vld [vmem:[%s5600_s2 + $0x570] sm:$0xff]  ;;  %528 = vmatpush1.msra.mxu1 %v2946_v11  ;;  %v2977_v16 = vld [vmem:[%s5600_s2 + $0x158] sm:$0xff]  ;;  %458 = vmatprep.subr.mxu0 %v2953_v12 }
  0x4d   :  { %5865 = vst [vmem:[#allocation79_spill] sm:$0xff] %v2970_v9  ;;  %5866 = vst [vmem:[#allocation80_spill] sm:$0xff] %v2977_v16  ;;  %v2982_v8 = vld [vmem:[%s5600_s2 + $0x558] sm:$0xff]  ;;  %529 = vmatprep.subr.mxu1 %v2958_v6  ;;  %v2989_v7 = vld [vmem:[%s5600_s2 + $0x150] sm:$0xff]  ;;  %459 = vmatpush1.msra.mxu0 %v2965_v14 }
  0x4e   :  { %5867 = vst [vmem:[#allocation81_spill] sm:$0xff] %v2982_v8  ;;  %5868 = vst [vmem:[#allocation82_spill] sm:$0xff] %v2989_v7  ;;  %v2994_v11 = vld [vmem:[%s5600_s2 + $0x550] sm:$0xff]  ;;  %530 = vmatpush1.msra.mxu1 %v2970_v9  ;;  %v3001_v12 = vld [vmem:[%s5600_s2 + $0x138] sm:$0xff]  ;;  %460 = vmatprep.subr.mxu0 %v2977_v16 }
  0x4f   :  { %5869 = vst [vmem:[#allocation83_spill] sm:$0xff] %v2994_v11  ;;  %5870 = vst [vmem:[#allocation84_spill] sm:$0xff] %v3001_v12  ;;  %v3006_v6 = vld [vmem:[%s5600_s2 + $0x538] sm:$0xff]  ;;  %531 = vmatprep.subr.mxu1 %v2982_v8  ;;  %v3013_v14 = vld [vmem:[%s5600_s2 + $0x130] sm:$0xff]  ;;  %461 = vmatpush1.msra.mxu0 %v2989_v7 }
  0x50   :  { %5871 = vst [vmem:[#allocation85_spill] sm:$0xff] %v3006_v6  ;;  %5872 = vst [vmem:[#allocation86_spill] sm:$0xff] %v3013_v14  ;;  %v3018_v9 = vld [vmem:[%s5600_s2 + $0x530] sm:$0xff]  ;;  %532 = vmatpush1.msra.mxu1 %v2994_v11  ;;  %v3025_v16 = vld [vmem:[%s5600_s2 + $0x118] sm:$0xff]  ;;  %462 = vmatprep.subr.mxu0 %v3001_v12 }
  0x51   :  { %5873 = vst [vmem:[#allocation87_spill] sm:$0xff] %v3018_v9  ;;  %5874 = vst [vmem:[#allocation88_spill] sm:$0xff] %v3025_v16  ;;  %v3030_v8 = vld [vmem:[%s5600_s2 + $0x518] sm:$0xff]  ;;  %533 = vmatprep.subr.mxu1 %v3006_v6  ;;  %v3037_v7 = vld [vmem:[%s5600_s2 + $0x110] sm:$0xff]  ;;  %463 = vmatpush1.msra.mxu0 %v3013_v14 }
  0x52   :  { %5875 = vst [vmem:[#allocation89_spill] sm:$0xff] %v3030_v8  ;;  %5876 = vst [vmem:[#allocation90_spill] sm:$0xff] %v3037_v7  ;;  %v3042_v11 = vld [vmem:[%s5600_s2 + $0x510] sm:$0xff]  ;;  %534 = vmatpush1.msra.mxu1 %v3018_v9  ;;  %v3049_v12 = vld [vmem:[%s5600_s2 + $0xf8] sm:$0xff]  ;;  %464 = vmatprep.subr.mxu0 %v3025_v16 }
  0x53   :  { %5877 = vst [vmem:[#allocation91_spill] sm:$0xff] %v3042_v11  ;;  %5878 = vst [vmem:[#allocation92_spill] sm:$0xff] %v3049_v12  ;;  %v3054_v6 = vld [vmem:[%s5600_s2 + $0x4f8] sm:$0xff]  ;;  %535 = vmatprep.subr.mxu1 %v3030_v8  ;;  %v3061_v14 = vld [vmem:[%s5600_s2 + $0xf0] sm:$0xff]  ;;  %465 = vmatpush1.msra.mxu0 %v3037_v7 }
  0x54   :  { %5879 = vst [vmem:[#allocation93_spill] sm:$0xff] %v3054_v6  ;;  %5880 = vst [vmem:[#allocation94_spill] sm:$0xff] %v3061_v14  ;;  %v3066_v9 = vld [vmem:[%s5600_s2 + $0x4f0] sm:$0xff]  ;;  %536 = vmatpush1.msra.mxu1 %v3042_v11  ;;  %v3073_v16 = vld [vmem:[%s5600_s2 + $0xd8] sm:$0xff]  ;;  %466 = vmatprep.subr.mxu0 %v3049_v12 }
  0x55   :  { %5881 = vst [vmem:[#allocation95_spill] sm:$0xff] %v3066_v9  ;;  %5882 = vst [vmem:[#allocation96_spill] sm:$0xff] %v3073_v16  ;;  %v3078_v8 = vld [vmem:[%s5600_s2 + $0x4d8] sm:$0xff]  ;;  %537 = vmatprep.subr.mxu1 %v3054_v6  ;;  %v3085_v7 = vld [vmem:[%s5600_s2 + $0xd0] sm:$0xff]  ;;  %467 = vmatpush1.msra.mxu0 %v3061_v14 }
  0x56   :  { %5883 = vst [vmem:[#allocation97_spill] sm:$0xff] %v3078_v8  ;;  %5884 = vst [vmem:[#allocation98_spill] sm:$0xff] %v3085_v7  ;;  %v3090_v11 = vld [vmem:[%s5600_s2 + $0x4d0] sm:$0xff]  ;;  %538 = vmatpush1.msra.mxu1 %v3066_v9  ;;  %v3097_v12 = vld [vmem:[%s5600_s2 + $0xb8] sm:$0xff]  ;;  %468 = vmatprep.subr.mxu0 %v3073_v16 }
  0x57   :  { %5885 = vst [vmem:[#allocation99_spill] sm:$0xff] %v3090_v11  ;;  %5886 = vst [vmem:[#allocation100_spill] sm:$0xff] %v3097_v12  ;;  %v3102_v6 = vld [vmem:[%s5600_s2 + $0x4b8] sm:$0xff]  ;;  %539 = vmatprep.subr.mxu1 %v3078_v8  ;;  %v3109_v14 = vld [vmem:[%s5600_s2 + $0xb0] sm:$0xff]  ;;  %469 = vmatpush1.msra.mxu0 %v3085_v7 }
  0x58   :  { %5887 = vst [vmem:[#allocation101_spill] sm:$0xff] %v3102_v6  ;;  %5888 = vst [vmem:[#allocation102_spill] sm:$0xff] %v3109_v14  ;;  %v3114_v9 = vld [vmem:[%s5600_s2 + $0x4b0] sm:$0xff]  ;;  %540 = vmatpush1.msra.mxu1 %v3090_v11  ;;  %v3121_v16 = vld [vmem:[%s5600_s2 + $0x98] sm:$0xff]  ;;  %470 = vmatprep.subr.mxu0 %v3097_v12 }
  0x59   :  { %5889 = vst [vmem:[#allocation103_spill] sm:$0xff] %v3114_v9  ;;  %5890 = vst [vmem:[#allocation104_spill] sm:$0xff] %v3121_v16  ;;  %v3126_v8 = vld [vmem:[%s5600_s2 + $0x498] sm:$0xff]  ;;  %541 = vmatprep.subr.mxu1 %v3102_v6  ;;  %v3133_v7 = vld [vmem:[%s5600_s2 + $0x90] sm:$0xff]  ;;  %471 = vmatpush1.msra.mxu0 %v3109_v14 }
  0x5a   :  { %5891 = vst [vmem:[#allocation105_spill] sm:$0xff] %v3126_v8  ;;  %5892 = vst [vmem:[#allocation106_spill] sm:$0xff] %v3133_v7  ;;  %v3138_v11 = vld [vmem:[%s5600_s2 + $0x490] sm:$0xff]  ;;  %542 = vmatpush1.msra.mxu1 %v3114_v9  ;;  %v3145_v12 = vld [vmem:[%s5600_s2 + $0x78] sm:$0xff]  ;;  %472 = vmatprep.subr.mxu0 %v3121_v16 }
  0x5b   :  { %5893 = vst [vmem:[#allocation107_spill] sm:$0xff] %v3138_v11  ;;  %5894 = vst [vmem:[#allocation108_spill] sm:$0xff] %v3145_v12  ;;  %v3150_v6 = vld [vmem:[%s5600_s2 + $0x478] sm:$0xff]  ;;  %543 = vmatprep.subr.mxu1 %v3126_v8  ;;  %v3157_v14 = vld [vmem:[%s5600_s2 + $0x70] sm:$0xff]  ;;  %473 = vmatpush1.msra.mxu0 %v3133_v7 }
  0x5c   :  { %5895 = vst [vmem:[#allocation109_spill] sm:$0xff] %v3150_v6  ;;  %5896 = vst [vmem:[#allocation110_spill] sm:$0xff] %v3157_v14  ;;  %v3162_v9 = vld [vmem:[%s5600_s2 + $0x470] sm:$0xff]  ;;  %544 = vmatpush1.msra.mxu1 %v3138_v11  ;;  %v3169_v16 = vld [vmem:[%s5600_s2 + $0x58] sm:$0xff]  ;;  %474 = vmatprep.subr.mxu0 %v3145_v12 }
  0x5d   :  { %5897 = vst [vmem:[#allocation111_spill] sm:$0xff] %v3162_v9  ;;  %5898 = vst [vmem:[#allocation112_spill] sm:$0xff] %v3169_v16  ;;  %v3174_v8 = vld [vmem:[%s5600_s2 + $0x458] sm:$0xff]  ;;  %545 = vmatprep.subr.mxu1 %v3150_v6  ;;  %v3181_v7 = vld [vmem:[%s5600_s2 + $0x50] sm:$0xff]  ;;  %475 = vmatpush1.msra.mxu0 %v3157_v14 }
  0x5e   :  { %5899 = vst [vmem:[#allocation113_spill] sm:$0xff] %v3174_v8  ;;  %5900 = vst [vmem:[#allocation114_spill] sm:$0xff] %v3181_v7  ;;  %v3186_v11 = vld [vmem:[%s5600_s2 + $0x450] sm:$0xff]  ;;  %546 = vmatpush1.msra.mxu1 %v3162_v9  ;;  %v3193_v12 = vld [vmem:[%s5600_s2 + $0x38] sm:$0xff]  ;;  %476 = vmatprep.subr.mxu0 %v3169_v16 }
  0x5f   :  { %5901 = vst [vmem:[#allocation115_spill] sm:$0xff] %v3186_v11  ;;  %5902 = vst [vmem:[#allocation116_spill] sm:$0xff] %v3193_v12  ;;  %v3198_v6 = vld [vmem:[%s5600_s2 + $0x438] sm:$0xff]  ;;  %547 = vmatprep.subr.mxu1 %v3174_v8  ;;  %v3205_v14 = vld [vmem:[%s5600_s2 + $0x30] sm:$0xff]  ;;  %477 = vmatpush1.msra.mxu0 %v3181_v7 }
  0x60   :  { %5903 = vst [vmem:[#allocation117_spill] sm:$0xff] %v3198_v6  ;;  %5904 = vst [vmem:[#allocation118_spill] sm:$0xff] %v3205_v14  ;;  %v3210_v9 = vld [vmem:[%s5600_s2 + $0x430] sm:$0xff]  ;;  %548 = vmatpush1.msra.mxu1 %v3186_v11  ;;  %v3217_v16 = vld [vmem:[%s5600_s2 + $0x18] sm:$0xff]  ;;  %478 = vmatprep.subr.mxu0 %v3193_v12 }
  0x61   :  { %5905 = vst [vmem:[#allocation119_spill] sm:$0xff] %v3210_v9  ;;  %5906 = vst [vmem:[#allocation120_spill] sm:$0xff] %v3217_v16  ;;  %v3222_v8 = vld [vmem:[%s5600_s2 + $0x418] sm:$0xff]  ;;  %549 = vmatprep.subr.mxu1 %v3198_v6  ;;  %v3229_v7 = vld [vmem:[%s5600_s2 + $0x10] sm:$0xff]  ;;  %479 = vmatpush1.msra.mxu0 %v3205_v14 }
  0x62   :  { %5907 = vst [vmem:[#allocation121_spill] sm:$0xff] %v3222_v8  ;;  %5908 = vst [vmem:[#allocation122_spill] sm:$0xff] %v3229_v7  ;;  %v3234_v11 = vld [vmem:[%s5600_s2 + $0x410] sm:$0xff]  ;;  %550 = vmatpush1.msra.mxu1 %v3210_v9  ;;  %v3241_v12 = vld [vmem:[%s5600_s2 + $0x3f8] sm:$0xff]  ;;  %480 = vmatprep.subr.mxu0 %v3217_v16 }
  0x63   :  { %5909 = vst [vmem:[#allocation123_spill] sm:$0xff] %v3234_v11  ;;  %5910 = vst [vmem:[#allocation124_spill] sm:$0xff] %v3241_v12  ;;  %v3246_v6 = vld [vmem:[%s5600_s2 + $0x7f8] sm:$0xff]  ;;  %551 = vmatprep.subr.mxu1 %v3222_v8  ;;  %v3253_v14 = vld [vmem:[%s5600_s2 + $0x3f0] sm:$0xff]  ;;  %481 = vmatpush1.msra.mxu0 %v3229_v7 }
  0x64   :  { %5911 = vst [vmem:[#allocation125_spill] sm:$0xff] %v3246_v6  ;;  %5912 = vst [vmem:[#allocation126_spill] sm:$0xff] %v3253_v14  ;;  %v3258_v9 = vld [vmem:[%s5600_s2 + $0x7f0] sm:$0xff]  ;;  %552 = vmatpush1.msra.mxu1 %v3234_v11  ;;  %v3265_v16 = vld [vmem:[%s5600_s2 + $0x3d8] sm:$0xff]  ;;  %482 = vmatprep.subr.mxu0 %v3241_v12 }
  0x65   :  { %5913 = vst [vmem:[#allocation127_spill] sm:$0xff] %v3258_v9  ;;  %5914 = vst [vmem:[#allocation128_spill] sm:$0xff] %v3265_v16  ;;  %v3270_v8 = vld [vmem:[%s5600_s2 + $0x7d8] sm:$0xff]  ;;  %553 = vmatprep.subr.mxu1 %v3246_v6  ;;  %v3277_v7 = vld [vmem:[%s5600_s2 + $0x3d0] sm:$0xff]  ;;  %483 = vmatpush2.msra.mxu0 %v3253_v14 }
  0x66   :  { %5915 = vst [vmem:[#allocation129_spill] sm:$0xff] %v3270_v8  ;;  %5916 = vst [vmem:[#allocation130_spill] sm:$0xff] %v3277_v7  ;;  %v3282_v11 = vld [vmem:[%s5600_s2 + $0x7d0] sm:$0xff]  ;;  %554 = vmatpush2.msra.mxu1 %v3258_v9  ;;  %v3289_v12 = vld [vmem:[%s5600_s2 + $0x3b8] sm:$0xff]  ;;  %484 = vmatprep.subr.mxu0 %v3265_v16 }
  0x67   :  { %5917 = vst [vmem:[#allocation131_spill] sm:$0xff] %v3282_v11  ;;  %5918 = vst [vmem:[#allocation132_spill] sm:$0xff] %v3289_v12  ;;  %v3294_v6 = vld [vmem:[%s5600_s2 + $0x7b8] sm:$0xff]  ;;  %555 = vmatprep.subr.mxu1 %v3270_v8  ;;  %v3301_v14 = vld [vmem:[%s5600_s2 + $0x3b0] sm:$0xff]  ;;  %485 = vmatpush2.msra.mxu0 %v3277_v7 }
  0x68   :  { %5919 = vst [vmem:[#allocation133_spill] sm:$0xff] %v3294_v6  ;;  %5920 = vst [vmem:[#allocation134_spill] sm:$0xff] %v3301_v14  ;;  %v3306_v9 = vld [vmem:[%s5600_s2 + $0x7b0] sm:$0xff]  ;;  %556 = vmatpush2.msra.mxu1 %v3282_v11  ;;  %v3313_v16 = vld [vmem:[%s5600_s2 + $0x398] sm:$0xff]  ;;  %486 = vmatprep.subr.mxu0 %v3289_v12 }
  0x69   :  { %5921 = vst [vmem:[#allocation135_spill] sm:$0xff] %v3306_v9  ;;  %5922 = vst [vmem:[#allocation136_spill] sm:$0xff] %v3313_v16  ;;  %v3318_v8 = vld [vmem:[%s5600_s2 + $0x798] sm:$0xff]  ;;  %557 = vmatprep.subr.mxu1 %v3294_v6  ;;  %v3325_v7 = vld [vmem:[%s5600_s2 + $0x390] sm:$0xff]  ;;  %487 = vmatpush2.msra.mxu0 %v3301_v14 }
  0x6a   :  { %5923 = vst [vmem:[#allocation137_spill] sm:$0xff] %v3318_v8  ;;  %5924 = vst [vmem:[#allocation138_spill] sm:$0xff] %v3325_v7  ;;  %v3330_v11 = vld [vmem:[%s5600_s2 + $0x790] sm:$0xff]  ;;  %558 = vmatpush2.msra.mxu1 %v3306_v9  ;;  %v3337_v12 = vld [vmem:[%s5600_s2 + $0x378] sm:$0xff]  ;;  %488 = vmatprep.subr.mxu0 %v3313_v16 }
  0x6b   :  { %5925 = vst [vmem:[#allocation139_spill] sm:$0xff] %v3330_v11  ;;  %5926 = vst [vmem:[#allocation140_spill] sm:$0xff] %v3337_v12  ;;  %v3342_v6 = vld [vmem:[%s5600_s2 + $0x778] sm:$0xff]  ;;  %559 = vmatprep.subr.mxu1 %v3318_v8  ;;  %v3349_v14 = vld [vmem:[%s5600_s2 + $0x370] sm:$0xff]  ;;  %489 = vmatpush2.msra.mxu0 %v3325_v7 }
  0x6c   :  { %5927 = vst [vmem:[#allocation141_spill] sm:$0xff] %v3342_v6  ;;  %5928 = vst [vmem:[#allocation142_spill] sm:$0xff] %v3349_v14  ;;  %v3354_v9 = vld [vmem:[%s5600_s2 + $0x770] sm:$0xff]  ;;  %560 = vmatpush2.msra.mxu1 %v3330_v11  ;;  %v3361_v16 = vld [vmem:[%s5600_s2 + $0x358] sm:$0xff]  ;;  %490 = vmatprep.subr.mxu0 %v3337_v12 }
  0x6d   :  { %5929 = vst [vmem:[#allocation143_spill] sm:$0xff] %v3354_v9  ;;  %5930 = vst [vmem:[#allocation144_spill] sm:$0xff] %v3361_v16  ;;  %v3366_v8 = vld [vmem:[%s5600_s2 + $0x758] sm:$0xff]  ;;  %561 = vmatprep.subr.mxu1 %v3342_v6  ;;  %v3373_v7 = vld [vmem:[%s5600_s2 + $0x350] sm:$0xff]  ;;  %491 = vmatpush2.msra.mxu0 %v3349_v14 }
  0x6e   :  { %5931 = vst [vmem:[#allocation145_spill] sm:$0xff] %v3366_v8  ;;  %5932 = vst [vmem:[#allocation146_spill] sm:$0xff] %v3373_v7  ;;  %v3378_v11 = vld [vmem:[%s5600_s2 + $0x750] sm:$0xff]  ;;  %562 = vmatpush2.msra.mxu1 %v3354_v9  ;;  %v3385_v12 = vld [vmem:[%s5600_s2 + $0x338] sm:$0xff]  ;;  %492 = vmatprep.subr.mxu0 %v3361_v16 }
  0x6f   :  { %5933 = vst [vmem:[#allocation147_spill] sm:$0xff] %v3378_v11  ;;  %5934 = vst [vmem:[#allocation148_spill] sm:$0xff] %v3385_v12  ;;  %v3390_v6 = vld [vmem:[%s5600_s2 + $0x738] sm:$0xff]  ;;  %563 = vmatprep.subr.mxu1 %v3366_v8  ;;  %v3397_v14 = vld [vmem:[%s5600_s2 + $0x330] sm:$0xff]  ;;  %493 = vmatpush2.msra.mxu0 %v3373_v7 }
  0x70   :  { %5935 = vst [vmem:[#allocation149_spill] sm:$0xff] %v3390_v6  ;;  %5936 = vst [vmem:[#allocation150_spill] sm:$0xff] %v3397_v14  ;;  %v3402_v9 = vld [vmem:[%s5600_s2 + $0x730] sm:$0xff]  ;;  %564 = vmatpush2.msra.mxu1 %v3378_v11  ;;  %v3409_v16 = vld [vmem:[%s5600_s2 + $0x318] sm:$0xff]  ;;  %494 = vmatprep.subr.mxu0 %v3385_v12 }
  0x71   :  { %5937 = vst [vmem:[#allocation151_spill] sm:$0xff] %v3402_v9  ;;  %5938 = vst [vmem:[#allocation152_spill] sm:$0xff] %v3409_v16  ;;  %v3414_v8 = vld [vmem:[%s5600_s2 + $0x718] sm:$0xff]  ;;  %565 = vmatprep.subr.mxu1 %v3390_v6  ;;  %v3421_v7 = vld [vmem:[%s5600_s2 + $0x310] sm:$0xff]  ;;  %495 = vmatpush2.msra.mxu0 %v3397_v14 }
  0x72   :  { %5939 = vst [vmem:[#allocation153_spill] sm:$0xff] %v3414_v8  ;;  %5940 = vst [vmem:[#allocation154_spill] sm:$0xff] %v3421_v7  ;;  %v3426_v11 = vld [vmem:[%s5600_s2 + $0x710] sm:$0xff]  ;;  %566 = vmatpush2.msra.mxu1 %v3402_v9  ;;  %v3433_v12 = vld [vmem:[%s5600_s2 + $0x2f8] sm:$0xff]  ;;  %496 = vmatprep.subr.mxu0 %v3409_v16 }
  0x73   :  { %5941 = vst [vmem:[#allocation155_spill] sm:$0xff] %v3426_v11  ;;  %5942 = vst [vmem:[#allocation156_spill] sm:$0xff] %v3433_v12  ;;  %v3438_v6 = vld [vmem:[%s5600_s2 + $0x6f8] sm:$0xff]  ;;  %567 = vmatprep.subr.mxu1 %v3414_v8  ;;  %v3445_v14 = vld [vmem:[%s5600_s2 + $0x2f0] sm:$0xff]  ;;  %497 = vmatpush2.msra.mxu0 %v3421_v7 }
  0x74   :  { %5943 = vst [vmem:[#allocation157_spill] sm:$0xff] %v3438_v6  ;;  %5944 = vst [vmem:[#allocation158_spill] sm:$0xff] %v3445_v14  ;;  %v3450_v9 = vld [vmem:[%s5600_s2 + $0x6f0] sm:$0xff]  ;;  %568 = vmatpush2.msra.mxu1 %v3426_v11  ;;  %v3457_v16 = vld [vmem:[%s5600_s2 + $0x2d8] sm:$0xff]  ;;  %498 = vmatprep.subr.mxu0 %v3433_v12 }
  0x75   :  { %5945 = vst [vmem:[#allocation159_spill] sm:$0xff] %v3450_v9  ;;  %5946 = vst [vmem:[#allocation160_spill] sm:$0xff] %v3457_v16  ;;  %v3462_v8 = vld [vmem:[%s5600_s2 + $0x6d8] sm:$0xff]  ;;  %569 = vmatprep.subr.mxu1 %v3438_v6  ;;  %v3469_v7 = vld [vmem:[%s5600_s2 + $0x2d0] sm:$0xff]  ;;  %499 = vmatpush2.msra.mxu0 %v3445_v14 }
  0x76   :  { %5947 = vst [vmem:[#allocation161_spill] sm:$0xff] %v3462_v8  ;;  %5948 = vst [vmem:[#allocation162_spill] sm:$0xff] %v3469_v7  ;;  %v3474_v11 = vld [vmem:[%s5600_s2 + $0x6d0] sm:$0xff]  ;;  %570 = vmatpush2.msra.mxu1 %v3450_v9  ;;  %v3481_v12 = vld [vmem:[%s5600_s2 + $0x2b8] sm:$0xff]  ;;  %500 = vmatprep.subr.mxu0 %v3457_v16 }
  0x77   :  { %5949 = vst [vmem:[#allocation163_spill] sm:$0xff] %v3474_v11  ;;  %5950 = vst [vmem:[#allocation164_spill] sm:$0xff] %v3481_v12  ;;  %v3486_v6 = vld [vmem:[%s5600_s2 + $0x6b8] sm:$0xff]  ;;  %571 = vmatprep.subr.mxu1 %v3462_v8  ;;  %v3493_v14 = vld [vmem:[%s5600_s2 + $0x2b0] sm:$0xff]  ;;  %501 = vmatpush2.msra.mxu0 %v3469_v7 }
  0x78   :  { %5951 = vst [vmem:[#allocation165_spill] sm:$0xff] %v3486_v6  ;;  %5952 = vst [vmem:[#allocation166_spill] sm:$0xff] %v3493_v14  ;;  %v3498_v9 = vld [vmem:[%s5600_s2 + $0x6b0] sm:$0xff]  ;;  %572 = vmatpush2.msra.mxu1 %v3474_v11  ;;  %v3505_v16 = vld [vmem:[%s5600_s2 + $0x298] sm:$0xff]  ;;  %502 = vmatprep.subr.mxu0 %v3481_v12 }
  0x79   :  { %5953 = vst [vmem:[#allocation167_spill] sm:$0xff] %v3498_v9  ;;  %5954 = vst [vmem:[#allocation168_spill] sm:$0xff] %v3505_v16  ;;  %v3510_v8 = vld [vmem:[%s5600_s2 + $0x698] sm:$0xff]  ;;  %573 = vmatprep.subr.mxu1 %v3486_v6  ;;  %v3517_v7 = vld [vmem:[%s5600_s2 + $0x290] sm:$0xff]  ;;  %503 = vmatpush2.msra.mxu0 %v3493_v14 }
  0x7a   :  { %5955 = vst [vmem:[#allocation169_spill] sm:$0xff] %v3510_v8  ;;  %5956 = vst [vmem:[#allocation170_spill] sm:$0xff] %v3517_v7  ;;  %v3522_v11 = vld [vmem:[%s5600_s2 + $0x690] sm:$0xff]  ;;  %574 = vmatpush2.msra.mxu1 %v3498_v9  ;;  %v3529_v12 = vld [vmem:[%s5600_s2 + $0x278] sm:$0xff]  ;;  %504 = vmatprep.subr.mxu0 %v3505_v16 }
  0x7b   :  { %5957 = vst [vmem:[#allocation171_spill] sm:$0xff] %v3522_v11  ;;  %5958 = vst [vmem:[#allocation172_spill] sm:$0xff] %v3529_v12  ;;  %v3534_v6 = vld [vmem:[%s5600_s2 + $0x678] sm:$0xff]  ;;  %575 = vmatprep.subr.mxu1 %v3510_v8  ;;  %v3541_v14 = vld [vmem:[%s5600_s2 + $0x270] sm:$0xff]  ;;  %505 = vmatpush2.msra.mxu0 %v3517_v7 }
  0x7c   :  { %5959 = vst [vmem:[#allocation173_spill] sm:$0xff] %v3534_v6  ;;  %5960 = vst [vmem:[#allocation174_spill] sm:$0xff] %v3541_v14  ;;  %v3546_v9 = vld [vmem:[%s5600_s2 + $0x670] sm:$0xff]  ;;  %576 = vmatpush2.msra.mxu1 %v3522_v11  ;;  %v3553_v16 = vld [vmem:[%s5600_s2 + $0x258] sm:$0xff]  ;;  %506 = vmatprep.subr.mxu0 %v3529_v12 }
  0x7d   :  { %5961 = vst [vmem:[#allocation175_spill] sm:$0xff] %v3546_v9  ;;  %5962 = vst [vmem:[#allocation176_spill] sm:$0xff] %v3553_v16  ;;  %v3558_v8 = vld [vmem:[%s5600_s2 + $0x658] sm:$0xff]  ;;  %577 = vmatprep.subr.mxu1 %v3534_v6  ;;  %v3565_v7 = vld [vmem:[%s5600_s2 + $0x250] sm:$0xff]  ;;  %507 = vmatpush2.msra.mxu0 %v3541_v14 }
  0x7e   :  { %5963 = vst [vmem:[#allocation177_spill] sm:$0xff] %v3558_v8  ;;  %5964 = vst [vmem:[#allocation178_spill] sm:$0xff] %v3565_v7  ;;  %v3570_v11 = vld [vmem:[%s5600_s2 + $0x650] sm:$0xff]  ;;  %578 = vmatpush2.msra.mxu1 %v3546_v9  ;;  %v3577_v12 = vld [vmem:[%s5600_s2 + $0x238] sm:$0xff]  ;;  %508 = vmatprep.subr.mxu0 %v3553_v16 }
  0x7f   :  { %5965 = vst [vmem:[#allocation179_spill] sm:$0xff] %v3570_v11  ;;  %v3582_v6 = vld [vmem:[%s5600_s2 + $0x638] sm:$0xff]  ;;  %579 = vmatprep.subr.mxu1 %v3558_v8  ;;  %v3589_v14 = vld [vmem:[%s5600_s2 + $0x230] sm:$0xff]  ;;  %509 = vmatpush2.msra.mxu0 %v3565_v7 }
  0x80   :  { %v3594_v9 = vld [vmem:[%s5600_s2 + $0x630] sm:$0xff]  ;;  %580 = vmatpush2.msra.mxu1 %v3570_v11  ;;  %v3601_v16 = vld [vmem:[%s5600_s2 + $0x218] sm:$0xff]  ;;  %510 = vmatprep.subr.mxu0 %v3577_v12 }
  0x81   :  { %5966 = vst [vmem:[#allocation180_spill] sm:$0xff] %v3594_v9  ;;  %5967 = vst [vmem:[#allocation181_spill] sm:$0xff] %v3601_v16  ;;  %v3606_v8 = vld [vmem:[%s5600_s2 + $0x618] sm:$0xff]  ;;  %581 = vmatprep.subr.mxu1 %v3582_v6  ;;  %v3613_v7 = vld [vmem:[%s5600_s2 + $0x210] sm:$0xff]  ;;  %511 = vmatpush2.msra.mxu0 %v3589_v14 }
  0x82   :  { %582 = vmatpush2.msra.mxu1 %v3594_v9  ;;  %v3620_v11 = vld [vmem:[%s5600_s2 + $0x610] sm:$0xff]  ;;  %512 = vmatprep.subr.mxu0 %v3601_v16  ;;  %v2062_v9 = vld [vmem:[%s5600_s2 + $0x1e8] sm:$0xff] }
  0x83   :  { %583 = vmatprep.subr.mxu1 %v3606_v8  ;;  %513 = vmatpush2.msra.mxu0 %v3613_v7  ;;  %v2063_v16 = vld [vmem:[%s5600_s2 + $0x5e8] sm:$0xff] }
  0x84   :  { %514 = vmatprep.mubr.f32.mxu0 %v2826_v15  ;;  %584 = vmatpush2.msra.mxu1 %v3620_v11  ;;  %v2064_v15 = vld [vmem:[%s5600_s2 + $0x1e0] sm:$0xff] }
  0x85   :  { %515 = vmatmul.mubr.f32.vlgmr.msra.gmra.mxu0 %v2838_v17  ;;  %585 = vmatprep.mubr.f32.mxu1 %v2845_v10  ;;  %v2065_v10 = vld [vmem:[%s5600_s2 + $0x5e0] sm:$0xff] }
  0x86   :  { %600 = vmatprep.subr.mxu0 %v2062_v9  ;;  %671 = vmatprep.subr.mxu1 %v2063_v16  ;;  %v2066_v9 = vld [vmem:[%s5600_s2 + $0x1c8] sm:$0xff]  ;;  %v2069_v17 = vld [vmem:[%s5600_s2 + $0x5c0] sm:$0xff] }
  0x87   :  { %586 = vmatmul.mubr.f32.vlgmr.msra.gmra.mxu1 %v2862_v13  ;;  %601 = vmatpush1.msra.mxu0 %v2064_v15  ;;  %v2067_v16 = vld [vmem:[%s5600_s2 + $0x5c8] sm:$0xff]  ;;  %v2068_v13 = vld [vmem:[%s5600_s2 + $0x1c0] sm:$0xff] }
  0x88   :  { %672 = vmatpush1.msra.mxu1 %v2065_v10  ;;  %602 = vmatprep.subr.mxu0 %v2066_v9  ;;  %v2070_v15 = vld [vmem:[%s5600_s2 + $0x1a8] sm:$0xff]  ;;  %v2072_v9 = vld [vmem:[%s5600_s2 + $0x1a0] sm:$0xff] }
  0x89   :  { %673 = vmatprep.subr.mxu1 %v2067_v16  ;;  %603 = vmatpush1.msra.mxu0 %v2068_v13  ;;  %v2071_v10 = vld [vmem:[%s5600_s2 + $0x5a8] sm:$0xff]  ;;  %v2073_v16 = vld [vmem:[%s5600_s2 + $0x5a0] sm:$0xff] }
  0x8a   :  { %674 = vmatpush1.msra.mxu1 %v2069_v17  ;;  %604 = vmatprep.subr.mxu0 %v2070_v15  ;;  %v2074_v13 = vld [vmem:[%s5600_s2 + $0x188] sm:$0xff]  ;;  %v2076_v15 = vld [vmem:[%s5600_s2 + $0x180] sm:$0xff] }
  0x8b   :  { %675 = vmatprep.subr.mxu1 %v2071_v10  ;;  %605 = vmatpush1.msra.mxu0 %v2072_v9  ;;  %v2075_v17 = vld [vmem:[%s5600_s2 + $0x588] sm:$0xff]  ;;  %v2077_v10 = vld [vmem:[%s5600_s2 + $0x580] sm:$0xff] }
  0x8c   :  { %676 = vmatpush1.msra.mxu1 %v2073_v16  ;;  %606 = vmatprep.subr.mxu0 %v2074_v13  ;;  %v2078_v9 = vld [vmem:[%s5600_s2 + $0x168] sm:$0xff] }
  0x8d   :  { %677 = vmatprep.subr.mxu1 %v2075_v17  ;;  %607 = vmatpush1.msra.mxu0 %v2076_v15  ;;  %v2079_v16 = vld [vmem:[%s5600_s2 + $0x568] sm:$0xff]  ;;  %v6020_v17 = vld [vmem:[#allocation54_spill] sm:$0xff] }
  0x8e   :  { %678 = vmatpush1.msra.mxu1 %v2077_v10  ;;  %608 = vmatprep.subr.mxu0 %v2078_v9  ;;  %v3791_v13 = vld [vmem:[%s5602_s1 + $0x8] sm:$0xff]  ;;  %v3798_v10 = vld [vmem:[%s5602_s1] sm:$0xff]  ;;  %v6022_v9 = vld [vmem:[#allocation56_spill] sm:$0xff] }
  0x8f   :  { %679 = vmatprep.subr.mxu1 %v2079_v16  ;;  %609 = vmatpush1.msra.mxu0 %v2177_v18  ;;  %v5968_v18 = vld [vmem:[#allocation2_spill] sm:$0xff]  ;;  %v6021_v15 = vld [vmem:[#allocation55_spill] sm:$0xff]  ;;  %v6023_v16 = vld [vmem:[#allocation57_spill] sm:$0xff] }
  0x90   :  { %680 = vmatpush1.msra.mxu1 %v2182_v19  ;;  %610 = vmatprep.subr.mxu0 %v2187_v20  ;;  %v5969_v19 = vld [vmem:[#allocation3_spill] sm:$0xff]  ;;  %v5970_v20 = vld [vmem:[#allocation4_spill] sm:$0xff] }
  0x91   :  { %681 = vmatprep.subr.mxu1 %v2192_v21  ;;  %611 = vmatpush1.msra.mxu0 %v2197_v22  ;;  %v5971_v21 = vld [vmem:[#allocation5_spill] sm:$0xff]  ;;  %v5972_v22 = vld [vmem:[#allocation6_spill] sm:$0xff] }
  0x92   :  { %682 = vmatpush1.msra.mxu1 %v2202_v23  ;;  %612 = vmatprep.subr.mxu0 %v2209_v24  ;;  %v5973_v23 = vld [vmem:[#allocation7_spill] sm:$0xff]  ;;  %v5974_v24 = vld [vmem:[#allocation8_spill] sm:$0xff] }
  0x93   :  { %683 = vmatprep.subr.mxu1 %v2214_v25  ;;  %613 = vmatpush1.msra.mxu0 %v2221_v26  ;;  %v5975_v25 = vld [vmem:[#allocation9_spill] sm:$0xff]  ;;  %v5976_v26 = vld [vmem:[#allocation10_spill] sm:$0xff] }
  0x94   :  { %684 = vmatpush1.msra.mxu1 %v2226_v27  ;;  %614 = vmatprep.subr.mxu0 %v2233_v28  ;;  %v5977_v27 = vld [vmem:[#allocation11_spill] sm:$0xff]  ;;  %v5978_v28 = vld [vmem:[#allocation12_spill] sm:$0xff] }
  0x95   :  { %685 = vmatprep.subr.mxu1 %v2238_v29  ;;  %615 = vmatpush1.msra.mxu0 %v2245_v30  ;;  %v5979_v29 = vld [vmem:[#allocation13_spill] sm:$0xff]  ;;  %v5980_v30 = vld [vmem:[#allocation14_spill] sm:$0xff] }
  0x96   :  { %686 = vmatpush1.msra.mxu1 %v2250_v31  ;;  %616 = vmatprep.subr.mxu0 %v2257_v32  ;;  %v5981_v31 = vld [vmem:[#allocation15_spill] sm:$0xff]  ;;  %v5982_v32 = vld [vmem:[#allocation16_spill] sm:$0xff] }
  0x97   :  { %687 = vmatprep.subr.mxu1 %v2262_v33  ;;  %617 = vmatpush1.msra.mxu0 %v2269_v34  ;;  %v5983_v33 = vld [vmem:[#allocation17_spill] sm:$0xff]  ;;  %v5984_v34 = vld [vmem:[#allocation18_spill] sm:$0xff] }
  0x98   :  { %688 = vmatpush1.msra.mxu1 %v2274_v35  ;;  %618 = vmatprep.subr.mxu0 %v2281_v36  ;;  %v5985_v35 = vld [vmem:[#allocation19_spill] sm:$0xff]  ;;  %v5986_v36 = vld [vmem:[#allocation20_spill] sm:$0xff] }
  0x99   :  { %689 = vmatprep.subr.mxu1 %v2286_v37  ;;  %619 = vmatpush1.msra.mxu0 %v2293_v38  ;;  %v5987_v37 = vld [vmem:[#allocation21_spill] sm:$0xff]  ;;  %v5988_v38 = vld [vmem:[#allocation22_spill] sm:$0xff] }
  0x9a   :  { %690 = vmatpush1.msra.mxu1 %v2298_v39  ;;  %620 = vmatprep.subr.mxu0 %v2305_v40  ;;  %v5989_v39 = vld [vmem:[#allocation23_spill] sm:$0xff]  ;;  %v5990_v40 = vld [vmem:[#allocation24_spill] sm:$0xff] }
  0x9b   :  { %691 = vmatprep.subr.mxu1 %v2310_v41  ;;  %621 = vmatpush1.msra.mxu0 %v2317_v42  ;;  %v5991_v41 = vld [vmem:[#allocation25_spill] sm:$0xff]  ;;  %v5992_v42 = vld [vmem:[#allocation26_spill] sm:$0xff] }
  0x9c   :  { %692 = vmatpush1.msra.mxu1 %v2322_v43  ;;  %622 = vmatprep.subr.mxu0 %v2329_v44  ;;  %v5993_v43 = vld [vmem:[#allocation27_spill] sm:$0xff]  ;;  %v5994_v44 = vld [vmem:[#allocation28_spill] sm:$0xff] }
  0x9d   :  { %693 = vmatprep.subr.mxu1 %v2334_v45  ;;  %623 = vmatpush1.msra.mxu0 %v2341_v46  ;;  %v5995_v45 = vld [vmem:[#allocation29_spill] sm:$0xff]  ;;  %v5996_v46 = vld [vmem:[#allocation30_spill] sm:$0xff] }
  0x9e   :  { %694 = vmatpush1.msra.mxu1 %v2346_v47  ;;  %624 = vmatprep.subr.mxu0 %v2353_v48  ;;  %v5997_v47 = vld [vmem:[#allocation31_spill] sm:$0xff]  ;;  %v5998_v48 = vld [vmem:[#allocation32_spill] sm:$0xff] }
  0x9f   :  { %695 = vmatprep.subr.mxu1 %v2358_v49  ;;  %625 = vmatpush1.msra.mxu0 %v2365_v50  ;;  %v5999_v49 = vld [vmem:[#allocation33_spill] sm:$0xff]  ;;  %v6000_v50 = vld [vmem:[#allocation34_spill] sm:$0xff] }
  0xa0   :  { %696 = vmatpush1.msra.mxu1 %v2370_v51  ;;  %626 = vmatprep.subr.mxu0 %v2377_v52  ;;  %v6001_v51 = vld [vmem:[#allocation35_spill] sm:$0xff]  ;;  %v6002_v52 = vld [vmem:[#allocation36_spill] sm:$0xff] }
  0xa1   :  { %697 = vmatprep.subr.mxu1 %v2382_v53  ;;  %627 = vmatpush1.msra.mxu0 %v2389_v54  ;;  %v6003_v53 = vld [vmem:[#allocation37_spill] sm:$0xff]  ;;  %v6004_v54 = vld [vmem:[#allocation38_spill] sm:$0xff] }
  0xa2   :  { %698 = vmatpush1.msra.mxu1 %v2394_v55  ;;  %628 = vmatprep.subr.mxu0 %v2401_v56  ;;  %v6005_v55 = vld [vmem:[#allocation39_spill] sm:$0xff]  ;;  %v6006_v56 = vld [vmem:[#allocation40_spill] sm:$0xff] }
  0xa3   :  { %699 = vmatprep.subr.mxu1 %v2406_v57  ;;  %629 = vmatpush1.msra.mxu0 %v2413_v58  ;;  %v6007_v57 = vld [vmem:[#allocation41_spill] sm:$0xff]  ;;  %v6008_v58 = vld [vmem:[#allocation42_spill] sm:$0xff] }
  0xa4   :  { %700 = vmatpush1.msra.mxu1 %v2418_v59  ;;  %630 = vmatprep.subr.mxu0 %v2425_v60  ;;  %v6009_v59 = vld [vmem:[#allocation43_spill] sm:$0xff]  ;;  %v6010_v60 = vld [vmem:[#allocation44_spill] sm:$0xff] }
  0xa5   :  { %701 = vmatprep.subr.mxu1 %v2430_v61  ;;  %631 = vmatpush1.msra.mxu0 %v2437_v62  ;;  %v6011_v61 = vld [vmem:[#allocation45_spill] sm:$0xff]  ;;  %v6012_v62 = vld [vmem:[#allocation46_spill] sm:$0xff] }
  0xa6   :  { %702 = vmatpush1.msra.mxu1 %v2442_v63  ;;  %632 = vmatprep.subr.mxu0 %v2449_v0  ;;  %v6013_v63 = vld [vmem:[#allocation47_spill] sm:$0xff]  ;;  %v6014_v0 = vld [vmem:[#allocation48_spill] sm:$0xff] }
  0xa7   :  { %703 = vmatprep.subr.mxu1 %v2454_v1  ;;  %633 = vmatpush2.msra.mxu0 %v2461_v2  ;;  %v6015_v1 = vld [vmem:[#allocation49_spill] sm:$0xff]  ;;  %v6016_v2 = vld [vmem:[#allocation50_spill] sm:$0xff] }
  0xa8   :  { %704 = vmatpush2.msra.mxu1 %v2466_v3  ;;  %634 = vmatprep.subr.mxu0 %v2473_v4  ;;  %v6017_v3 = vld [vmem:[#allocation51_spill] sm:$0xff]  ;;  %v6018_v4 = vld [vmem:[#allocation52_spill] sm:$0xff] }
  0xa9   :  { %705 = vmatprep.subr.mxu1 %v2478_v5  ;;  %635 = vmatpush2.msra.mxu0 %v5968_v18  ;;  %v6019_v5 = vld [vmem:[#allocation53_spill] sm:$0xff] }
  0xaa   :  { %706 = vmatpush2.msra.mxu1 %v5969_v19  ;;  %636 = vmatprep.subr.mxu0 %v5970_v20  ;;  %v3805_v18 = vld [vmem:[%s5602_s1 + $0x18] sm:$0xff]  ;;  %v6024_v19 = vld [vmem:[#allocation58_spill] sm:$0xff]  ;;  %v3812_v20 = vld [vmem:[%s5602_s1 + $0x10] sm:$0xff] }
  0xab   :  { %707 = vmatprep.subr.mxu1 %v5971_v21  ;;  %637 = vmatpush2.msra.mxu0 %v5972_v22  ;;  %v6025_v21 = vld [vmem:[#allocation59_spill] sm:$0xff]  ;;  %v6026_v22 = vld [vmem:[#allocation60_spill] sm:$0xff] }
  0xac   :  { %708 = vmatpush2.msra.mxu1 %v5973_v23  ;;  %638 = vmatprep.subr.mxu0 %v5974_v24  ;;  %v6027_v23 = vld [vmem:[#allocation61_spill] sm:$0xff]  ;;  %v6028_v24 = vld [vmem:[#allocation62_spill] sm:$0xff] }
  0xad   :  { %709 = vmatprep.subr.mxu1 %v5975_v25  ;;  %639 = vmatpush2.msra.mxu0 %v5976_v26  ;;  %v6029_v25 = vld [vmem:[#allocation63_spill] sm:$0xff]  ;;  %v6030_v26 = vld [vmem:[#allocation64_spill] sm:$0xff] }
  0xae   :  { %710 = vmatpush2.msra.mxu1 %v5977_v27  ;;  %640 = vmatprep.subr.mxu0 %v5978_v28  ;;  %v6031_v27 = vld [vmem:[#allocation65_spill] sm:$0xff]  ;;  %v6032_v28 = vld [vmem:[#allocation66_spill] sm:$0xff] }
  0xaf   :  { %711 = vmatprep.subr.mxu1 %v5979_v29  ;;  %641 = vmatpush2.msra.mxu0 %v5980_v30  ;;  %v6033_v29 = vld [vmem:[#allocation67_spill] sm:$0xff]  ;;  %v6034_v30 = vld [vmem:[#allocation68_spill] sm:$0xff] }
  0xb0   :  { %712 = vmatpush2.msra.mxu1 %v5981_v31  ;;  %642 = vmatprep.subr.mxu0 %v5982_v32  ;;  %v6035_v31 = vld [vmem:[#allocation69_spill] sm:$0xff]  ;;  %v6036_v32 = vld [vmem:[#allocation70_spill] sm:$0xff] }
  0xb1   :  { %713 = vmatprep.subr.mxu1 %v5983_v33  ;;  %643 = vmatpush2.msra.mxu0 %v5984_v34  ;;  %v6037_v33 = vld [vmem:[#allocation71_spill] sm:$0xff]  ;;  %v6038_v34 = vld [vmem:[#allocation72_spill] sm:$0xff] }
  0xb2   :  { %714 = vmatpush2.msra.mxu1 %v5985_v35  ;;  %644 = vmatprep.subr.mxu0 %v5986_v36  ;;  %v6039_v35 = vld [vmem:[#allocation73_spill] sm:$0xff]  ;;  %v6040_v36 = vld [vmem:[#allocation74_spill] sm:$0xff] }
  0xb3   :  { %715 = vmatprep.subr.mxu1 %v5987_v37  ;;  %645 = vmatpush2.msra.mxu0 %v5988_v38  ;;  %v6041_v37 = vld [vmem:[#allocation75_spill] sm:$0xff]  ;;  %v6042_v38 = vld [vmem:[#allocation76_spill] sm:$0xff] }
  0xb4   :  { %716 = vmatpush2.msra.mxu1 %v5989_v39  ;;  %646 = vmatprep.subr.mxu0 %v5990_v40  ;;  %v6043_v39 = vld [vmem:[#allocation77_spill] sm:$0xff]  ;;  %v6044_v40 = vld [vmem:[#allocation78_spill] sm:$0xff] }
  0xb5   :  { %717 = vmatprep.subr.mxu1 %v5991_v41  ;;  %647 = vmatpush2.msra.mxu0 %v5992_v42  ;;  %v6045_v41 = vld [vmem:[#allocation79_spill] sm:$0xff]  ;;  %v6046_v42 = vld [vmem:[#allocation80_spill] sm:$0xff] }
  0xb6   :  { %718 = vmatpush2.msra.mxu1 %v5993_v43  ;;  %648 = vmatprep.subr.mxu0 %v5994_v44  ;;  %v6047_v43 = vld [vmem:[#allocation81_spill] sm:$0xff]  ;;  %v6048_v44 = vld [vmem:[#allocation82_spill] sm:$0xff] }
  0xb7   :  { %719 = vmatprep.subr.mxu1 %v5995_v45  ;;  %649 = vmatpush2.msra.mxu0 %v5996_v46  ;;  %v6049_v45 = vld [vmem:[#allocation83_spill] sm:$0xff]  ;;  %v6050_v46 = vld [vmem:[#allocation84_spill] sm:$0xff] }
  0xb8   :  { %720 = vmatpush2.msra.mxu1 %v5997_v47  ;;  %650 = vmatprep.subr.mxu0 %v5998_v48  ;;  %v6051_v47 = vld [vmem:[#allocation85_spill] sm:$0xff]  ;;  %v6052_v48 = vld [vmem:[#allocation86_spill] sm:$0xff] }
  0xb9   :  { %721 = vmatprep.subr.mxu1 %v5999_v49  ;;  %651 = vmatpush2.msra.mxu0 %v6000_v50  ;;  %v6053_v49 = vld [vmem:[#allocation87_spill] sm:$0xff]  ;;  %v6054_v50 = vld [vmem:[#allocation88_spill] sm:$0xff] }
  0xba   :  { %722 = vmatpush2.msra.mxu1 %v6001_v51  ;;  %652 = vmatprep.subr.mxu0 %v6002_v52  ;;  %v6055_v51 = vld [vmem:[#allocation89_spill] sm:$0xff]  ;;  %v6056_v52 = vld [vmem:[#allocation90_spill] sm:$0xff] }
  0xbb   :  { %723 = vmatprep.subr.mxu1 %v6003_v53  ;;  %653 = vmatpush2.msra.mxu0 %v6004_v54  ;;  %v6057_v53 = vld [vmem:[#allocation91_spill] sm:$0xff]  ;;  %v6058_v54 = vld [vmem:[#allocation92_spill] sm:$0xff] }
  0xbc   :  { %724 = vmatpush2.msra.mxu1 %v6005_v55  ;;  %654 = vmatprep.subr.mxu0 %v6006_v56  ;;  %v6059_v55 = vld [vmem:[#allocation93_spill] sm:$0xff]  ;;  %v6060_v56 = vld [vmem:[#allocation94_spill] sm:$0xff] }
  0xbd   :  { %725 = vmatprep.subr.mxu1 %v6007_v57  ;;  %655 = vmatpush2.msra.mxu0 %v6008_v58  ;;  %v6061_v57 = vld [vmem:[#allocation95_spill] sm:$0xff]  ;;  %v6062_v58 = vld [vmem:[#allocation96_spill] sm:$0xff] }
  0xbe   :  { %726 = vmatpush2.msra.mxu1 %v6009_v59  ;;  %656 = vmatprep.subr.mxu0 %v6010_v60  ;;  %v6063_v59 = vld [vmem:[#allocation97_spill] sm:$0xff]  ;;  %v6064_v60 = vld [vmem:[#allocation98_spill] sm:$0xff] }
  0xbf   :  { %727 = vmatprep.subr.mxu1 %v6011_v61  ;;  %657 = vmatpush2.msra.mxu0 %v6012_v62  ;;  %v6065_v61 = vld [vmem:[#allocation99_spill] sm:$0xff]  ;;  %v6066_v62 = vld [vmem:[#allocation100_spill] sm:$0xff] }
  0xc0   :  { %728 = vmatpush2.msra.mxu1 %v6013_v63  ;;  %658 = vmatprep.subr.mxu0 %v6014_v0  ;;  %v6067_v63 = vld [vmem:[#allocation101_spill] sm:$0xff]  ;;  %v6068_v0 = vld [vmem:[#allocation102_spill] sm:$0xff] }
  0xc1   :  { %729 = vmatprep.subr.mxu1 %v6015_v1  ;;  %659 = vmatpush2.msra.mxu0 %v6016_v2  ;;  %v6069_v1 = vld [vmem:[#allocation103_spill] sm:$0xff]  ;;  %v6070_v2 = vld [vmem:[#allocation104_spill] sm:$0xff] }
  0xc2   :  { %730 = vmatpush2.msra.mxu1 %v6017_v3  ;;  %660 = vmatprep.subr.mxu0 %v6018_v4  ;;  %v6071_v3 = vld [vmem:[#allocation105_spill] sm:$0xff]  ;;  %v6072_v4 = vld [vmem:[#allocation106_spill] sm:$0xff] }
  0xc3   :  { %731 = vmatprep.subr.mxu1 %v6019_v5  ;;  %661 = vmatpush2.msra.mxu0 %v6020_v17  ;;  %v6073_v5 = vld [vmem:[#allocation107_spill] sm:$0xff]  ;;  %v6074_v17 = vld [vmem:[#allocation108_spill] sm:$0xff] }
  0xc4   :  { %732 = vmatpush2.msra.mxu1 %v6021_v15  ;;  %662 = vmatprep.subr.mxu0 %v6022_v9  ;;  %v6075_v15 = vld [vmem:[#allocation109_spill] sm:$0xff]  ;;  %v6076_v9 = vld [vmem:[#allocation110_spill] sm:$0xff] }
  0xc5   :  { %733 = vmatprep.subr.mxu1 %v6023_v16  ;;  %663 = vmatpush2.msra.mxu0 %v6024_v19  ;;  %v6077_v16 = vld [vmem:[#allocation111_spill] sm:$0xff]  ;;  %v6078_v19 = vld [vmem:[#allocation112_spill] sm:$0xff] }
  0xc6   :  { %664 = vmatprep.mubr.f32.mxu0 %v3791_v13  ;;  %734 = vmatpush2.msra.mxu1 %v6025_v21  ;;  %v6079_v21 = vld [vmem:[#allocation113_spill] sm:$0xff] }
  0xc7   :  { %665 = vmatmul.mubr.f32.vlgmr.msra.gmra.mxu0 %v3798_v10  ;;  %735 = vmatprep.mubr.f32.mxu1 %v3805_v18 }
  0xc8   :  { %742 = vmatprep.subr.mxu0 %v6026_v22  ;;  %813 = vmatprep.subr.mxu1 %v6027_v23  ;;  %v6080_v22 = vld [vmem:[#allocation114_spill] sm:$0xff]  ;;  %v6081_v23 = vld [vmem:[#allocation115_spill] sm:$0xff] }
  0xc9   :  { %736 = vmatmul.mubr.f32.vlgmr.msra.gmra.mxu1 %v3812_v20  ;;  %743 = vmatpush1.msra.mxu0 %v6028_v24  ;;  %v6082_v24 = vld [vmem:[#allocation116_spill] sm:$0xff] }
  0xca   :  { %814 = vmatpush1.msra.mxu1 %v6029_v25  ;;  %744 = vmatprep.subr.mxu0 %v6030_v26  ;;  %v6083_v25 = vld [vmem:[#allocation117_spill] sm:$0xff]  ;;  %v6084_v26 = vld [vmem:[#allocation118_spill] sm:$0xff] }
  0xcb   :  { %815 = vmatprep.subr.mxu1 %v6031_v27  ;;  %745 = vmatpush1.msra.mxu0 %v6032_v28  ;;  %v6085_v27 = vld [vmem:[#allocation119_spill] sm:$0xff]  ;;  %v6086_v28 = vld [vmem:[#allocation120_spill] sm:$0xff] }
  0xcc   :  { %816 = vmatpush1.msra.mxu1 %v6033_v29  ;;  %746 = vmatprep.subr.mxu0 %v6034_v30  ;;  %v6087_v29 = vld [vmem:[#allocation121_spill] sm:$0xff]  ;;  %v6088_v30 = vld [vmem:[#allocation122_spill] sm:$0xff] }
  0xcd   :  { %817 = vmatprep.subr.mxu1 %v6035_v31  ;;  %747 = vmatpush1.msra.mxu0 %v6036_v32  ;;  %v6089_v31 = vld [vmem:[#allocation123_spill] sm:$0xff]  ;;  %v6090_v32 = vld [vmem:[#allocation124_spill] sm:$0xff] }
  0xce   :  { %818 = vmatpush1.msra.mxu1 %v6037_v33  ;;  %748 = vmatprep.subr.mxu0 %v6038_v34  ;;  %v6091_v33 = vld [vmem:[#allocation125_spill] sm:$0xff]  ;;  %v6092_v34 = vld [vmem:[#allocation126_spill] sm:$0xff] }
  0xcf   :  { %819 = vmatprep.subr.mxu1 %v6039_v35  ;;  %749 = vmatpush1.msra.mxu0 %v6040_v36  ;;  %v6093_v35 = vld [vmem:[#allocation127_spill] sm:$0xff]  ;;  %v6094_v36 = vld [vmem:[#allocation128_spill] sm:$0xff] }
  0xd0   :  { %820 = vmatpush1.msra.mxu1 %v6041_v37  ;;  %750 = vmatprep.subr.mxu0 %v6042_v38  ;;  %v6095_v37 = vld [vmem:[#allocation129_spill] sm:$0xff]  ;;  %v6096_v38 = vld [vmem:[#allocation130_spill] sm:$0xff] }
  0xd1   :  { %821 = vmatprep.subr.mxu1 %v6043_v39  ;;  %751 = vmatpush1.msra.mxu0 %v6044_v40  ;;  %v6097_v39 = vld [vmem:[#allocation131_spill] sm:$0xff]  ;;  %v6098_v40 = vld [vmem:[#allocation132_spill] sm:$0xff] }
  0xd2   :  { %822 = vmatpush1.msra.mxu1 %v6045_v41  ;;  %752 = vmatprep.subr.mxu0 %v6046_v42  ;;  %v6099_v41 = vld [vmem:[#allocation133_spill] sm:$0xff]  ;;  %v6100_v42 = vld [vmem:[#allocation134_spill] sm:$0xff] }
  0xd3   :  { %823 = vmatprep.subr.mxu1 %v6047_v43  ;;  %753 = vmatpush1.msra.mxu0 %v6048_v44  ;;  %v6101_v43 = vld [vmem:[#allocation135_spill] sm:$0xff]  ;;  %v6102_v44 = vld [vmem:[#allocation136_spill] sm:$0xff] }
  0xd4   :  { %824 = vmatpush1.msra.mxu1 %v6049_v45  ;;  %754 = vmatprep.subr.mxu0 %v6050_v46  ;;  %v6103_v45 = vld [vmem:[#allocation137_spill] sm:$0xff]  ;;  %v6104_v46 = vld [vmem:[#allocation138_spill] sm:$0xff] }
  0xd5   :  { %825 = vmatprep.subr.mxu1 %v6051_v47  ;;  %755 = vmatpush1.msra.mxu0 %v6052_v48  ;;  %v6105_v47 = vld [vmem:[#allocation139_spill] sm:$0xff]  ;;  %v6106_v48 = vld [vmem:[#allocation140_spill] sm:$0xff] }
  0xd6   :  { %826 = vmatpush1.msra.mxu1 %v6053_v49  ;;  %756 = vmatprep.subr.mxu0 %v6054_v50  ;;  %v6107_v49 = vld [vmem:[#allocation141_spill] sm:$0xff]  ;;  %v6108_v50 = vld [vmem:[#allocation142_spill] sm:$0xff] }
  0xd7   :  { %827 = vmatprep.subr.mxu1 %v6055_v51  ;;  %757 = vmatpush1.msra.mxu0 %v6056_v52  ;;  %v6109_v51 = vld [vmem:[#allocation143_spill] sm:$0xff]  ;;  %v6110_v52 = vld [vmem:[#allocation144_spill] sm:$0xff] }
  0xd8   :  { %828 = vmatpush1.msra.mxu1 %v6057_v53  ;;  %758 = vmatprep.subr.mxu0 %v6058_v54  ;;  %v6111_v53 = vld [vmem:[#allocation145_spill] sm:$0xff]  ;;  %v6112_v54 = vld [vmem:[#allocation146_spill] sm:$0xff] }
  0xd9   :  { %829 = vmatprep.subr.mxu1 %v6059_v55  ;;  %759 = vmatpush1.msra.mxu0 %v6060_v56  ;;  %v6113_v55 = vld [vmem:[#allocation147_spill] sm:$0xff]  ;;  %v288_v56 = vlaneseq }
  0xda   :  { %830 = vmatpush1.msra.mxu1 %v6061_v57  ;;  %760 = vmatprep.subr.mxu0 %v6062_v58  ;;  %v6114_v57 = vld [vmem:[#allocation148_spill] sm:$0xff]  ;;  %v6115_v58 = vld [vmem:[#allocation149_spill] sm:$0xff] }
  0xdb   :  { %831 = vmatprep.subr.mxu1 %v6063_v59  ;;  %761 = vmatpush1.msra.mxu0 %v6064_v60  ;;  %v6116_v59 = vld [vmem:[#allocation150_spill] sm:$0xff]  ;;  %v6117_v60 = vld [vmem:[#allocation151_spill] sm:$0xff] }
  0xdc   :  { %832 = vmatpush1.msra.mxu1 %v6065_v61  ;;  %762 = vmatprep.subr.mxu0 %v6066_v62  ;;  %v6118_v61 = vld [vmem:[#allocation152_spill] sm:$0xff]  ;;  %v6119_v62 = vld [vmem:[#allocation153_spill] sm:$0xff] }
  0xdd   :  { %833 = vmatprep.subr.mxu1 %v6067_v63  ;;  %763 = vmatpush1.msra.mxu0 %v6068_v0  ;;  %v6120_v63 = vld [vmem:[#allocation154_spill] sm:$0xff]  ;;  %v6121_v0 = vld [vmem:[#allocation155_spill] sm:$0xff] }
  0xde   :  { %834 = vmatpush1.msra.mxu1 %v6069_v1  ;;  %764 = vmatprep.subr.mxu0 %v6070_v2  ;;  %v3914_v1 = vshrl.u32 %v288_v56, 7  ;;  %v6122_v2 = vld [vmem:[#allocation156_spill] sm:$0xff]  ;;  %v1328_v56 = vld [vmem:[%s5604_s5 + $0x5c0] sm:$0xff] }
  0xdf   :  { %835 = vmatprep.subr.mxu1 %v6071_v3  ;;  %765 = vmatpush1.msra.mxu0 %v6072_v4  ;;  %v6123_v3 = vld [vmem:[#allocation157_spill] sm:$0xff]  ;;  %v6124_v4 = vld [vmem:[#allocation158_spill] sm:$0xff] }
  0xe0   :  { %836 = vmatpush1.msra.mxu1 %v6073_v5  ;;  %766 = vmatprep.subr.mxu0 %v6074_v17  ;;  %v6125_v5 = vld [vmem:[#allocation159_spill] sm:$0xff]  ;;  %v6126_v17 = vld [vmem:[#allocation160_spill] sm:$0xff] }
  0xe1   :  { %837 = vmatprep.subr.mxu1 %v6075_v15  ;;  %767 = vmatpush1.msra.mxu0 %v6076_v9  ;;  %v6127_v15 = vld [vmem:[#allocation161_spill] sm:$0xff]  ;;  %v6128_v9 = vld [vmem:[#allocation162_spill] sm:$0xff] }
  0xe2   :  { %838 = vmatpush1.msra.mxu1 %v6077_v16  ;;  %768 = vmatprep.subr.mxu0 %v6078_v19  ;;  %v6129_v16 = vld [vmem:[#allocation163_spill] sm:$0xff]  ;;  %v290_v19 = vsub.s32 0, %v3914_v1 }
  0xe3   :  { %839 = vmatprep.subr.mxu1 %v6079_v21  ;;  %769 = vmatpush1.msra.mxu0 %v6080_v22  ;;  %v6130_v21 = vld [vmem:[#allocation164_spill] sm:$0xff]  ;;  %v6131_v22 = vld [vmem:[#allocation165_spill] sm:$0xff] }
  0xe4   :  { %840 = vmatpush1.msra.mxu1 %v6081_v23  ;;  %770 = vmatprep.subr.mxu0 %v6082_v24  ;;  %v3930_v23 = vld [vmem:[%s5603_s3] sm:$0xf] }
  0xe5   :  { %841 = vmatprep.subr.mxu1 %v6083_v25  ;;  %771 = vmatpush1.msra.mxu0 %v6084_v26  ;;  %v6132_v24 = vld [vmem:[#allocation166_spill] sm:$0xff]  ;;  %v6133_v25 = vld [vmem:[#allocation167_spill] sm:$0xff]  ;;  %v294_v26 = vsub.s32 1, %v3914_v1 }
  0xe6   :  { %842 = vmatpush1.msra.mxu1 %v6085_v27  ;;  %772 = vmatprep.subr.mxu0 %v6086_v28  ;;  %v6134_v27 = vld [vmem:[#allocation168_spill] sm:$0xff]  ;;  %v6135_v28 = vld [vmem:[#allocation169_spill] sm:$0xff] }
  0xe7   :  { %843 = vmatprep.subr.mxu1 %v6087_v29  ;;  %773 = vmatpush1.msra.mxu0 %v6088_v30  ;;  %v6136_v29 = vld [vmem:[#allocation170_spill] sm:$0xff]  ;;  %v6137_v30 = vld [vmem:[#allocation171_spill] sm:$0xff] }
  0xe8   :  { %844 = vmatpush1.msra.mxu1 %v6089_v31  ;;  %774 = vmatprep.subr.mxu0 %v6090_v32  ;;  %v3942_v31 = vrot.slane %v3930_v23, %v290_v19  ;;  %v6138_v32 = vld [vmem:[#allocation172_spill] sm:$0xff] }
  0xe9   :  { %845 = vmatprep.subr.mxu1 %v6091_v33  ;;  %775 = vmatpush2.msra.mxu0 %v6092_v34  ;;  %v6139_v33 = vld [vmem:[#allocation173_spill] sm:$0xff]  ;;  %v6140_v34 = vld [vmem:[#allocation174_spill] sm:$0xff] }
  0xea   :  { %846 = vmatpush2.msra.mxu1 %v6093_v35  ;;  %776 = vmatprep.subr.mxu0 %v6094_v36  ;;  %v6141_v35 = vld [vmem:[#allocation175_spill] sm:$0xff]  ;;  %v3951_v36 = vrot.slane %v3930_v23, %v294_v26 }
  0xeb   :  { %847 = vmatprep.subr.mxu1 %v6095_v37  ;;  %777 = vmatpush2.msra.mxu0 %v6096_v38  ;;  %v6142_v37 = vld [vmem:[#allocation176_spill] sm:$0xff]  ;;  %v6143_v38 = vld [vmem:[#allocation177_spill] sm:$0xff] }
  0xec   :  { %848 = vmatpush2.msra.mxu1 %v6097_v39  ;;  %778 = vmatprep.subr.mxu0 %v6098_v40  ;;  %v6144_v40 = vld [vmem:[#allocation178_spill] sm:$0xff] }
  0xed   :  { %849 = vmatprep.subr.mxu1 %v6099_v41  ;;  %779 = vmatpush2.msra.mxu0 %v6100_v42  ;;  %v6145_v41 = vld [vmem:[#allocation179_spill] sm:$0xff] }
  0xee   :  { %850 = vmatpush2.msra.mxu1 %v6101_v43  ;;  %780 = vmatprep.subr.mxu0 %v6102_v44 }
  0xef   :  { %851 = vmatprep.subr.mxu1 %v6103_v45  ;;  %781 = vmatpush2.msra.mxu0 %v6104_v46  ;;  %v6146_v45 = vld [vmem:[#allocation180_spill] sm:$0xff] }
  0xf0   :  { %852 = vmatpush2.msra.mxu1 %v6105_v47  ;;  %782 = vmatprep.subr.mxu0 %v6106_v48  ;;  %v6147_v48 = vld [vmem:[#allocation181_spill] sm:$0xff] }
  0xf1   :  { %853 = vmatprep.subr.mxu1 %v6107_v49  ;;  %783 = vmatpush2.msra.mxu0 %v6108_v50  ;;  %v1333_v50 = vld [vmem:[%s5604_s5 + $0x5e8] sm:$0xff] }
  0xf2   :  { %854 = vmatpush2.msra.mxu1 %v6109_v51  ;;  %784 = vmatprep.subr.mxu0 %v6110_v52  ;;  %v1188_v51 = vld [vmem:[%s5604_s5 + $0x160] sm:$0xff] }
  0xf3   :  { %855 = vmatprep.subr.mxu1 %v6111_v53  ;;  %785 = vmatpush2.msra.mxu0 %v6112_v54  ;;  %v1332_v52 = vld [vmem:[%s5604_s5 + $0x5e0] sm:$0xff]  ;;  %v1185_v53 = vld [vmem:[%s5604_s5 + $0x148] sm:$0xff] }
  0xf4   :  { %856 = vmatpush2.msra.mxu1 %v6113_v55  ;;  %786 = vmatprep.subr.mxu0 %v6114_v57  ;;  %v1329_v54 = vld [vmem:[%s5604_s5 + $0x5c8] sm:$0xff]  ;;  %v1184_v55 = vld [vmem:[%s5604_s5 + $0x140] sm:$0xff] }
  0xf5   :  { %857 = vmatprep.subr.mxu1 %v6115_v58  ;;  %787 = vmatpush2.msra.mxu0 %v6116_v59  ;;  %v1181_v57 = vld [vmem:[%s5604_s5 + $0x128] sm:$0xff]  ;;  %v1180_v59 = vld [vmem:[%s5604_s5 + $0x120] sm:$0xff] }
  0xf6   :  { %858 = vmatpush2.msra.mxu1 %v6117_v60  ;;  %788 = vmatprep.subr.mxu0 %v6118_v61  ;;  %v1325_v58 = vld [vmem:[%s5604_s5 + $0x5a8] sm:$0xff]  ;;  %v1324_v60 = vld [vmem:[%s5604_s5 + $0x5a0] sm:$0xff] }
  0xf7   :  { %859 = vmatprep.subr.mxu1 %v6119_v62  ;;  %789 = vmatpush2.msra.mxu0 %v6120_v63  ;;  %v1177_v61 = vld [vmem:[%s5604_s5 + $0x108] sm:$0xff]  ;;  %v1176_v63 = vld [vmem:[%s5604_s5 + $0x100] sm:$0xff] }
  0xf8   :  { %860 = vmatpush2.msra.mxu1 %v6121_v0  ;;  %790 = vmatprep.subr.mxu0 %v6122_v2  ;;  %v1321_v62 = vld [vmem:[%s5604_s5 + $0x588] sm:$0xff]  ;;  %v1320_v0 = vld [vmem:[%s5604_s5 + $0x580] sm:$0xff] }
  0xf9   :  { %861 = vmatprep.subr.mxu1 %v6123_v3  ;;  %791 = vmatpush2.msra.mxu0 %v6124_v4  ;;  %v1173_v2 = vld [vmem:[%s5604_s5 + $0xe8] sm:$0xff]  ;;  %v1172_v4 = vld [vmem:[%s5604_s5 + $0xe0] sm:$0xff] }
  0xfa   :  { %862 = vmatpush2.msra.mxu1 %v6125_v5  ;;  %792 = vmatprep.subr.mxu0 %v6126_v17  ;;  %v1317_v3 = vld [vmem:[%s5604_s5 + $0x568] sm:$0xff]  ;;  %v1316_v5 = vld [vmem:[%s5604_s5 + $0x560] sm:$0xff] }
  0xfb   :  { %863 = vmatprep.subr.mxu1 %v6127_v15  ;;  %793 = vmatpush2.msra.mxu0 %v6128_v9  ;;  %v1169_v17 = vld [vmem:[%s5604_s5 + $0xc8] sm:$0xff]  ;;  %v1168_v9 = vld [vmem:[%s5604_s5 + $0xc0] sm:$0xff] }
  0xfc   :  { %864 = vmatpush2.msra.mxu1 %v6129_v16  ;;  %794 = vmatprep.subr.mxu0 %v6130_v21  ;;  %v1313_v15 = vld [vmem:[%s5604_s5 + $0x548] sm:$0xff]  ;;  %v1312_v16 = vld [vmem:[%s5604_s5 + $0x540] sm:$0xff] }
  0xfd   :  { %865 = vmatprep.subr.mxu1 %v6131_v22  ;;  %795 = vmatpush2.msra.mxu0 %v6132_v24  ;;  %v1165_v21 = vld [vmem:[%s5604_s5 + $0xa8] sm:$0xff]  ;;  %v1164_v24 = vld [vmem:[%s5604_s5 + $0xa0] sm:$0xff] }
  0xfe   :  { %866 = vmatpush2.msra.mxu1 %v6133_v25  ;;  %796 = vmatprep.subr.mxu0 %v6134_v27  ;;  %v1309_v22 = vld [vmem:[%s5604_s5 + $0x528] sm:$0xff]  ;;  %v1308_v25 = vld [vmem:[%s5604_s5 + $0x520] sm:$0xff] }
  0xff   :  { %867 = vmatprep.subr.mxu1 %v6135_v28  ;;  %797 = vmatpush2.msra.mxu0 %v6136_v29  ;;  %v1161_v27 = vld [vmem:[%s5604_s5 + $0x88] sm:$0xff]  ;;  %v1160_v29 = vld [vmem:[%s5604_s5 + $0x80] sm:$0xff] }
 0x100   :  { %868 = vmatpush2.msra.mxu1 %v6137_v30  ;;  %798 = vmatprep.subr.mxu0 %v6138_v32  ;;  %v1305_v28 = vld [vmem:[%s5604_s5 + $0x508] sm:$0xff]  ;;  %v1304_v30 = vld [vmem:[%s5604_s5 + $0x500] sm:$0xff] }
 0x101   :  { %869 = vmatprep.subr.mxu1 %v6139_v33  ;;  %799 = vmatpush2.msra.mxu0 %v6140_v34  ;;  %v1157_v32 = vld [vmem:[%s5604_s5 + $0x68] sm:$0xff]  ;;  %v1156_v34 = vld [vmem:[%s5604_s5 + $0x60] sm:$0xff] }
 0x102   :  { %870 = vmatpush2.msra.mxu1 %v6141_v35  ;;  %800 = vmatprep.subr.mxu0 %v6142_v37  ;;  %v1301_v33 = vld [vmem:[%s5604_s5 + $0x4e8] sm:$0xff]  ;;  %v1300_v35 = vld [vmem:[%s5604_s5 + $0x4e0] sm:$0xff] }
 0x103   :  { %871 = vmatprep.subr.mxu1 %v6143_v38  ;;  %v374_v39 = vpop.f32.mrf.mxu0  ;;  %801 = vmatpush2.msra.mxu0 %v6144_v40  ;;  %v1153_v37 = vld [vmem:[%s5604_s5 + $0x48] sm:$0xff]  ;;  %v1296_v40 = vld [vmem:[%s5604_s5 + $0x4c0] sm:$0xff] }
 0x104   :  { %872 = vmatpush2.msra.mxu1 %v6145_v41  ;;  %v375_v42 = vadd.f32 %v374_v39, %v3942_v31  ;;  %802 = vmatprep.subr.mxu0 %v3577_v12  ;;  %v445_v43 = vpop.f32.mrf.mxu1  ;;  %v1205_v12 = vld [vmem:[%s5604_s5 + $0x1e8] sm:$0xff]  ;;  %v1152_v39 = vld [vmem:[%s5604_s5 + $0x40] sm:$0xff] }
 0x105   :  { %873 = vmatprep.subr.mxu1 %v3582_v6  ;;  %v376_v44 = vpop.f32.mrf.mxu0  ;;  %803 = vmatpush2.msra.mxu0 %v3589_v14  ;;  %v1204_v14 = vld [vmem:[%s5604_s5 + $0x1e0] sm:$0xff]  ;;  %v1297_v38 = vld [vmem:[%s5604_s5 + $0x4c8] sm:$0xff] }
 0x106   :  { %874 = vmatpush2.msra.mxu1 %v6146_v45  ;;  %v3962_v46 = vadd.f32 %v445_v43, %v375_v42  ;;  %v377_v47 = vadd.f32 %v376_v44, %v3951_v36  ;;  %804 = vmatprep.subr.mxu0 %v6147_v48  ;;  %v447_v49 = vpop.f32.mrf.mxu1  ;;  %v1149_v41 = vld [vmem:[%s5604_s5 + $0x28] sm:$0xff]  ;;  %v1148_v43 = vld [vmem:[%s5604_s5 + $0x20] sm:$0xff] }
 0x107   :  { %875 = vmatprep.subr.mxu1 %v3606_v8  ;;  %805 = vmatpush2.msra.mxu0 %v3613_v7  ;;  %v1201_v7 = vld [vmem:[%s5604_s5 + $0x1c8] sm:$0xff]  ;;  %v1200_v8 = vld [vmem:[%s5604_s5 + $0x1c0] sm:$0xff] }
 0x108   :  { %806 = vmatprep.mubr.f32.mxu0 %v3791_v13  ;;  %v3969_v6 = vadd.f32 %v447_v49, %v377_v47  ;;  %876 = vmatpush2.msra.mxu1 %v3620_v11  ;;  %v1197_v11 = vld [vmem:[%s5604_s5 + $0x1a8] sm:$0xff]  ;;  %v1196_v13 = vld [vmem:[%s5604_s5 + $0x1a0] sm:$0xff] }
 0x109   :  { %877 = vmatprep.mubr.f32.mxu1 %v3805_v18  ;;  %807 = vmatmul.mubr.f32.vlgmr.msra.gmra.mxu0 %v3798_v10  ;;  %v1193_v10 = vld [vmem:[%s5604_s5 + $0x188] sm:$0xff]  ;;  %v1192_v18 = vld [vmem:[%s5604_s5 + $0x180] sm:$0xff] }
 0x10a   :  { %878 = vmatmul.mubr.f32.vlgmr.msra.gmra.mxu1 %v3812_v20  ;;  %1400 = vmatprep.subr.mxu0 %v1205_v12  ;;  %v1189_v20 = vld [vmem:[%s5604_s5 + $0x168] sm:$0xff]  ;;  %v1292_v44 = vld [vmem:[%s5604_s5 + $0x4a0] sm:$0xff] }
 0x10b   :  { %1401 = vmatpush1.msra.mxu0 %v1204_v14  ;;  %1471 = vmatprep.subr.mxu1 %v1333_v50  ;;  %v1293_v42 = vld [vmem:[%s5604_s5 + $0x4a8] sm:$0xff]  ;;  %v1144_v48 = vld [vmem:[%s5604_s5] sm:$0xff] }
 0x10c   :  { %1402 = vmatprep.subr.mxu0 %v1201_v7  ;;  %1472 = vmatpush1.msra.mxu1 %v1332_v52  ;;  %v1145_v45 = vld [vmem:[%s5604_s5 + $0x8] sm:$0xff]  ;;  %v1288_v49 = vld [vmem:[%s5604_s5 + $0x480] sm:$0xff] }
 0x10d   :  { %1403 = vmatpush1.msra.mxu0 %v1200_v8  ;;  %1473 = vmatprep.subr.mxu1 %v1329_v54  ;;  %v1289_v47 = vld [vmem:[%s5604_s5 + $0x488] sm:$0xff]  ;;  %v1268_v7 = vld [vmem:[%s5604_s5 + $0x3e0] sm:$0xff] }
 0x10e   :  { %1404 = vmatprep.subr.mxu0 %v1197_v11  ;;  %1474 = vmatpush1.msra.mxu1 %v1328_v56  ;;  %v1269_v12 = vld [vmem:[%s5604_s5 + $0x3e8] sm:$0xff]  ;;  %v1284_v8 = vld [vmem:[%s5604_s5 + $0x460] sm:$0xff] }
 0x10f   :  { %1405 = vmatpush1.msra.mxu0 %v1196_v13  ;;  %1475 = vmatprep.subr.mxu1 %v1325_v58  ;;  %v1285_v14 = vld [vmem:[%s5604_s5 + $0x468] sm:$0xff]  ;;  %v1276_v52 = vld [vmem:[%s5604_s5 + $0x420] sm:$0xff] }
 0x110   :  { %1406 = vmatprep.subr.mxu0 %v1193_v10  ;;  %1476 = vmatpush1.msra.mxu1 %v1324_v60  ;;  %v1265_v11 = vld [vmem:[%s5604_s5 + $0x3c8] sm:$0xff]  ;;  %v1264_v10 = vld [vmem:[%s5604_s5 + $0x3c0] sm:$0xff] }
 0x111   :  { %1407 = vmatpush1.msra.mxu0 %v1192_v18  ;;  %1477 = vmatprep.subr.mxu1 %v1321_v62  ;;  %v1281_v13 = vld [vmem:[%s5604_s5 + $0x448] sm:$0xff]  ;;  %v1280_v18 = vld [vmem:[%s5604_s5 + $0x440] sm:$0xff] }
 0x112   :  { %1408 = vmatprep.subr.mxu0 %v1189_v20  ;;  %1478 = vmatpush1.msra.mxu1 %v1320_v0  ;;  %v1261_v20 = vld [vmem:[%s5604_s5 + $0x3a8] sm:$0xff]  ;;  %v1272_v56 = vld [vmem:[%s5604_s5 + $0x400] sm:$0xff] }
 0x113   :  { %1409 = vmatpush1.msra.mxu0 %v1188_v51  ;;  %1479 = vmatprep.subr.mxu1 %v1317_v3  ;;  %v1277_v50 = vld [vmem:[%s5604_s5 + $0x428] sm:$0xff]  ;;  %v1260_v51 = vld [vmem:[%s5604_s5 + $0x3a0] sm:$0xff] }
 0x114   :  { %1410 = vmatprep.subr.mxu0 %v1185_v53  ;;  %1480 = vmatpush1.msra.mxu1 %v1316_v5  ;;  %v1257_v53 = vld [vmem:[%s5604_s5 + $0x388] sm:$0xff]  ;;  %v1396_v60 = vld [vmem:[%s5604_s5 + $0x7e0] sm:$0xff] }
 0x115   :  { %1411 = vmatpush1.msra.mxu0 %v1184_v55  ;;  %1481 = vmatprep.subr.mxu1 %v1313_v15  ;;  %v1273_v54 = vld [vmem:[%s5604_s5 + $0x408] sm:$0xff]  ;;  %v1256_v55 = vld [vmem:[%s5604_s5 + $0x380] sm:$0xff] }
 0x116   :  { %1412 = vmatprep.subr.mxu0 %v1181_v57  ;;  %1482 = vmatpush1.msra.mxu1 %v1312_v16  ;;  %v1253_v57 = vld [vmem:[%s5604_s5 + $0x368] sm:$0xff]  ;;  %v1392_v0 = vld [vmem:[%s5604_s5 + $0x7c0] sm:$0xff] }
 0x117   :  { %1413 = vmatpush1.msra.mxu0 %v1180_v59  ;;  %1483 = vmatprep.subr.mxu1 %v1309_v22  ;;  %v1397_v58 = vld [vmem:[%s5604_s5 + $0x7e8] sm:$0xff]  ;;  %v1252_v59 = vld [vmem:[%s5604_s5 + $0x360] sm:$0xff] }
 0x118   :  { %1414 = vmatprep.subr.mxu0 %v1177_v61  ;;  %1484 = vmatpush1.msra.mxu1 %v1308_v25  ;;  %v1249_v61 = vld [vmem:[%s5604_s5 + $0x348] sm:$0xff]  ;;  %v1388_v5 = vld [vmem:[%s5604_s5 + $0x7a0] sm:$0xff] }
 0x119   :  { %1415 = vmatpush1.msra.mxu0 %v1176_v63  ;;  %1485 = vmatprep.subr.mxu1 %v1305_v28  ;;  %v1393_v62 = vld [vmem:[%s5604_s5 + $0x7c8] sm:$0xff]  ;;  %v1248_v63 = vld [vmem:[%s5604_s5 + $0x340] sm:$0xff] }
 0x11a   :  { %1416 = vmatprep.subr.mxu0 %v1173_v2  ;;  %1486 = vmatpush1.msra.mxu1 %v1304_v30  ;;  %v1245_v2 = vld [vmem:[%s5604_s5 + $0x328] sm:$0xff]  ;;  %v1384_v16 = vld [vmem:[%s5604_s5 + $0x780] sm:$0xff] }
 0x11b   :  { %1417 = vmatpush1.msra.mxu0 %v1172_v4  ;;  %1487 = vmatprep.subr.mxu1 %v1301_v33  ;;  %v1389_v3 = vld [vmem:[%s5604_s5 + $0x7a8] sm:$0xff]  ;;  %v1244_v4 = vld [vmem:[%s5604_s5 + $0x320] sm:$0xff] }
 0x11c   :  { %1418 = vmatprep.subr.mxu0 %v1169_v17  ;;  %1488 = vmatpush1.msra.mxu1 %v1300_v35  ;;  %v1241_v17 = vld [vmem:[%s5604_s5 + $0x308] sm:$0xff]  ;;  %v1380_v25 = vld [vmem:[%s5604_s5 + $0x760] sm:$0xff] }
 0x11d   :  { %1419 = vmatpush1.msra.mxu0 %v1168_v9  ;;  %1489 = vmatprep.subr.mxu1 %v1297_v38  ;;  %v1385_v15 = vld [vmem:[%s5604_s5 + $0x788] sm:$0xff]  ;;  %v1240_v9 = vld [vmem:[%s5604_s5 + $0x300] sm:$0xff] }
 0x11e   :  { %1420 = vmatprep.subr.mxu0 %v1165_v21  ;;  %1490 = vmatpush1.msra.mxu1 %v1296_v40  ;;  %v1237_v21 = vld [vmem:[%s5604_s5 + $0x2e8] sm:$0xff]  ;;  %v1376_v30 = vld [vmem:[%s5604_s5 + $0x740] sm:$0xff] }
 0x11f   :  { %1421 = vmatpush1.msra.mxu0 %v1164_v24  ;;  %1491 = vmatprep.subr.mxu1 %v1293_v42  ;;  %v1381_v22 = vld [vmem:[%s5604_s5 + $0x768] sm:$0xff]  ;;  %v1236_v24 = vld [vmem:[%s5604_s5 + $0x2e0] sm:$0xff]  ;;  %v302_v42 = vsub.s32 3, %v3914_v1 }
 0x120   :  { %1422 = vmatprep.subr.mxu0 %v1161_v27  ;;  %1492 = vmatpush1.msra.mxu1 %v1292_v44  ;;  %v1233_v27 = vld [vmem:[%s5604_s5 + $0x2c8] sm:$0xff]  ;;  %v1372_v35 = vld [vmem:[%s5604_s5 + $0x720] sm:$0xff] }
 0x121   :  { %1423 = vmatpush1.msra.mxu0 %v1160_v29  ;;  %1493 = vmatprep.subr.mxu1 %v1289_v47  ;;  %v1377_v28 = vld [vmem:[%s5604_s5 + $0x748] sm:$0xff]  ;;  %v1232_v29 = vld [vmem:[%s5604_s5 + $0x2c0] sm:$0xff] }
 0x122   :  { %1424 = vmatprep.subr.mxu0 %v1157_v32  ;;  %1494 = vmatpush1.msra.mxu1 %v1288_v49  ;;  %v1229_v32 = vld [vmem:[%s5604_s5 + $0x2a8] sm:$0xff]  ;;  %v1224_v40 = vld [vmem:[%s5604_s5 + $0x280] sm:$0xff] }
 0x123   :  { %1425 = vmatpush1.msra.mxu0 %v1156_v34  ;;  %1495 = vmatprep.subr.mxu1 %v1285_v14  ;;  %v1373_v33 = vld [vmem:[%s5604_s5 + $0x728] sm:$0xff]  ;;  %v1228_v34 = vld [vmem:[%s5604_s5 + $0x2a0] sm:$0xff] }
 0x124   :  { %1426 = vmatprep.subr.mxu0 %v1153_v37  ;;  %1496 = vmatpush1.msra.mxu1 %v1284_v8  ;;  %v298_v37 = vsub.s32 2, %v3914_v1  ;;  %v1225_v38 = vld [vmem:[%s5604_s5 + $0x288] sm:$0xff]  ;;  %v1364_v47 = vld [vmem:[%s5604_s5 + $0x6e0] sm:$0xff]  ;;  %v4321_v8 = vrot.slane %v3930_v23, %v302_v42 }
 0x125   :  { %1427 = vmatpush1.msra.mxu0 %v1152_v39  ;;  %1497 = vmatprep.subr.mxu1 %v1281_v13  ;;  %v1369_v39 = vld [vmem:[%s5604_s5 + $0x708] sm:$0xff]  ;;  %v1216_v14 = vld [vmem:[%s5604_s5 + $0x240] sm:$0xff] }
 0x126   :  { %1428 = vmatprep.subr.mxu0 %v1149_v41  ;;  %1498 = vmatpush1.msra.mxu1 %v1280_v18  ;;  %v1368_v41 = vld [vmem:[%s5604_s5 + $0x700] sm:$0xff]  ;;  %v1365_v44 = vld [vmem:[%s5604_s5 + $0x6e8] sm:$0xff] }
 0x127   :  { %1429 = vmatpush1.msra.mxu0 %v1148_v43  ;;  %1499 = vmatprep.subr.mxu1 %v1277_v50  ;;  %v1221_v43 = vld [vmem:[%s5604_s5 + $0x268] sm:$0xff]  ;;  %v1212_v18 = vld [vmem:[%s5604_s5 + $0x220] sm:$0xff] }
 0x128   :  { %1430 = vmatprep.subr.mxu0 %v1145_v45  ;;  %1500 = vmatpush1.msra.mxu1 %v1276_v52  ;;  %v1220_v45 = vld [vmem:[%s5604_s5 + $0x260] sm:$0xff]  ;;  %v1217_v49 = vld [vmem:[%s5604_s5 + $0x248] sm:$0xff] }
 0x129   :  { %1431 = vmatpush1.msra.mxu0 %v1144_v48  ;;  %1501 = vmatprep.subr.mxu1 %v1273_v54  ;;  %v4304_v48 = vrot.slane %v3930_v23, %v298_v37  ;;  %v1357_v13 = vld [vmem:[%s5604_s5 + $0x6a8] sm:$0xff]  ;;  %v1356_v23 = vld [vmem:[%s5604_s5 + $0x6a0] sm:$0xff] }
 0x12a   :  { %1432 = vmatprep.subr.mxu0 %v1269_v12  ;;  %1502 = vmatpush1.msra.mxu1 %v1272_v56  ;;  %v1361_v12 = vld [vmem:[%s5604_s5 + $0x6c8] sm:$0xff]  ;;  %v1208_v54 = vld [vmem:[%s5604_s5 + $0x200] sm:$0xff] }
 0x12b   :  { %1433 = vmatpush2.msra.mxu0 %v1268_v7  ;;  %1503 = vmatprep.subr.mxu1 %v1397_v58  ;;  %v1360_v7 = vld [vmem:[%s5604_s5 + $0x6c0] sm:$0xff]  ;;  %v1209_v50 = vld [vmem:[%s5604_s5 + $0x208] sm:$0xff] }
 0x12c   :  { %1434 = vmatprep.subr.mxu0 %v1265_v11  ;;  %1504 = vmatpush2.msra.mxu1 %v1396_v60  ;;  %v1213_v11 = vld [vmem:[%s5604_s5 + $0x228] sm:$0xff] }
 0x12d   :  { %1435 = vmatpush2.msra.mxu0 %v1264_v10  ;;  %1505 = vmatprep.subr.mxu1 %v1393_v62  ;;  %v1348_v62 = vld [vmem:[%s5604_s5 + $0x660] sm:$0xff] }
 0x12e   :  { %1436 = vmatprep.subr.mxu0 %v1261_v20  ;;  %1506 = vmatpush2.msra.mxu1 %v1392_v0  ;;  %v1344_v0 = vld [vmem:[%s5604_s5 + $0x640] sm:$0xff] }
 0x12f   :  { %1437 = vmatpush2.msra.mxu0 %v1260_v51  ;;  %1507 = vmatprep.subr.mxu1 %v1389_v3  ;;  %v1353_v51 = vld [vmem:[%s5604_s5 + $0x688] sm:$0xff]  ;;  %v1340_v3 = vld [vmem:[%s5604_s5 + $0x620] sm:$0xff] }
 0x130   :  { %1438 = vmatprep.subr.mxu0 %v1257_v53  ;;  %1508 = vmatpush2.msra.mxu1 %v1388_v5  ;;  %v1336_v5 = vld [vmem:[%s5604_s5 + $0x600] sm:$0xff] }
 0x131   :  { %1439 = vmatpush2.msra.mxu0 %v1256_v55  ;;  %1509 = vmatprep.subr.mxu1 %v1385_v15 }
 0x132   :  { %1440 = vmatprep.subr.mxu0 %v1253_v57  ;;  %1510 = vmatpush2.msra.mxu1 %v1384_v16  ;;  %v1207_v57 = vld [vmem:[%s5604_s5 + $0x1f8] sm:$0xff] }
 0x133   :  { %1441 = vmatpush2.msra.mxu0 %v1252_v59  ;;  %1511 = vmatprep.subr.mxu1 %v1381_v22  ;;  %v1352_v59 = vld [vmem:[%s5604_s5 + $0x680] sm:$0xff] }
 0x134   :  { %1442 = vmatprep.subr.mxu0 %v1249_v61  ;;  %1512 = vmatpush2.msra.mxu1 %v1380_v25  ;;  %v1349_v61 = vld [vmem:[%s5604_s5 + $0x668] sm:$0xff] }
 0x135   :  { %1443 = vmatpush2.msra.mxu0 %v1248_v63  ;;  %1513 = vmatprep.subr.mxu1 %v1377_v28  ;;  %v1345_v63 = vld [vmem:[%s5604_s5 + $0x648] sm:$0xff] }
 0x136   :  { %1444 = vmatprep.subr.mxu0 %v1245_v2  ;;  %1514 = vmatpush2.msra.mxu1 %v1376_v30  ;;  %v1341_v2 = vld [vmem:[%s5604_s5 + $0x628] sm:$0xff]  ;;  %v1206_v30 = vld [vmem:[%s5604_s5 + $0x1f0] sm:$0xff] }
 0x137   :  { %1445 = vmatpush2.msra.mxu0 %v1244_v4  ;;  %1515 = vmatprep.subr.mxu1 %v1373_v33  ;;  %v1337_v4 = vld [vmem:[%s5604_s5 + $0x608] sm:$0xff]  ;;  %v1198_v33 = vld [vmem:[%s5604_s5 + $0x1b0] sm:$0xff] }
 0x138   :  { %1446 = vmatprep.subr.mxu0 %v1241_v17  ;;  %1516 = vmatpush2.msra.mxu1 %v1372_v35  ;;  %v1335_v17 = vld [vmem:[%s5604_s5 + $0x5f8] sm:$0xff]  ;;  %v1194_v35 = vld [vmem:[%s5604_s5 + $0x190] sm:$0xff] }
 0x139   :  { %1447 = vmatpush2.msra.mxu0 %v1240_v9  ;;  %1517 = vmatprep.subr.mxu1 %v1369_v39  ;;  %v1190_v39 = vld [vmem:[%s5604_s5 + $0x170] sm:$0xff] }
 0x13a   :  { %1448 = vmatprep.subr.mxu0 %v1237_v21  ;;  %1518 = vmatpush2.msra.mxu1 %v1368_v41  ;;  %v1186_v41 = vld [vmem:[%s5604_s5 + $0x150] sm:$0xff] }
 0x13b   :  { %1449 = vmatpush2.msra.mxu0 %v1236_v24  ;;  %1519 = vmatprep.subr.mxu1 %v1365_v44  ;;  %v1182_v44 = vld [vmem:[%s5604_s5 + $0x130] sm:$0xff] }
 0x13c   :  { %1450 = vmatprep.subr.mxu0 %v1233_v27  ;;  %1520 = vmatpush2.msra.mxu1 %v1364_v47  ;;  %v1178_v47 = vld [vmem:[%s5604_s5 + $0x110] sm:$0xff] }
 0x13d   :  { %1451 = vmatpush2.msra.mxu0 %v1232_v29  ;;  %1521 = vmatprep.subr.mxu1 %v1361_v12  ;;  %v1174_v12 = vld [vmem:[%s5604_s5 + $0xf0] sm:$0xff] }
 0x13e   :  { %1452 = vmatprep.subr.mxu0 %v1229_v32  ;;  %1522 = vmatpush2.msra.mxu1 %v1360_v7  ;;  %v1199_v32 = vld [vmem:[%s5604_s5 + $0x1b8] sm:$0xff]  ;;  %v1170_v7 = vld [vmem:[%s5604_s5 + $0xd0] sm:$0xff] }
 0x13f   :  { %1453 = vmatpush2.msra.mxu0 %v1228_v34  ;;  %1523 = vmatprep.subr.mxu1 %v1357_v13  ;;  %v1195_v34 = vld [vmem:[%s5604_s5 + $0x198] sm:$0xff]  ;;  %v1166_v13 = vld [vmem:[%s5604_s5 + $0xb0] sm:$0xff] }
 0x140   :  { %1454 = vmatprep.subr.mxu0 %v1225_v38  ;;  %1524 = vmatpush2.msra.mxu1 %v1356_v23  ;;  %v1191_v38 = vld [vmem:[%s5604_s5 + $0x178] sm:$0xff] }
 0x141   :  { %1455 = vmatpush2.msra.mxu0 %v1224_v40  ;;  %1525 = vmatprep.subr.mxu1 %v1353_v51  ;;  %v1187_v40 = vld [vmem:[%s5604_s5 + $0x158] sm:$0xff]  ;;  %v1154_v51 = vld [vmem:[%s5604_s5 + $0x50] sm:$0xff] }
 0x142   :  { %1456 = vmatprep.subr.mxu0 %v1221_v43  ;;  %1526 = vmatpush2.msra.mxu1 %v1352_v59  ;;  %v1183_v43 = vld [vmem:[%s5604_s5 + $0x138] sm:$0xff] }
 0x143   :  { %1457 = vmatpush2.msra.mxu0 %v1220_v45  ;;  %1527 = vmatprep.subr.mxu1 %v1349_v61  ;;  %v1179_v45 = vld [vmem:[%s5604_s5 + $0x118] sm:$0xff]  ;;  %v1266_v61 = vld [vmem:[%s5604_s5 + $0x3d0] sm:$0xff] }
 0x144   :  { %1458 = vmatprep.subr.mxu0 %v1217_v49  ;;  %1528 = vmatpush2.msra.mxu1 %v1348_v62  ;;  %v1175_v49 = vld [vmem:[%s5604_s5 + $0xf8] sm:$0xff] }
 0x145   :  { %v516_v10 = vpop.f32.mrf.mxu0  ;;  %1459 = vmatpush2.msra.mxu0 %v1216_v14  ;;  %1529 = vmatprep.subr.mxu1 %v1345_v63  ;;  %v1171_v14 = vld [vmem:[%s5604_s5 + $0xd8] sm:$0xff]  ;;  %v1262_v63 = vld [vmem:[%s5604_s5 + $0x3b0] sm:$0xff] }
 0x146   :  { %v517_v20 = vadd.f32 %v516_v10, %v4304_v48  ;;  %1460 = vmatprep.subr.mxu0 %v1213_v11  ;;  %1530 = vmatpush2.msra.mxu1 %v1344_v0  ;;  %v1167_v11 = vld [vmem:[%s5604_s5 + $0xb8] sm:$0xff] }
 0x147   :  { %v587_v52 = vpop.f32.mrf.mxu1  ;;  %v518_v53 = vpop.f32.mrf.mxu0  ;;  %1461 = vmatpush2.msra.mxu0 %v1212_v18  ;;  %1531 = vmatprep.subr.mxu1 %v1341_v2  ;;  %v1163_v10 = vld [vmem:[%s5604_s5 + $0x98] sm:$0xff]  ;;  %v1162_v18 = vld [vmem:[%s5604_s5 + $0x90] sm:$0xff] }
 0x148   :  { %v4345_v55 = vadd.f32 %v587_v52, %v517_v20  ;;  %v519_v56 = vadd.f32 %v518_v53, %v4321_v8  ;;  %1462 = vmatprep.subr.mxu0 %v1209_v50  ;;  %1532 = vmatpush2.msra.mxu1 %v1340_v3  ;;  %v1159_v23 = vld [vmem:[%s5604_s5 + $0x78] sm:$0xff]  ;;  %v1158_v20 = vld [vmem:[%s5604_s5 + $0x70] sm:$0xff] }
 0x149   :  { %v589_v58 = vpop.f32.mrf.mxu1  ;;  %1463 = vmatpush2.msra.mxu0 %v1208_v54  ;;  %1533 = vmatprep.subr.mxu1 %v1337_v4  ;;  %v1155_v50 = vld [vmem:[%s5604_s5 + $0x58] sm:$0xff]  ;;  %v1150_v53 = vld [vmem:[%s5604_s5 + $0x30] sm:$0xff] }
 0x14a   :  { %v4354_v60 = vadd.f32 %v589_v58, %v519_v56  ;;  %1542 = vmatprep.subr.mxu0 %v1207_v57  ;;  %1534 = vmatpush2.msra.mxu1 %v1336_v5  ;;  %v1151_v52 = vld [vmem:[%s5604_s5 + $0x38] sm:$0xff]  ;;  %v1146_v56 = vld [vmem:[%s5604_s5 + $0x10] sm:$0xff] }
 0x14b   :  { %1613 = vmatprep.subr.mxu1 %v1335_v17  ;;  %v1147_v54 = vld [vmem:[%s5604_s5 + $0x18] sm:$0xff]  ;;  %v1270_v58 = vld [vmem:[%s5604_s5 + $0x3f0] sm:$0xff] }
 0x14c   :  { %v1271_v57 = vld [vmem:[%s5604_s5 + $0x3f8] sm:$0xff]  ;;  %v1258_v2 = vld [vmem:[%s5604_s5 + $0x390] sm:$0xff] }
 0x14d   :  { %v1267_v59 = vld [vmem:[%s5604_s5 + $0x3d8] sm:$0xff]  ;;  %v1254_v4 = vld [vmem:[%s5604_s5 + $0x370] sm:$0xff] }
 0x14e   :  { %v1263_v62 = vld [vmem:[%s5604_s5 + $0x3b8] sm:$0xff]  ;;  %v1250_v17 = vld [vmem:[%s5604_s5 + $0x350] sm:$0xff] }
 0x14f   :  { %v1259_v0 = vld [vmem:[%s5604_s5 + $0x398] sm:$0xff] }
 0x150   :  { %v1255_v3 = vld [vmem:[%s5604_s5 + $0x378] sm:$0xff] }
 0x151   :  { %v1251_v5 = vld [vmem:[%s5604_s5 + $0x358] sm:$0xff] }
 0x187   :  { %v666_v15 = vpop.f32.mrf.mxu0 }
 0x188   :  { %v667_v9 = vadd.f32 %v666_v15, %v3942_v31  ;;  %v1203_v31 = vld [vmem:[%s5604_s5 + $0x1d8] sm:$0xff] }
 0x189   :  { %v737_v16 = vpop.f32.mrf.mxu1  ;;  %v668_v21 = vpop.f32.mrf.mxu0  ;;  %v1247_v15 = vld [vmem:[%s5604_s5 + $0x338] sm:$0xff] }
 0x18a   :  { %v669_v22 = vadd.f32 %v668_v21, %v3951_v36  ;;  %v738_v24 = vadd.f32 %v737_v16, %v667_v9  ;;  %v1202_v36 = vld [vmem:[%s5604_s5 + $0x1d0] sm:$0xff]  ;;  %v1243_v16 = vld [vmem:[%s5604_s5 + $0x318] sm:$0xff] }
 0x18b   :  { %v739_v25 = vpop.f32.mrf.mxu1  ;;  %v1246_v9 = vld [vmem:[%s5604_s5 + $0x330] sm:$0xff] }
 0x18c   :  { %v740_v27 = vadd.f32 %v739_v25, %v669_v22  ;;  %v4387_v29 = vmax.f32 %v738_v24, 0.0  ;;  %v1242_v21 = vld [vmem:[%s5604_s5 + $0x310] sm:$0xff]  ;;  %v1239_v22 = vld [vmem:[%s5604_s5 + $0x2f8] sm:$0xff] }
 0x18d   :  { %v1238_v24 = vld [vmem:[%s5604_s5 + $0x2f0] sm:$0xff]  ;;  %v1235_v25 = vld [vmem:[%s5604_s5 + $0x2d8] sm:$0xff] }
 0x18e   :  { %v4385_v28 = vmax.f32 %v740_v27, 0.0  ;;  %v1234_v27 = vld [vmem:[%s5604_s5 + $0x2d0] sm:$0xff] }
 0x190   :  { %1464 = vmatprep.mubr.f32.mxu0 %v4385_v28 }
 0x191   :  { %1465 = vmatmul.mubr.f32.vlgmr.msra.gmra.mxu0 %v4387_v29 }
 0x192   :  { %1543 = vmatpush1.msra.mxu0 %v1206_v30  ;;  %1606 = vmatprep.mubr.f32.mxu0 %v4385_v28  ;;  %v1231_v30 = vld [vmem:[%s5604_s5 + $0x2b8] sm:$0xff] }
 0x193   :  { %1544 = vmatprep.subr.mxu0 %v1203_v31  ;;  %v1230_v31 = vld [vmem:[%s5604_s5 + $0x2b0] sm:$0xff] }
 0x194   :  { %1545 = vmatpush1.msra.mxu0 %v1202_v36  ;;  %v1227_v36 = vld [vmem:[%s5604_s5 + $0x298] sm:$0xff] }
 0x195   :  { %1546 = vmatprep.subr.mxu0 %v1199_v32  ;;  %v1226_v32 = vld [vmem:[%s5604_s5 + $0x290] sm:$0xff] }
 0x196   :  { %1547 = vmatpush1.msra.mxu0 %v1198_v33  ;;  %v1223_v33 = vld [vmem:[%s5604_s5 + $0x278] sm:$0xff] }
 0x197   :  { %1548 = vmatprep.subr.mxu0 %v1195_v34  ;;  %v1222_v34 = vld [vmem:[%s5604_s5 + $0x270] sm:$0xff] }
 0x198   :  { %1549 = vmatpush1.msra.mxu0 %v1194_v35  ;;  %v1219_v35 = vld [vmem:[%s5604_s5 + $0x258] sm:$0xff] }
 0x199   :  { %1550 = vmatprep.subr.mxu0 %v1191_v38  ;;  %v1218_v38 = vld [vmem:[%s5604_s5 + $0x250] sm:$0xff] }
 0x19a   :  { %1551 = vmatpush1.msra.mxu0 %v1190_v39 }
 0x19b   :  { %1552 = vmatprep.subr.mxu0 %v1187_v40 }
 0x19c   :  { %1553 = vmatpush1.msra.mxu0 %v1186_v41  ;;  %v1215_v41 = vld [vmem:[%s5604_s5 + $0x238] sm:$0xff] }
 0x19d   :  { %1554 = vmatprep.subr.mxu0 %v1183_v43 }
 0x19e   :  { %1555 = vmatpush1.msra.mxu0 %v1182_v44  ;;  %v1214_v44 = vld [vmem:[%s5604_s5 + $0x230] sm:$0xff] }
 0x19f   :  { %1556 = vmatprep.subr.mxu0 %v1179_v45 }
 0x1a0   :  { %1557 = vmatpush1.msra.mxu0 %v1178_v47  ;;  %v1211_v47 = vld [vmem:[%s5604_s5 + $0x218] sm:$0xff] }
 0x1a1   :  { %1558 = vmatprep.subr.mxu0 %v1175_v49 }
 0x1a2   :  { %1559 = vmatpush1.msra.mxu0 %v1174_v12  ;;  %v1210_v12 = vld [vmem:[%s5604_s5 + $0x210] sm:$0xff] }
 0x1a3   :  { %1560 = vmatprep.subr.mxu0 %v1171_v14 }
 0x1a4   :  { %1561 = vmatpush1.msra.mxu0 %v1170_v7  ;;  %v949_v7 = vld [vmem:[%s5605_s4 + $0x1e8] sm:$0xff] }
 0x1a5   :  { %1562 = vmatprep.subr.mxu0 %v1167_v11 }
 0x1a6   :  { %1563 = vmatpush1.msra.mxu0 %v1166_v13  ;;  %v948_v13 = vld [vmem:[%s5605_s4 + $0x1e0] sm:$0xff] }
 0x1a7   :  { %1564 = vmatprep.subr.mxu0 %v1163_v10  ;;  %v945_v10 = vld [vmem:[%s5605_s4 + $0x1c8] sm:$0xff] }
 0x1a8   :  { %1565 = vmatpush1.msra.mxu0 %v1162_v18 }
 0x1a9   :  { %1566 = vmatprep.subr.mxu0 %v1159_v23  ;;  %v944_v23 = vld [vmem:[%s5605_s4 + $0x1c0] sm:$0xff] }
 0x1aa   :  { %1567 = vmatpush1.msra.mxu0 %v1158_v20 }
 0x1ab   :  { %1568 = vmatprep.subr.mxu0 %v1155_v50  ;;  %v1331_v50 = vld [vmem:[%s5604_s5 + $0x5d8] sm:$0xff] }
 0x1ac   :  { %1569 = vmatpush1.msra.mxu0 %v1154_v51  ;;  %v941_v51 = vld [vmem:[%s5605_s4 + $0x1a8] sm:$0xff] }
 0x1ad   :  { %1570 = vmatprep.subr.mxu0 %v1151_v52  ;;  %v1330_v52 = vld [vmem:[%s5604_s5 + $0x5d0] sm:$0xff] }
 0x1ae   :  { %1571 = vmatpush1.msra.mxu0 %v1150_v53  ;;  %v940_v53 = vld [vmem:[%s5605_s4 + $0x1a0] sm:$0xff] }
 0x1af   :  { %1572 = vmatprep.subr.mxu0 %v1147_v54  ;;  %v1327_v54 = vld [vmem:[%s5604_s5 + $0x5b8] sm:$0xff] }
 0x1b0   :  { %1573 = vmatpush1.msra.mxu0 %v1146_v56  ;;  %v937_v56 = vld [vmem:[%s5605_s4 + $0x188] sm:$0xff] }
 0x1b1   :  { %1574 = vmatprep.subr.mxu0 %v1271_v57  ;;  %v1326_v57 = vld [vmem:[%s5604_s5 + $0x5b0] sm:$0xff] }
 0x1b2   :  { %1575 = vmatpush2.msra.mxu0 %v1270_v58  ;;  %v936_v58 = vld [vmem:[%s5605_s4 + $0x180] sm:$0xff] }
 0x1b3   :  { %1576 = vmatprep.subr.mxu0 %v1267_v59  ;;  %v1323_v59 = vld [vmem:[%s5604_s5 + $0x598] sm:$0xff] }
 0x1b4   :  { %1577 = vmatpush2.msra.mxu0 %v1266_v61  ;;  %v933_v61 = vld [vmem:[%s5605_s4 + $0x168] sm:$0xff] }
 0x1b5   :  { %1578 = vmatprep.subr.mxu0 %v1263_v62  ;;  %v1322_v62 = vld [vmem:[%s5604_s5 + $0x590] sm:$0xff] }
 0x1b6   :  { %1579 = vmatpush2.msra.mxu0 %v1262_v63  ;;  %v932_v63 = vld [vmem:[%s5605_s4 + $0x160] sm:$0xff] }
 0x1b7   :  { %1580 = vmatprep.subr.mxu0 %v1259_v0  ;;  %v1319_v0 = vld [vmem:[%s5604_s5 + $0x578] sm:$0xff] }
 0x1b8   :  { %1581 = vmatpush2.msra.mxu0 %v1258_v2  ;;  %v929_v2 = vld [vmem:[%s5605_s4 + $0x148] sm:$0xff] }
 0x1b9   :  { %1582 = vmatprep.subr.mxu0 %v1255_v3  ;;  %v1318_v3 = vld [vmem:[%s5604_s5 + $0x570] sm:$0xff] }
 0x1ba   :  { %1583 = vmatpush2.msra.mxu0 %v1254_v4  ;;  %v928_v4 = vld [vmem:[%s5605_s4 + $0x140] sm:$0xff] }
 0x1bb   :  { %1584 = vmatprep.subr.mxu0 %v1251_v5  ;;  %v1315_v5 = vld [vmem:[%s5604_s5 + $0x558] sm:$0xff] }
 0x1bc   :  { %1585 = vmatpush2.msra.mxu0 %v1250_v17  ;;  %v925_v17 = vld [vmem:[%s5605_s4 + $0x128] sm:$0xff] }
 0x1bd   :  { %1586 = vmatprep.subr.mxu0 %v1247_v15  ;;  %v1314_v15 = vld [vmem:[%s5604_s5 + $0x550] sm:$0xff] }
 0x1be   :  { %1587 = vmatpush2.msra.mxu0 %v1246_v9  ;;  %v924_v9 = vld [vmem:[%s5605_s4 + $0x120] sm:$0xff] }
 0x1bf   :  { %1588 = vmatprep.subr.mxu0 %v1243_v16  ;;  %v1311_v16 = vld [vmem:[%s5604_s5 + $0x538] sm:$0xff] }
 0x1c0   :  { %1589 = vmatpush2.msra.mxu0 %v1242_v21  ;;  %v921_v21 = vld [vmem:[%s5605_s4 + $0x108] sm:$0xff] }
 0x1c1   :  { %1590 = vmatprep.subr.mxu0 %v1239_v22  ;;  %v1310_v22 = vld [vmem:[%s5604_s5 + $0x530] sm:$0xff] }
 0x1c2   :  { %1591 = vmatpush2.msra.mxu0 %v1238_v24  ;;  %v920_v24 = vld [vmem:[%s5605_s4 + $0x100] sm:$0xff] }
 0x1c3   :  { %1592 = vmatprep.subr.mxu0 %v1235_v25  ;;  %v1307_v25 = vld [vmem:[%s5604_s5 + $0x518] sm:$0xff] }
 0x1c4   :  { %1593 = vmatpush2.msra.mxu0 %v1234_v27  ;;  %v917_v27 = vld [vmem:[%s5605_s4 + $0xe8] sm:$0xff] }
 0x1c5   :  { %1594 = vmatprep.subr.mxu0 %v1231_v30  ;;  %v1306_v30 = vld [vmem:[%s5604_s5 + $0x510] sm:$0xff] }
 0x1c6   :  { %1595 = vmatpush2.msra.mxu0 %v1230_v31  ;;  %v916_v31 = vld [vmem:[%s5605_s4 + $0xe0] sm:$0xff] }
 0x1c7   :  { %1596 = vmatprep.subr.mxu0 %v1227_v36  ;;  %v1303_v36 = vld [vmem:[%s5604_s5 + $0x4f8] sm:$0xff] }
 0x1c8   :  { %1597 = vmatpush2.msra.mxu0 %v1226_v32  ;;  %v913_v32 = vld [vmem:[%s5605_s4 + $0xc8] sm:$0xff] }
 0x1c9   :  { %1598 = vmatprep.subr.mxu0 %v1223_v33  ;;  %v808_v39 = vpop.f32.mrf.mxu0  ;;  %v1302_v33 = vld [vmem:[%s5604_s5 + $0x4f0] sm:$0xff] }
 0x1ca   :  { %v879_v40 = vpop.f32.mrf.mxu1  ;;  %1599 = vmatpush2.msra.mxu0 %v1222_v34  ;;  %v809_v43 = vadd.f32 %v808_v39, %v4304_v48  ;;  %v912_v34 = vld [vmem:[%s5605_s4 + $0xc0] sm:$0xff]  ;;  %v1298_v39 = vld [vmem:[%s5604_s5 + $0x4d0] sm:$0xff] }
 0x1cb   :  { %1600 = vmatprep.subr.mxu0 %v1219_v35  ;;  %v810_v45 = vpop.f32.mrf.mxu0  ;;  %v1299_v35 = vld [vmem:[%s5604_s5 + $0x4d8] sm:$0xff] }
 0x1cc   :  { %1601 = vmatpush2.msra.mxu0 %v1218_v38  ;;  %v811_v49 = vadd.f32 %v810_v45, %v4321_v8  ;;  %v880_v14 = vadd.f32 %v879_v40, %v809_v43  ;;  %v881_v48 = vpop.f32.mrf.mxu1  ;;  %v4590_v8 = vmax.f32 %v3969_v6, 0.0  ;;  %v1334_v6 = vld [vmem:[%s5604_s5 + $0x5f0] sm:$0xff]  ;;  %v909_v38 = vld [vmem:[%s5605_s4 + $0xa8] sm:$0xff]  ;;  %v908_v40 = vld [vmem:[%s5605_s4 + $0xa0] sm:$0xff] }
 0x1cd   :  { %1602 = vmatprep.subr.mxu0 %v1215_v41  ;;  %v1295_v41 = vld [vmem:[%s5604_s5 + $0x4b8] sm:$0xff]  ;;  %v905_v43 = vld [vmem:[%s5605_s4 + $0x88] sm:$0xff]  ;;  %v904_v45 = vld [vmem:[%s5605_s4 + $0x80] sm:$0xff] }
 0x1ce   :  { %1603 = vmatpush2.msra.mxu0 %v1214_v44  ;;  %v882_v11 = vadd.f32 %v881_v48, %v811_v49  ;;  %v4601_v20 = vmax.f32 %v880_v14, 0.0  ;;  %v1294_v44 = vld [vmem:[%s5604_s5 + $0x4b0] sm:$0xff]  ;;  %v901_v49 = vld [vmem:[%s5605_s4 + $0x68] sm:$0xff]  ;;  %v900_v14 = vld [vmem:[%s5605_s4 + $0x60] sm:$0xff] }
 0x1cf   :  { %1604 = vmatprep.subr.mxu0 %v1211_v47  ;;  %v1291_v47 = vld [vmem:[%s5604_s5 + $0x498] sm:$0xff] }
 0x1d0   :  { %1605 = vmatpush2.msra.mxu0 %v1210_v12  ;;  %v4595_v18 = vmax.f32 %v882_v11, 0.0  ;;  %v1290_v12 = vld [vmem:[%s5604_s5 + $0x490] sm:$0xff]  ;;  %v1287_v48 = vld [vmem:[%s5604_s5 + $0x478] sm:$0xff] }
 0x1d1   :  { %1607 = vmatmul.mubr.f32.vlgmr.msra.gmra.mxu0 %v4387_v29  ;;  %1684 = vmatprep.subr.mxu0 %v949_v7  ;;  %v897_v7 = vld [vmem:[%s5605_s4 + $0x48] sm:$0xff]  ;;  %v1286_v11 = vld [vmem:[%s5604_s5 + $0x470] sm:$0xff] }
 0x1d2   :  { %1685 = vmatpush1.msra.mxu0 %v948_v13  ;;  %1748 = vmatprep.mubr.f32.mxu0 %v4590_v8  ;;  %v896_v13 = vld [vmem:[%s5605_s4 + $0x40] sm:$0xff] }
 0x1d3   :  { %1535 = vmatprep.mubr.f32.mxu1 %v4595_v18  ;;  %1686 = vmatprep.subr.mxu0 %v945_v10  ;;  %v1283_v10 = vld [vmem:[%s5604_s5 + $0x458] sm:$0xff] }
 0x1d4   :  { %1536 = vmatmul.mubr.f32.vlgmr.msra.gmra.mxu1 %v4601_v20  ;;  %1687 = vmatpush1.msra.mxu0 %v944_v23  ;;  %v893_v23 = vld [vmem:[%s5605_s4 + $0x28] sm:$0xff] }
 0x1d5   :  { %1614 = vmatpush1.msra.mxu1 %v1334_v6  ;;  %1677 = vmatprep.mubr.f32.mxu1 %v4595_v18  ;;  %v1282_v6 = vld [vmem:[%s5604_s5 + $0x450] sm:$0xff] }
 0x1d6   :  { %1615 = vmatprep.subr.mxu1 %v1331_v50  ;;  %1688 = vmatprep.subr.mxu0 %v941_v51  ;;  %v892_v50 = vld [vmem:[%s5605_s4 + $0x20] sm:$0xff]  ;;  %v1279_v51 = vld [vmem:[%s5604_s5 + $0x438] sm:$0xff] }
 0x1d7   :  { %1616 = vmatpush1.msra.mxu1 %v1330_v52  ;;  %1689 = vmatpush1.msra.mxu0 %v940_v53  ;;  %v889_v52 = vld [vmem:[%s5605_s4 + $0x8] sm:$0xff]  ;;  %v1278_v53 = vld [vmem:[%s5604_s5 + $0x430] sm:$0xff] }
 0x1d8   :  { %1617 = vmatprep.subr.mxu1 %v1327_v54  ;;  %1690 = vmatprep.subr.mxu0 %v937_v56  ;;  %v888_v54 = vld [vmem:[%s5605_s4] sm:$0xff]  ;;  %v1275_v56 = vld [vmem:[%s5604_s5 + $0x418] sm:$0xff] }
 0x1d9   :  { %1618 = vmatpush1.msra.mxu1 %v1326_v57  ;;  %1691 = vmatpush1.msra.mxu0 %v936_v58  ;;  %v1013_v57 = vld [vmem:[%s5605_s4 + $0x3e8] sm:$0xff]  ;;  %v1274_v58 = vld [vmem:[%s5604_s5 + $0x410] sm:$0xff] }
 0x1da   :  { %1619 = vmatprep.subr.mxu1 %v1323_v59  ;;  %1692 = vmatprep.subr.mxu0 %v933_v61  ;;  %v1012_v59 = vld [vmem:[%s5605_s4 + $0x3e0] sm:$0xff]  ;;  %v1399_v61 = vld [vmem:[%s5604_s5 + $0x7f8] sm:$0xff] }
 0x1db   :  { %1620 = vmatpush1.msra.mxu1 %v1322_v62  ;;  %1693 = vmatpush1.msra.mxu0 %v932_v63  ;;  %v1009_v62 = vld [vmem:[%s5605_s4 + $0x3c8] sm:$0xff]  ;;  %v1398_v63 = vld [vmem:[%s5604_s5 + $0x7f0] sm:$0xff] }
 0x1dc   :  { %1621 = vmatprep.subr.mxu1 %v1319_v0  ;;  %1694 = vmatprep.subr.mxu0 %v929_v2  ;;  %v1008_v0 = vld [vmem:[%s5605_s4 + $0x3c0] sm:$0xff]  ;;  %v1395_v2 = vld [vmem:[%s5604_s5 + $0x7d8] sm:$0xff] }
 0x1dd   :  { %1622 = vmatpush1.msra.mxu1 %v1318_v3  ;;  %1695 = vmatpush1.msra.mxu0 %v928_v4  ;;  %v1005_v3 = vld [vmem:[%s5605_s4 + $0x3a8] sm:$0xff]  ;;  %v1394_v4 = vld [vmem:[%s5604_s5 + $0x7d0] sm:$0xff] }
 0x1de   :  { %1623 = vmatprep.subr.mxu1 %v1315_v5  ;;  %1696 = vmatprep.subr.mxu0 %v925_v17  ;;  %v1004_v5 = vld [vmem:[%s5605_s4 + $0x3a0] sm:$0xff]  ;;  %v1391_v17 = vld [vmem:[%s5604_s5 + $0x7b8] sm:$0xff] }
 0x1df   :  { %1624 = vmatpush1.msra.mxu1 %v1314_v15  ;;  %1697 = vmatpush1.msra.mxu0 %v924_v9  ;;  %v1001_v15 = vld [vmem:[%s5605_s4 + $0x388] sm:$0xff]  ;;  %v1390_v9 = vld [vmem:[%s5604_s5 + $0x7b0] sm:$0xff] }
 0x1e0   :  { %1625 = vmatprep.subr.mxu1 %v1311_v16  ;;  %1698 = vmatprep.subr.mxu0 %v921_v21  ;;  %v1000_v16 = vld [vmem:[%s5605_s4 + $0x380] sm:$0xff]  ;;  %v1387_v21 = vld [vmem:[%s5604_s5 + $0x798] sm:$0xff] }
 0x1e1   :  { %1626 = vmatpush1.msra.mxu1 %v1310_v22  ;;  %1699 = vmatpush1.msra.mxu0 %v920_v24  ;;  %v997_v22 = vld [vmem:[%s5605_s4 + $0x368] sm:$0xff]  ;;  %v1386_v24 = vld [vmem:[%s5604_s5 + $0x790] sm:$0xff] }
 0x1e2   :  { %1627 = vmatprep.subr.mxu1 %v1307_v25  ;;  %1700 = vmatprep.subr.mxu0 %v917_v27  ;;  %v996_v25 = vld [vmem:[%s5605_s4 + $0x360] sm:$0xff]  ;;  %v1383_v27 = vld [vmem:[%s5604_s5 + $0x778] sm:$0xff] }
 0x1e3   :  { %1628 = vmatpush1.msra.mxu1 %v1306_v30  ;;  %1701 = vmatpush1.msra.mxu0 %v916_v31  ;;  %v993_v30 = vld [vmem:[%s5605_s4 + $0x348] sm:$0xff]  ;;  %v1382_v31 = vld [vmem:[%s5604_s5 + $0x770] sm:$0xff] }
 0x1e4   :  { %1629 = vmatprep.subr.mxu1 %v1303_v36  ;;  %1702 = vmatprep.subr.mxu0 %v913_v32  ;;  %v992_v36 = vld [vmem:[%s5605_s4 + $0x340] sm:$0xff]  ;;  %v1379_v32 = vld [vmem:[%s5604_s5 + $0x758] sm:$0xff] }
 0x1e5   :  { %1630 = vmatpush1.msra.mxu1 %v1302_v33  ;;  %1703 = vmatpush1.msra.mxu0 %v912_v34  ;;  %v989_v33 = vld [vmem:[%s5605_s4 + $0x328] sm:$0xff]  ;;  %v1378_v34 = vld [vmem:[%s5604_s5 + $0x750] sm:$0xff] }
 0x1e6   :  { %1631 = vmatprep.subr.mxu1 %v1299_v35  ;;  %1704 = vmatprep.subr.mxu0 %v909_v38  ;;  %v988_v35 = vld [vmem:[%s5605_s4 + $0x320] sm:$0xff]  ;;  %v1375_v38 = vld [vmem:[%s5604_s5 + $0x738] sm:$0xff] }
 0x1e7   :  { %1632 = vmatpush1.msra.mxu1 %v1298_v39  ;;  %1705 = vmatpush1.msra.mxu0 %v908_v40  ;;  %v985_v39 = vld [vmem:[%s5605_s4 + $0x308] sm:$0xff]  ;;  %v1374_v40 = vld [vmem:[%s5604_s5 + $0x730] sm:$0xff] }
 0x1e8   :  { %1633 = vmatprep.subr.mxu1 %v1295_v41  ;;  %1706 = vmatprep.subr.mxu0 %v905_v43  ;;  %v984_v41 = vld [vmem:[%s5605_s4 + $0x300] sm:$0xff]  ;;  %v1371_v43 = vld [vmem:[%s5604_s5 + $0x718] sm:$0xff] }
 0x1e9   :  { %1634 = vmatpush1.msra.mxu1 %v1294_v44  ;;  %1707 = vmatpush1.msra.mxu0 %v904_v45  ;;  %v981_v44 = vld [vmem:[%s5605_s4 + $0x2e8] sm:$0xff]  ;;  %v1370_v45 = vld [vmem:[%s5604_s5 + $0x710] sm:$0xff] }
 0x1ea   :  { %1635 = vmatprep.subr.mxu1 %v1291_v47  ;;  %1708 = vmatprep.subr.mxu0 %v901_v49  ;;  %v980_v47 = vld [vmem:[%s5605_s4 + $0x2e0] sm:$0xff]  ;;  %v1367_v49 = vld [vmem:[%s5604_s5 + $0x6f8] sm:$0xff] }
 0x1eb   :  { %1636 = vmatpush1.msra.mxu1 %v1290_v12  ;;  %1709 = vmatpush1.msra.mxu0 %v900_v14  ;;  %v977_v12 = vld [vmem:[%s5605_s4 + $0x2c8] sm:$0xff]  ;;  %v1366_v14 = vld [vmem:[%s5604_s5 + $0x6f0] sm:$0xff] }
 0x1ec   :  { %1637 = vmatprep.subr.mxu1 %v1287_v48  ;;  %1710 = vmatprep.subr.mxu0 %v897_v7  ;;  %v976_v48 = vld [vmem:[%s5605_s4 + $0x2c0] sm:$0xff]  ;;  %v1363_v7 = vld [vmem:[%s5604_s5 + $0x6d8] sm:$0xff] }
 0x1ed   :  { %1638 = vmatpush1.msra.mxu1 %v1286_v11  ;;  %1711 = vmatpush1.msra.mxu0 %v896_v13  ;;  %v973_v11 = vld [vmem:[%s5605_s4 + $0x2a8] sm:$0xff]  ;;  %v1362_v13 = vld [vmem:[%s5604_s5 + $0x6d0] sm:$0xff] }
 0x1ee   :  { %1639 = vmatprep.subr.mxu1 %v1283_v10  ;;  %1712 = vmatprep.subr.mxu0 %v893_v23  ;;  %v972_v10 = vld [vmem:[%s5605_s4 + $0x2a0] sm:$0xff]  ;;  %v1359_v23 = vld [vmem:[%s5604_s5 + $0x6b8] sm:$0xff] }
 0x1ef   :  { %1640 = vmatpush1.msra.mxu1 %v1282_v6  ;;  %1713 = vmatpush1.msra.mxu0 %v892_v50  ;;  %v969_v6 = vld [vmem:[%s5605_s4 + $0x288] sm:$0xff]  ;;  %v1358_v50 = vld [vmem:[%s5604_s5 + $0x6b0] sm:$0xff] }
 0x1f0   :  { %1641 = vmatprep.subr.mxu1 %v1279_v51  ;;  %1714 = vmatprep.subr.mxu0 %v889_v52  ;;  %v968_v51 = vld [vmem:[%s5605_s4 + $0x280] sm:$0xff]  ;;  %v1355_v52 = vld [vmem:[%s5604_s5 + $0x698] sm:$0xff] }
 0x1f1   :  { %1642 = vmatpush1.msra.mxu1 %v1278_v53  ;;  %1715 = vmatpush1.msra.mxu0 %v888_v54  ;;  %v965_v53 = vld [vmem:[%s5605_s4 + $0x268] sm:$0xff]  ;;  %v1354_v54 = vld [vmem:[%s5604_s5 + $0x690] sm:$0xff] }
 0x1f2   :  { %1643 = vmatprep.subr.mxu1 %v1275_v56  ;;  %1716 = vmatprep.subr.mxu0 %v1013_v57  ;;  %v964_v56 = vld [vmem:[%s5605_s4 + $0x260] sm:$0xff]  ;;  %v1351_v57 = vld [vmem:[%s5604_s5 + $0x678] sm:$0xff] }
 0x1f3   :  { %1644 = vmatpush1.msra.mxu1 %v1274_v58  ;;  %1717 = vmatpush2.msra.mxu0 %v1012_v59  ;;  %v961_v58 = vld [vmem:[%s5605_s4 + $0x248] sm:$0xff]  ;;  %v1350_v59 = vld [vmem:[%s5604_s5 + $0x670] sm:$0xff] }
 0x1f4   :  { %1645 = vmatprep.subr.mxu1 %v1399_v61  ;;  %1718 = vmatprep.subr.mxu0 %v1009_v62  ;;  %v960_v61 = vld [vmem:[%s5605_s4 + $0x240] sm:$0xff]  ;;  %v1347_v62 = vld [vmem:[%s5604_s5 + $0x658] sm:$0xff] }
 0x1f5   :  { %1646 = vmatpush2.msra.mxu1 %v1398_v63  ;;  %1719 = vmatpush2.msra.mxu0 %v1008_v0  ;;  %v957_v63 = vld [vmem:[%s5605_s4 + $0x228] sm:$0xff]  ;;  %v1346_v0 = vld [vmem:[%s5604_s5 + $0x650] sm:$0xff] }
 0x1f6   :  { %1647 = vmatprep.subr.mxu1 %v1395_v2  ;;  %1720 = vmatprep.subr.mxu0 %v1005_v3  ;;  %v956_v2 = vld [vmem:[%s5605_s4 + $0x220] sm:$0xff]  ;;  %v1343_v3 = vld [vmem:[%s5604_s5 + $0x638] sm:$0xff] }
 0x1f7   :  { %1648 = vmatpush2.msra.mxu1 %v1394_v4  ;;  %1721 = vmatpush2.msra.mxu0 %v1004_v5  ;;  %v953_v4 = vld [vmem:[%s5605_s4 + $0x208] sm:$0xff]  ;;  %v1342_v5 = vld [vmem:[%s5604_s5 + $0x630] sm:$0xff] }
 0x1f8   :  { %1649 = vmatprep.subr.mxu1 %v1391_v17  ;;  %1722 = vmatprep.subr.mxu0 %v1001_v15  ;;  %v952_v17 = vld [vmem:[%s5605_s4 + $0x200] sm:$0xff]  ;;  %v1339_v15 = vld [vmem:[%s5604_s5 + $0x618] sm:$0xff] }
 0x1f9   :  { %1650 = vmatpush2.msra.mxu1 %v1390_v9  ;;  %1723 = vmatpush2.msra.mxu0 %v1000_v16  ;;  %v4974_v9 = vmax.f32 %v3962_v46, 0.0  ;;  %v1338_v16 = vld [vmem:[%s5604_s5 + $0x610] sm:$0xff]  ;;  %v1076_v46 = vld [vmem:[%s5605_s4 + $0x5e0] sm:$0xff] }
 0x1fa   :  { %1651 = vmatprep.subr.mxu1 %v1387_v21  ;;  %1724 = vmatprep.subr.mxu0 %v997_v22  ;;  %v951_v21 = vld [vmem:[%s5605_s4 + $0x1f8] sm:$0xff]  ;;  %v1077_v22 = vld [vmem:[%s5605_s4 + $0x5e8] sm:$0xff] }
 0x1fb   :  { %1652 = vmatpush2.msra.mxu1 %v1386_v24  ;;  %1725 = vmatpush2.msra.mxu0 %v996_v25  ;;  %v4990_v24 = vmax.f32 %v4354_v60, 0.0  ;;  %v950_v25 = vld [vmem:[%s5605_s4 + $0x1f0] sm:$0xff]  ;;  %v1072_v60 = vld [vmem:[%s5605_s4 + $0x5c0] sm:$0xff] }
 0x1fc   :  { %1653 = vmatprep.subr.mxu1 %v1383_v27  ;;  %1726 = vmatprep.subr.mxu0 %v993_v30  ;;  %v1073_v27 = vld [vmem:[%s5605_s4 + $0x5c8] sm:$0xff]  ;;  %v947_v30 = vld [vmem:[%s5605_s4 + $0x1d8] sm:$0xff] }
 0x1fd   :  { %1654 = vmatpush2.msra.mxu1 %v1382_v31  ;;  %1727 = vmatpush2.msra.mxu0 %v992_v36  ;;  %v946_v31 = vld [vmem:[%s5605_s4 + $0x1d0] sm:$0xff]  ;;  %v1069_v36 = vld [vmem:[%s5605_s4 + $0x5a8] sm:$0xff] }
 0x1fe   :  { %1655 = vmatprep.subr.mxu1 %v1379_v32  ;;  %1728 = vmatprep.subr.mxu0 %v989_v33  ;;  %v943_v32 = vld [vmem:[%s5605_s4 + $0x1b8] sm:$0xff]  ;;  %v1068_v33 = vld [vmem:[%s5605_s4 + $0x5a0] sm:$0xff] }
 0x1ff   :  { %1656 = vmatpush2.msra.mxu1 %v1378_v34  ;;  %1729 = vmatpush2.msra.mxu0 %v988_v35  ;;  %v942_v34 = vld [vmem:[%s5605_s4 + $0x1b0] sm:$0xff]  ;;  %v1065_v35 = vld [vmem:[%s5605_s4 + $0x588] sm:$0xff] }
 0x200   :  { %1657 = vmatprep.subr.mxu1 %v1375_v38  ;;  %1730 = vmatprep.subr.mxu0 %v985_v39  ;;  %v939_v38 = vld [vmem:[%s5605_s4 + $0x198] sm:$0xff]  ;;  %v1064_v39 = vld [vmem:[%s5605_s4 + $0x580] sm:$0xff] }
 0x201   :  { %1658 = vmatpush2.msra.mxu1 %v1374_v40  ;;  %1731 = vmatpush2.msra.mxu0 %v984_v41  ;;  %v938_v40 = vld [vmem:[%s5605_s4 + $0x190] sm:$0xff]  ;;  %v1061_v41 = vld [vmem:[%s5605_s4 + $0x568] sm:$0xff] }
 0x202   :  { %1659 = vmatprep.subr.mxu1 %v1371_v43  ;;  %1732 = vmatprep.subr.mxu0 %v981_v44  ;;  %v935_v43 = vld [vmem:[%s5605_s4 + $0x178] sm:$0xff]  ;;  %v1060_v44 = vld [vmem:[%s5605_s4 + $0x560] sm:$0xff] }
 0x203   :  { %1660 = vmatpush2.msra.mxu1 %v1370_v45  ;;  %1733 = vmatpush2.msra.mxu0 %v980_v47  ;;  %v934_v45 = vld [vmem:[%s5605_s4 + $0x170] sm:$0xff]  ;;  %v1057_v47 = vld [vmem:[%s5605_s4 + $0x548] sm:$0xff] }
 0x204   :  { %1661 = vmatprep.subr.mxu1 %v1367_v49  ;;  %1734 = vmatprep.subr.mxu0 %v977_v12  ;;  %v931_v49 = vld [vmem:[%s5605_s4 + $0x158] sm:$0xff]  ;;  %v1056_v12 = vld [vmem:[%s5605_s4 + $0x540] sm:$0xff] }
 0x205   :  { %1662 = vmatpush2.msra.mxu1 %v1366_v14  ;;  %1735 = vmatpush2.msra.mxu0 %v976_v48  ;;  %v930_v14 = vld [vmem:[%s5605_s4 + $0x150] sm:$0xff]  ;;  %v1053_v48 = vld [vmem:[%s5605_s4 + $0x528] sm:$0xff] }
 0x206   :  { %1663 = vmatprep.subr.mxu1 %v1363_v7  ;;  %1736 = vmatprep.subr.mxu0 %v973_v11  ;;  %v927_v7 = vld [vmem:[%s5605_s4 + $0x138] sm:$0xff]  ;;  %v1052_v11 = vld [vmem:[%s5605_s4 + $0x520] sm:$0xff] }
 0x207   :  { %1664 = vmatpush2.msra.mxu1 %v1362_v13  ;;  %1737 = vmatpush2.msra.mxu0 %v972_v10  ;;  %v926_v13 = vld [vmem:[%s5605_s4 + $0x130] sm:$0xff]  ;;  %v1049_v10 = vld [vmem:[%s5605_s4 + $0x508] sm:$0xff] }
 0x208   :  { %1665 = vmatprep.subr.mxu1 %v1359_v23  ;;  %1738 = vmatprep.subr.mxu0 %v969_v6  ;;  %v923_v23 = vld [vmem:[%s5605_s4 + $0x118] sm:$0xff]  ;;  %v1048_v6 = vld [vmem:[%s5605_s4 + $0x500] sm:$0xff] }
 0x209   :  { %1666 = vmatpush2.msra.mxu1 %v1358_v50  ;;  %1739 = vmatpush2.msra.mxu0 %v968_v51  ;;  %v922_v50 = vld [vmem:[%s5605_s4 + $0x110] sm:$0xff]  ;;  %v1045_v51 = vld [vmem:[%s5605_s4 + $0x4e8] sm:$0xff] }
 0x20a   :  { %1667 = vmatprep.subr.mxu1 %v1355_v52  ;;  %1740 = vmatprep.subr.mxu0 %v965_v53  ;;  %v919_v52 = vld [vmem:[%s5605_s4 + $0xf8] sm:$0xff]  ;;  %v1044_v53 = vld [vmem:[%s5605_s4 + $0x4e0] sm:$0xff] }
 0x20b   :  { %1668 = vmatpush2.msra.mxu1 %v1354_v54  ;;  %1741 = vmatpush2.msra.mxu0 %v964_v56  ;;  %v918_v54 = vld [vmem:[%s5605_s4 + $0xf0] sm:$0xff]  ;;  %v1041_v56 = vld [vmem:[%s5605_s4 + $0x4c8] sm:$0xff] }
 0x20c   :  { %1669 = vmatprep.subr.mxu1 %v1351_v57  ;;  %1742 = vmatprep.subr.mxu0 %v961_v58  ;;  %v915_v57 = vld [vmem:[%s5605_s4 + $0xd8] sm:$0xff]  ;;  %v1040_v58 = vld [vmem:[%s5605_s4 + $0x4c0] sm:$0xff] }
 0x20d   :  { %1670 = vmatpush2.msra.mxu1 %v1350_v59  ;;  %1743 = vmatpush2.msra.mxu0 %v960_v61  ;;  %v914_v59 = vld [vmem:[%s5605_s4 + $0xd0] sm:$0xff]  ;;  %v1037_v61 = vld [vmem:[%s5605_s4 + $0x4a8] sm:$0xff] }
 0x20e   :  { %1671 = vmatprep.subr.mxu1 %v1347_v62  ;;  %1744 = vmatprep.subr.mxu0 %v957_v63  ;;  %v911_v62 = vld [vmem:[%s5605_s4 + $0xb8] sm:$0xff]  ;;  %v1036_v63 = vld [vmem:[%s5605_s4 + $0x4a0] sm:$0xff] }
 0x20f   :  { %1672 = vmatpush2.msra.mxu1 %v1346_v0  ;;  %1745 = vmatpush2.msra.mxu0 %v956_v2  ;;  %v910_v0 = vld [vmem:[%s5605_s4 + $0xb0] sm:$0xff]  ;;  %v1033_v2 = vld [vmem:[%s5605_s4 + $0x488] sm:$0xff] }
 0x210   :  { %1673 = vmatprep.subr.mxu1 %v1343_v3  ;;  %1746 = vmatprep.subr.mxu0 %v953_v4  ;;  %v907_v3 = vld [vmem:[%s5605_s4 + $0x98] sm:$0xff]  ;;  %v1032_v4 = vld [vmem:[%s5605_s4 + $0x480] sm:$0xff] }
 0x211   :  { %1674 = vmatpush2.msra.mxu1 %v1342_v5  ;;  %1747 = vmatpush2.msra.mxu0 %v952_v17  ;;  %v906_v5 = vld [vmem:[%s5605_s4 + $0x90] sm:$0xff]  ;;  %v1029_v17 = vld [vmem:[%s5605_s4 + $0x468] sm:$0xff] }
 0x212   :  { %1675 = vmatprep.subr.mxu1 %v1339_v15  ;;  %1749 = vmatmul.mubr.f32.vlgmr.msra.gmra.mxu0 %v4974_v9  ;;  %v903_v15 = vld [vmem:[%s5605_s4 + $0x78] sm:$0xff] }
 0x213   :  { %1676 = vmatpush2.msra.mxu1 %v1338_v16  ;;  %1826 = vmatprep.subr.mxu0 %v951_v21  ;;  %v1028_v16 = vld [vmem:[%s5605_s4 + $0x460] sm:$0xff]  ;;  %v902_v21 = vld [vmem:[%s5605_s4 + $0x70] sm:$0xff] }
 0x214   :  { %1678 = vmatmul.mubr.f32.vlgmr.msra.gmra.mxu1 %v4601_v20  ;;  %1755 = vmatprep.subr.mxu1 %v1077_v22  ;;  %v1025_v22 = vld [vmem:[%s5605_s4 + $0x448] sm:$0xff] }
 0x215   :  { %1756 = vmatpush1.msra.mxu1 %v1076_v46  ;;  %1819 = vmatprep.mubr.f32.mxu1 %v4990_v24  ;;  %v899_v46 = vld [vmem:[%s5605_s4 + $0x58] sm:$0xff] }
 0x216   :  { %1827 = vmatpush1.msra.mxu0 %v950_v25  ;;  %1890 = vmatprep.mubr.f32.mxu0 %v4590_v8  ;;  %v1024_v25 = vld [vmem:[%s5605_s4 + $0x440] sm:$0xff] }
 0x217   :  { %1757 = vmatprep.subr.mxu1 %v1073_v27  ;;  %1828 = vmatprep.subr.mxu0 %v947_v30  ;;  %v898_v27 = vld [vmem:[%s5605_s4 + $0x50] sm:$0xff]  ;;  %v1021_v30 = vld [vmem:[%s5605_s4 + $0x428] sm:$0xff] }
 0x218   :  { %1758 = vmatpush1.msra.mxu1 %v1072_v60  ;;  %1829 = vmatpush1.msra.mxu0 %v946_v31  ;;  %v895_v60 = vld [vmem:[%s5605_s4 + $0x38] sm:$0xff]  ;;  %v1020_v31 = vld [vmem:[%s5605_s4 + $0x420] sm:$0xff] }
 0x219   :  { %1759 = vmatprep.subr.mxu1 %v1069_v36  ;;  %1830 = vmatprep.subr.mxu0 %v943_v32  ;;  %v894_v36 = vld [vmem:[%s5605_s4 + $0x30] sm:$0xff]  ;;  %v1017_v32 = vld [vmem:[%s5605_s4 + $0x408] sm:$0xff] }
 0x21a   :  { %1760 = vmatpush1.msra.mxu1 %v1068_v33  ;;  %1831 = vmatpush1.msra.mxu0 %v942_v34  ;;  %v891_v33 = vld [vmem:[%s5605_s4 + $0x18] sm:$0xff]  ;;  %v1016_v34 = vld [vmem:[%s5605_s4 + $0x400] sm:$0xff] }
 0x21b   :  { %1761 = vmatprep.subr.mxu1 %v1065_v35  ;;  %1832 = vmatprep.subr.mxu0 %v939_v38  ;;  %v890_v35 = vld [vmem:[%s5605_s4 + $0x10] sm:$0xff]  ;;  %v1141_v38 = vld [vmem:[%s5605_s4 + $0x7e8] sm:$0xff] }
 0x21c   :  { %1762 = vmatpush1.msra.mxu1 %v1064_v39  ;;  %1833 = vmatpush1.msra.mxu0 %v938_v40  ;;  %v1015_v39 = vld [vmem:[%s5605_s4 + $0x3f8] sm:$0xff]  ;;  %v1140_v40 = vld [vmem:[%s5605_s4 + $0x7e0] sm:$0xff] }
 0x21d   :  { %1763 = vmatprep.subr.mxu1 %v1061_v41  ;;  %1834 = vmatprep.subr.mxu0 %v935_v43  ;;  %v1014_v41 = vld [vmem:[%s5605_s4 + $0x3f0] sm:$0xff]  ;;  %v1137_v43 = vld [vmem:[%s5605_s4 + $0x7c8] sm:$0xff] }
 0x21e   :  { %1764 = vmatpush1.msra.mxu1 %v1060_v44  ;;  %1835 = vmatpush1.msra.mxu0 %v934_v45  ;;  %v1011_v44 = vld [vmem:[%s5605_s4 + $0x3d8] sm:$0xff]  ;;  %v1136_v45 = vld [vmem:[%s5605_s4 + $0x7c0] sm:$0xff] }
 0x21f   :  { %1765 = vmatprep.subr.mxu1 %v1057_v47  ;;  %1836 = vmatprep.subr.mxu0 %v931_v49  ;;  %v1010_v47 = vld [vmem:[%s5605_s4 + $0x3d0] sm:$0xff]  ;;  %v1133_v49 = vld [vmem:[%s5605_s4 + $0x7a8] sm:$0xff] }
 0x220   :  { %1766 = vmatpush1.msra.mxu1 %v1056_v12  ;;  %1837 = vmatpush1.msra.mxu0 %v930_v14  ;;  %v1007_v12 = vld [vmem:[%s5605_s4 + $0x3b8] sm:$0xff]  ;;  %v1132_v14 = vld [vmem:[%s5605_s4 + $0x7a0] sm:$0xff] }
 0x221   :  { %1767 = vmatprep.subr.mxu1 %v1053_v48  ;;  %1838 = vmatprep.subr.mxu0 %v927_v7  ;;  %v1006_v48 = vld [vmem:[%s5605_s4 + $0x3b0] sm:$0xff]  ;;  %v1129_v7 = vld [vmem:[%s5605_s4 + $0x788] sm:$0xff] }
 0x222   :  { %1768 = vmatpush1.msra.mxu1 %v1052_v11  ;;  %1839 = vmatpush1.msra.mxu0 %v926_v13  ;;  %v1003_v11 = vld [vmem:[%s5605_s4 + $0x398] sm:$0xff]  ;;  %v1128_v13 = vld [vmem:[%s5605_s4 + $0x780] sm:$0xff] }
 0x223   :  { %1769 = vmatprep.subr.mxu1 %v1049_v10  ;;  %1840 = vmatprep.subr.mxu0 %v923_v23  ;;  %v1002_v10 = vld [vmem:[%s5605_s4 + $0x390] sm:$0xff]  ;;  %v1125_v23 = vld [vmem:[%s5605_s4 + $0x768] sm:$0xff] }
 0x224   :  { %1770 = vmatpush1.msra.mxu1 %v1048_v6  ;;  %1841 = vmatpush1.msra.mxu0 %v922_v50  ;;  %v999_v6 = vld [vmem:[%s5605_s4 + $0x378] sm:$0xff]  ;;  %v1124_v50 = vld [vmem:[%s5605_s4 + $0x760] sm:$0xff] }
 0x225   :  { %1771 = vmatprep.subr.mxu1 %v1045_v51  ;;  %1842 = vmatprep.subr.mxu0 %v919_v52  ;;  %v998_v51 = vld [vmem:[%s5605_s4 + $0x370] sm:$0xff]  ;;  %v1121_v52 = vld [vmem:[%s5605_s4 + $0x748] sm:$0xff] }
 0x226   :  { %1772 = vmatpush1.msra.mxu1 %v1044_v53  ;;  %1843 = vmatpush1.msra.mxu0 %v918_v54  ;;  %v995_v53 = vld [vmem:[%s5605_s4 + $0x358] sm:$0xff]  ;;  %v1120_v54 = vld [vmem:[%s5605_s4 + $0x740] sm:$0xff] }
 0x227   :  { %1773 = vmatprep.subr.mxu1 %v1041_v56  ;;  %1844 = vmatprep.subr.mxu0 %v915_v57  ;;  %v994_v56 = vld [vmem:[%s5605_s4 + $0x350] sm:$0xff]  ;;  %v1117_v57 = vld [vmem:[%s5605_s4 + $0x728] sm:$0xff] }
 0x228   :  { %1774 = vmatpush1.msra.mxu1 %v1040_v58  ;;  %1845 = vmatpush1.msra.mxu0 %v914_v59  ;;  %v991_v58 = vld [vmem:[%s5605_s4 + $0x338] sm:$0xff]  ;;  %v1116_v59 = vld [vmem:[%s5605_s4 + $0x720] sm:$0xff] }
 0x229   :  { %1775 = vmatprep.subr.mxu1 %v1037_v61  ;;  %1846 = vmatprep.subr.mxu0 %v911_v62  ;;  %v990_v61 = vld [vmem:[%s5605_s4 + $0x330] sm:$0xff]  ;;  %v1113_v62 = vld [vmem:[%s5605_s4 + $0x708] sm:$0xff] }
 0x22a   :  { %1776 = vmatpush1.msra.mxu1 %v1036_v63  ;;  %1847 = vmatpush1.msra.mxu0 %v910_v0  ;;  %v987_v63 = vld [vmem:[%s5605_s4 + $0x318] sm:$0xff]  ;;  %v1112_v0 = vld [vmem:[%s5605_s4 + $0x700] sm:$0xff] }
 0x22b   :  { %1777 = vmatprep.subr.mxu1 %v1033_v2  ;;  %1848 = vmatprep.subr.mxu0 %v907_v3  ;;  %v986_v2 = vld [vmem:[%s5605_s4 + $0x310] sm:$0xff]  ;;  %v1109_v3 = vld [vmem:[%s5605_s4 + $0x6e8] sm:$0xff] }
 0x22c   :  { %1778 = vmatpush1.msra.mxu1 %v1032_v4  ;;  %1849 = vmatpush1.msra.mxu0 %v906_v5  ;;  %v983_v4 = vld [vmem:[%s5605_s4 + $0x2f8] sm:$0xff]  ;;  %v1108_v5 = vld [vmem:[%s5605_s4 + $0x6e0] sm:$0xff] }
 0x22d   :  { %1779 = vmatprep.subr.mxu1 %v1029_v17  ;;  %1850 = vmatprep.subr.mxu0 %v903_v15  ;;  %v982_v17 = vld [vmem:[%s5605_s4 + $0x2f0] sm:$0xff]  ;;  %v1105_v15 = vld [vmem:[%s5605_s4 + $0x6c8] sm:$0xff] }
 0x22e   :  { %1780 = vmatpush1.msra.mxu1 %v1028_v16  ;;  %1851 = vmatpush1.msra.mxu0 %v902_v21  ;;  %v979_v16 = vld [vmem:[%s5605_s4 + $0x2d8] sm:$0xff]  ;;  %v1104_v21 = vld [vmem:[%s5605_s4 + $0x6c0] sm:$0xff] }
 0x22f   :  { %1781 = vmatprep.subr.mxu1 %v1025_v22  ;;  %1852 = vmatprep.subr.mxu0 %v899_v46  ;;  %v978_v22 = vld [vmem:[%s5605_s4 + $0x2d0] sm:$0xff]  ;;  %v1101_v46 = vld [vmem:[%s5605_s4 + $0x6a8] sm:$0xff] }
 0x230   :  { %1782 = vmatpush1.msra.mxu1 %v1024_v25  ;;  %1853 = vmatpush1.msra.mxu0 %v898_v27  ;;  %v975_v25 = vld [vmem:[%s5605_s4 + $0x2b8] sm:$0xff]  ;;  %v1100_v27 = vld [vmem:[%s5605_s4 + $0x6a0] sm:$0xff] }
 0x231   :  { %1783 = vmatprep.subr.mxu1 %v1021_v30  ;;  %1854 = vmatprep.subr.mxu0 %v895_v60  ;;  %v974_v30 = vld [vmem:[%s5605_s4 + $0x2b0] sm:$0xff]  ;;  %v1097_v60 = vld [vmem:[%s5605_s4 + $0x688] sm:$0xff] }
 0x232   :  { %1784 = vmatpush1.msra.mxu1 %v1020_v31  ;;  %1855 = vmatpush1.msra.mxu0 %v894_v36  ;;  %v971_v31 = vld [vmem:[%s5605_s4 + $0x298] sm:$0xff]  ;;  %v1096_v36 = vld [vmem:[%s5605_s4 + $0x680] sm:$0xff] }
 0x233   :  { %1785 = vmatprep.subr.mxu1 %v1017_v32  ;;  %1856 = vmatprep.subr.mxu0 %v891_v33  ;;  %v970_v32 = vld [vmem:[%s5605_s4 + $0x290] sm:$0xff]  ;;  %v1093_v33 = vld [vmem:[%s5605_s4 + $0x668] sm:$0xff] }
 0x234   :  { %1786 = vmatpush1.msra.mxu1 %v1016_v34  ;;  %1857 = vmatpush1.msra.mxu0 %v890_v35  ;;  %v967_v34 = vld [vmem:[%s5605_s4 + $0x278] sm:$0xff]  ;;  %v1092_v35 = vld [vmem:[%s5605_s4 + $0x660] sm:$0xff] }
 0x235   :  { %1787 = vmatprep.subr.mxu1 %v1141_v38  ;;  %1858 = vmatprep.subr.mxu0 %v1015_v39  ;;  %v966_v38 = vld [vmem:[%s5605_s4 + $0x270] sm:$0xff]  ;;  %v1089_v39 = vld [vmem:[%s5605_s4 + $0x648] sm:$0xff] }
 0x236   :  { %1788 = vmatpush2.msra.mxu1 %v1140_v40  ;;  %1859 = vmatpush2.msra.mxu0 %v1014_v41  ;;  %v963_v40 = vld [vmem:[%s5605_s4 + $0x258] sm:$0xff]  ;;  %v1088_v41 = vld [vmem:[%s5605_s4 + $0x640] sm:$0xff] }
 0x237   :  { %1789 = vmatprep.subr.mxu1 %v1137_v43  ;;  %1860 = vmatprep.subr.mxu0 %v1011_v44  ;;  %v962_v43 = vld [vmem:[%s5605_s4 + $0x250] sm:$0xff]  ;;  %v1085_v44 = vld [vmem:[%s5605_s4 + $0x628] sm:$0xff] }
 0x238   :  { %1790 = vmatpush2.msra.mxu1 %v1136_v45  ;;  %1861 = vmatpush2.msra.mxu0 %v1010_v47  ;;  %v959_v45 = vld [vmem:[%s5605_s4 + $0x238] sm:$0xff]  ;;  %v1084_v47 = vld [vmem:[%s5605_s4 + $0x620] sm:$0xff] }
 0x239   :  { %1791 = vmatprep.subr.mxu1 %v1133_v49  ;;  %1862 = vmatprep.subr.mxu0 %v1007_v12  ;;  %v958_v49 = vld [vmem:[%s5605_s4 + $0x230] sm:$0xff]  ;;  %v1081_v12 = vld [vmem:[%s5605_s4 + $0x608] sm:$0xff] }
 0x23a   :  { %1792 = vmatpush2.msra.mxu1 %v1132_v14  ;;  %1863 = vmatpush2.msra.mxu0 %v1006_v48  ;;  %v955_v14 = vld [vmem:[%s5605_s4 + $0x218] sm:$0xff]  ;;  %v1080_v48 = vld [vmem:[%s5605_s4 + $0x600] sm:$0xff] }
 0x23b   :  { %1793 = vmatprep.subr.mxu1 %v1129_v7  ;;  %1864 = vmatprep.subr.mxu0 %v1003_v11  ;;  %v954_v7 = vld [vmem:[%s5605_s4 + $0x210] sm:$0xff]  ;;  %v5371_v11 = vmax.f32 %v4345_v55, 0.0  ;;  %v1075_v55 = vld [vmem:[%s5605_s4 + $0x5d8] sm:$0xff] }
 0x23c   :  { %1794 = vmatpush2.msra.mxu1 %v1128_v13  ;;  %1865 = vmatpush2.msra.mxu0 %v1002_v10  ;;  %v1079_v13 = vld [vmem:[%s5605_s4 + $0x5f8] sm:$0xff]  ;;  %v1078_v10 = vld [vmem:[%s5605_s4 + $0x5f0] sm:$0xff] }
 0x23d   :  { %1795 = vmatprep.subr.mxu1 %v1125_v23  ;;  %1866 = vmatprep.subr.mxu0 %v999_v6  ;;  %v1074_v23 = vld [vmem:[%s5605_s4 + $0x5d0] sm:$0xff]  ;;  %v1071_v6 = vld [vmem:[%s5605_s4 + $0x5b8] sm:$0xff] }
 0x23e   :  { %1796 = vmatpush2.msra.mxu1 %v1124_v50  ;;  %1867 = vmatpush2.msra.mxu0 %v998_v51  ;;  %v1070_v50 = vld [vmem:[%s5605_s4 + $0x5b0] sm:$0xff]  ;;  %v1067_v51 = vld [vmem:[%s5605_s4 + $0x598] sm:$0xff] }
 0x23f   :  { %1797 = vmatprep.subr.mxu1 %v1121_v52  ;;  %1868 = vmatprep.subr.mxu0 %v995_v53  ;;  %v1066_v52 = vld [vmem:[%s5605_s4 + $0x590] sm:$0xff]  ;;  %v1063_v53 = vld [vmem:[%s5605_s4 + $0x578] sm:$0xff] }
 0x240   :  { %1798 = vmatpush2.msra.mxu1 %v1120_v54  ;;  %1869 = vmatpush2.msra.mxu0 %v994_v56  ;;  %v1062_v54 = vld [vmem:[%s5605_s4 + $0x570] sm:$0xff]  ;;  %v1059_v56 = vld [vmem:[%s5605_s4 + $0x558] sm:$0xff] }
 0x241   :  { %1799 = vmatprep.subr.mxu1 %v1117_v57  ;;  %1870 = vmatprep.subr.mxu0 %v991_v58  ;;  %v1058_v57 = vld [vmem:[%s5605_s4 + $0x550] sm:$0xff]  ;;  %v1055_v58 = vld [vmem:[%s5605_s4 + $0x538] sm:$0xff] }
 0x242   :  { %1800 = vmatpush2.msra.mxu1 %v1116_v59  ;;  %1871 = vmatpush2.msra.mxu0 %v990_v61  ;;  %v1054_v59 = vld [vmem:[%s5605_s4 + $0x530] sm:$0xff]  ;;  %v1051_v61 = vld [vmem:[%s5605_s4 + $0x518] sm:$0xff] }
 0x243   :  { %1801 = vmatprep.subr.mxu1 %v1113_v62  ;;  %1872 = vmatprep.subr.mxu0 %v987_v63  ;;  %v1050_v62 = vld [vmem:[%s5605_s4 + $0x510] sm:$0xff]  ;;  %v1047_v63 = vld [vmem:[%s5605_s4 + $0x4f8] sm:$0xff] }
 0x244   :  { %1802 = vmatpush2.msra.mxu1 %v1112_v0  ;;  %1873 = vmatpush2.msra.mxu0 %v986_v2  ;;  %v1046_v0 = vld [vmem:[%s5605_s4 + $0x4f0] sm:$0xff]  ;;  %v1043_v2 = vld [vmem:[%s5605_s4 + $0x4d8] sm:$0xff] }
 0x245   :  { %1803 = vmatprep.subr.mxu1 %v1109_v3  ;;  %1874 = vmatprep.subr.mxu0 %v983_v4  ;;  %v1042_v3 = vld [vmem:[%s5605_s4 + $0x4d0] sm:$0xff]  ;;  %v1039_v4 = vld [vmem:[%s5605_s4 + $0x4b8] sm:$0xff] }
 0x246   :  { %1804 = vmatpush2.msra.mxu1 %v1108_v5  ;;  %1875 = vmatpush2.msra.mxu0 %v982_v17  ;;  %v1038_v5 = vld [vmem:[%s5605_s4 + $0x4b0] sm:$0xff]  ;;  %v1035_v17 = vld [vmem:[%s5605_s4 + $0x498] sm:$0xff] }
 0x247   :  { %1805 = vmatprep.subr.mxu1 %v1105_v15  ;;  %1876 = vmatprep.subr.mxu0 %v979_v16  ;;  %v1034_v15 = vld [vmem:[%s5605_s4 + $0x490] sm:$0xff]  ;;  %v1031_v16 = vld [vmem:[%s5605_s4 + $0x478] sm:$0xff] }
 0x248   :  { %1806 = vmatpush2.msra.mxu1 %v1104_v21  ;;  %1877 = vmatpush2.msra.mxu0 %v978_v22  ;;  %v1030_v21 = vld [vmem:[%s5605_s4 + $0x470] sm:$0xff]  ;;  %v1027_v22 = vld [vmem:[%s5605_s4 + $0x458] sm:$0xff] }
 0x249   :  { %1807 = vmatprep.subr.mxu1 %v1101_v46  ;;  %1878 = vmatprep.subr.mxu0 %v975_v25  ;;  %v1026_v46 = vld [vmem:[%s5605_s4 + $0x450] sm:$0xff]  ;;  %v1023_v25 = vld [vmem:[%s5605_s4 + $0x438] sm:$0xff] }
 0x24a   :  { %1808 = vmatpush2.msra.mxu1 %v1100_v27  ;;  %1879 = vmatpush2.msra.mxu0 %v974_v30  ;;  %v1022_v27 = vld [vmem:[%s5605_s4 + $0x430] sm:$0xff]  ;;  %v1019_v30 = vld [vmem:[%s5605_s4 + $0x418] sm:$0xff] }
 0x24b   :  { %1809 = vmatprep.subr.mxu1 %v1097_v60  ;;  %1880 = vmatprep.subr.mxu0 %v971_v31  ;;  %v1018_v60 = vld [vmem:[%s5605_s4 + $0x410] sm:$0xff]  ;;  %v1143_v31 = vld [vmem:[%s5605_s4 + $0x7f8] sm:$0xff] }
 0x24c   :  { %1810 = vmatpush2.msra.mxu1 %v1096_v36  ;;  %1881 = vmatpush2.msra.mxu0 %v970_v32  ;;  %v1142_v36 = vld [vmem:[%s5605_s4 + $0x7f0] sm:$0xff]  ;;  %v1139_v32 = vld [vmem:[%s5605_s4 + $0x7d8] sm:$0xff] }
 0x24d   :  { %1811 = vmatprep.subr.mxu1 %v1093_v33  ;;  %1882 = vmatprep.subr.mxu0 %v967_v34  ;;  %v1138_v33 = vld [vmem:[%s5605_s4 + $0x7d0] sm:$0xff]  ;;  %v1135_v34 = vld [vmem:[%s5605_s4 + $0x7b8] sm:$0xff] }
 0x24e   :  { %1812 = vmatpush2.msra.mxu1 %v1092_v35  ;;  %1883 = vmatpush2.msra.mxu0 %v966_v38  ;;  %v1134_v35 = vld [vmem:[%s5605_s4 + $0x7b0] sm:$0xff]  ;;  %v1131_v38 = vld [vmem:[%s5605_s4 + $0x798] sm:$0xff] }
 0x24f   :  { %1813 = vmatprep.subr.mxu1 %v1089_v39  ;;  %1884 = vmatprep.subr.mxu0 %v963_v40  ;;  %v1130_v39 = vld [vmem:[%s5605_s4 + $0x790] sm:$0xff]  ;;  %v1127_v40 = vld [vmem:[%s5605_s4 + $0x778] sm:$0xff] }
 0x250   :  { %1814 = vmatpush2.msra.mxu1 %v1088_v41  ;;  %1885 = vmatpush2.msra.mxu0 %v962_v43  ;;  %v1126_v41 = vld [vmem:[%s5605_s4 + $0x770] sm:$0xff]  ;;  %v1123_v43 = vld [vmem:[%s5605_s4 + $0x758] sm:$0xff] }
 0x251   :  { %1815 = vmatprep.subr.mxu1 %v1085_v44  ;;  %1886 = vmatprep.subr.mxu0 %v959_v45  ;;  %v1122_v44 = vld [vmem:[%s5605_s4 + $0x750] sm:$0xff]  ;;  %v1119_v45 = vld [vmem:[%s5605_s4 + $0x738] sm:$0xff] }
 0x252   :  { %1816 = vmatpush2.msra.mxu1 %v1084_v47  ;;  %1887 = vmatpush2.msra.mxu0 %v958_v49  ;;  %v1118_v47 = vld [vmem:[%s5605_s4 + $0x730] sm:$0xff]  ;;  %v1115_v49 = vld [vmem:[%s5605_s4 + $0x718] sm:$0xff] }
 0x253   :  { %1817 = vmatprep.subr.mxu1 %v1081_v12  ;;  %1888 = vmatprep.subr.mxu0 %v955_v14  ;;  %v1114_v12 = vld [vmem:[%s5605_s4 + $0x710] sm:$0xff]  ;;  %v1111_v14 = vld [vmem:[%s5605_s4 + $0x6f8] sm:$0xff] }
 0x254   :  { %1818 = vmatpush2.msra.mxu1 %v1080_v48  ;;  %1889 = vmatpush2.msra.mxu0 %v954_v7  ;;  %v1110_v48 = vld [vmem:[%s5605_s4 + $0x6f0] sm:$0xff]  ;;  %v1107_v7 = vld [vmem:[%s5605_s4 + $0x6d8] sm:$0xff] }
 0x255   :  { %1820 = vmatmul.mubr.f32.vlgmr.msra.gmra.mxu1 %v5371_v11  ;;  %1891 = vmatmul.mubr.f32.vlgmr.msra.gmra.mxu0 %v4974_v9 }
 0x256   :  { %1897 = vmatprep.subr.mxu1 %v1079_v13  ;;  %1961 = vmatprep.mubr.f32.mxu1 %v4990_v24  ;;  %v1106_v13 = vld [vmem:[%s5605_s4 + $0x6d0] sm:$0xff] }
 0x257   :  { %1898 = vmatpush1.msra.mxu1 %v1078_v10  ;;  %v1103_v10 = vld [vmem:[%s5605_s4 + $0x6b8] sm:$0xff] }
 0x258   :  { %1899 = vmatprep.subr.mxu1 %v1075_v55  ;;  %v1102_v55 = vld [vmem:[%s5605_s4 + $0x6b0] sm:$0xff] }
 0x259   :  { %1900 = vmatpush1.msra.mxu1 %v1074_v23  ;;  %v1099_v23 = vld [vmem:[%s5605_s4 + $0x698] sm:$0xff] }
 0x25a   :  { %1901 = vmatprep.subr.mxu1 %v1071_v6  ;;  %v1098_v6 = vld [vmem:[%s5605_s4 + $0x690] sm:$0xff] }
 0x25b   :  { %1902 = vmatpush1.msra.mxu1 %v1070_v50  ;;  %v1095_v50 = vld [vmem:[%s5605_s4 + $0x678] sm:$0xff] }
 0x25c   :  { %1903 = vmatprep.subr.mxu1 %v1067_v51  ;;  %v1094_v51 = vld [vmem:[%s5605_s4 + $0x670] sm:$0xff] }
 0x25d   :  { %1904 = vmatpush1.msra.mxu1 %v1066_v52  ;;  %v1091_v52 = vld [vmem:[%s5605_s4 + $0x658] sm:$0xff] }
 0x25e   :  { %1905 = vmatprep.subr.mxu1 %v1063_v53  ;;  %v1090_v53 = vld [vmem:[%s5605_s4 + $0x650] sm:$0xff] }
 0x25f   :  { %1906 = vmatpush1.msra.mxu1 %v1062_v54  ;;  %v1087_v54 = vld [vmem:[%s5605_s4 + $0x638] sm:$0xff] }
 0x260   :  { %1907 = vmatprep.subr.mxu1 %v1059_v56  ;;  %v1086_v56 = vld [vmem:[%s5605_s4 + $0x630] sm:$0xff] }
 0x261   :  { %1908 = vmatpush1.msra.mxu1 %v1058_v57  ;;  %v1083_v57 = vld [vmem:[%s5605_s4 + $0x618] sm:$0xff] }
 0x262   :  { %1909 = vmatprep.subr.mxu1 %v1055_v58  ;;  %v1082_v58 = vld [vmem:[%s5605_s4 + $0x610] sm:$0xff] }
 0x263   :  { %1910 = vmatpush1.msra.mxu1 %v1054_v59  ;;  %v1466_v59 = vpop.f32.mrf.mxu0 }
 0x264   :  { %1911 = vmatprep.subr.mxu1 %v1051_v61 }
 0x265   :  { %1912 = vmatpush1.msra.mxu1 %v1050_v62  ;;  %v1468_v62 = vpop.f32.mrf.mxu0 }
 0x266   :  { %1913 = vmatprep.subr.mxu1 %v1047_v63 }
 0x267   :  { %1914 = vmatpush1.msra.mxu1 %v1046_v0 }
 0x268   :  { %1915 = vmatprep.subr.mxu1 %v1043_v2 }
 0x269   :  { %1916 = vmatpush1.msra.mxu1 %v1042_v3 }
 0x26a   :  { %1917 = vmatprep.subr.mxu1 %v1039_v4 }
 0x26b   :  { %1918 = vmatpush1.msra.mxu1 %v1038_v5 }
 0x26c   :  { %1919 = vmatprep.subr.mxu1 %v1035_v17 }
 0x26d   :  { %1920 = vmatpush1.msra.mxu1 %v1034_v15  ;;  %v1968_v15 = vld [vmem:[%s5606_s6] sm:$0xf] }
 0x26e   :  { %1921 = vmatprep.subr.mxu1 %v1031_v16 }
 0x26f   :  { %1922 = vmatpush1.msra.mxu1 %v1030_v21 }
 0x270   :  { %1923 = vmatprep.subr.mxu1 %v1027_v22 }
 0x271   :  { %1924 = vmatpush1.msra.mxu1 %v1026_v46 }
 0x272   :  { %1925 = vmatprep.subr.mxu1 %v1023_v25  ;;  %v1973_v25 = vrot.slane %v1968_v15, %v290_v19 }
 0x273   :  { %1926 = vmatpush1.msra.mxu1 %v1022_v27 }
 0x274   :  { %1927 = vmatprep.subr.mxu1 %v1019_v30 }
 0x275   :  { %1928 = vmatpush1.msra.mxu1 %v1018_v60 }
 0x276   :  { %1929 = vmatprep.subr.mxu1 %v1143_v31  ;;  %v1977_v31 = vrot.slane %v1968_v15, %v294_v26 }
 0x277   :  { %1930 = vmatpush2.msra.mxu1 %v1142_v36 }
 0x278   :  { %1931 = vmatprep.subr.mxu1 %v1139_v32 }
 0x279   :  { %1932 = vmatpush2.msra.mxu1 %v1138_v33 }
 0x27a   :  { %1933 = vmatprep.subr.mxu1 %v1135_v34 }
 0x27b   :  { %1934 = vmatpush2.msra.mxu1 %v1134_v35 }
 0x27c   :  { %1935 = vmatprep.subr.mxu1 %v1131_v38 }
 0x27d   :  { %1936 = vmatpush2.msra.mxu1 %v1130_v39 }
 0x27e   :  { %1937 = vmatprep.subr.mxu1 %v1127_v40 }
 0x27f   :  { %1938 = vmatpush2.msra.mxu1 %v1126_v41 }
 0x280   :  { %1939 = vmatprep.subr.mxu1 %v1123_v43 }
 0x281   :  { %1940 = vmatpush2.msra.mxu1 %v1122_v44 }
 0x282   :  { %1941 = vmatprep.subr.mxu1 %v1119_v45 }
 0x283   :  { %1942 = vmatpush2.msra.mxu1 %v1118_v47 }
 0x284   :  { %1943 = vmatprep.subr.mxu1 %v1115_v49 }
 0x285   :  { %1944 = vmatpush2.msra.mxu1 %v1114_v12 }
 0x286   :  { %1945 = vmatprep.subr.mxu1 %v1111_v14 }
 0x287   :  { %1946 = vmatpush2.msra.mxu1 %v1110_v48 }
 0x288   :  { %1947 = vmatprep.subr.mxu1 %v1107_v7 }
 0x289   :  { %1948 = vmatpush2.msra.mxu1 %v1106_v13 }
 0x28a   :  { %1949 = vmatprep.subr.mxu1 %v1103_v10 }
 0x28b   :  { %1950 = vmatpush2.msra.mxu1 %v1102_v55 }
 0x28c   :  { %1951 = vmatprep.subr.mxu1 %v1099_v23 }
 0x28d   :  { %1952 = vmatpush2.msra.mxu1 %v1098_v6 }
 0x28e   :  { %1953 = vmatprep.subr.mxu1 %v1095_v50 }
 0x28f   :  { %1954 = vmatpush2.msra.mxu1 %v1094_v51 }
 0x290   :  { %1955 = vmatprep.subr.mxu1 %v1091_v52 }
 0x291   :  { %1956 = vmatpush2.msra.mxu1 %v1090_v53  ;;  %v1608_v63 = vpop.f32.mrf.mxu0 }
 0x292   :  { %1957 = vmatprep.subr.mxu1 %v1087_v54 }
 0x293   :  { %1958 = vmatpush2.msra.mxu1 %v1086_v56  ;;  %v1610_v3 = vpop.f32.mrf.mxu0 }
 0x294   :  { %1959 = vmatprep.subr.mxu1 %v1083_v57  ;;  %v1537_v61 = vpop.f32.mrf.mxu1 }
 0x295   :  { %1960 = vmatpush2.msra.mxu1 %v1082_v58  ;;  %v1538_v16 = vadd.f32 %v1537_v61, %v1466_v59 }
 0x296   :  { %1962 = vmatmul.mubr.f32.vlgmr.msra.gmra.mxu1 %v5371_v11  ;;  %v1539_v0 = vpop.f32.mrf.mxu1 }
 0x297   :  { %v1540_v22 = vadd.f32 %v1539_v0, %v1468_v62 }
 0x2d2   :  { %v1750_v17 = vpop.f32.mrf.mxu0 }
 0x2d3   :  { %v1751_v46 = vadd.f32 %v1750_v17, %v1538_v16 }
 0x2d4   :  { %v1679_v2 = vpop.f32.mrf.mxu1  ;;  %v1752_v21 = vpop.f32.mrf.mxu0 }
 0x2d5   :  { %v1753_v30 = vadd.f32 %v1752_v21, %v1540_v22  ;;  %v1680_v10 = vadd.f32 %v1679_v2, %v1608_v63 }
 0x2d6   :  { %v1681_v4 = vpop.f32.mrf.mxu1 }
 0x2d7   :  { %v1682_v5 = vadd.f32 %v1681_v4, %v1610_v3 }
 0x315   :  { %v1821_v27 = vpop.f32.mrf.mxu1  ;;  %v1892_v13 = vpop.f32.mrf.mxu0 }
 0x316   :  { %v1822_v60 = vadd.f32 %v1821_v27, %v1751_v46  ;;  %v1893_v55 = vadd.f32 %v1892_v13, %v1680_v10 }
 0x317   :  { %v1823_v36 = vpop.f32.mrf.mxu1 }
 0x318   :  { %v1990_v32 = vadd.f32 %v1973_v25, %v1822_v60  ;;  %v1824_v33 = vadd.f32 %v1823_v36, %v1753_v30 }
 0x31a   :  { %v2042_v34 = vmul.f32 -1.442695, %v1990_v32  ;;  %v1991_v35 = vadd.f32 %v1977_v31, %v1824_v33 }
 0x31c   :  { %2046 = vpow2.f32 %v2042_v34  ;;  %v2043_v38 = vmul.f32 -1.442695, %v1991_v35 }
 0x31e   :  { %2048 = vpow2.f32 %v2043_v38 }
 0x329   :  { %v2047_v39 = vpop.eup %2046 }
 0x32a   :  { %v2006_v40 = vadd.f32 1.0, %v2047_v39 }
 0x32b   :  { %v2049_v41 = vpop.eup %2048 }
 0x32c   :  { %2050 = vrcp.f32 %v2006_v40  ;;  %v2007_v43 = vadd.f32 1.0, %v2049_v41 }
 0x32e   :  { %2052 = vrcp.f32 %v2007_v43 }
 0x339   :  { %v2051_v19 = vpop.eup %2050 }
 0x33a   :  { %v2022_v44 = vsub.f32 1.0, %v2051_v19  ;;  %v2018_v47 = vmul.f32 %v2051_v19, %v4974_v9  ;;  %v1894_v9 = vpop.f32.mrf.mxu0 }
 0x33b   :  { %v2053_v45 = vpop.eup %2052 }
 0x33c   :  { %v2026_v26 = vmul.f32 %v2022_v44, %v4387_v29  ;;  %v2023_v49 = vsub.f32 1.0, %v2053_v45  ;;  %v2019_v14 = vmul.f32 %v2053_v45, %v4590_v8  ;;  %v1981_v29 = vrot.slane %v1968_v15, %v298_v37 }
 0x33d   :  { %v1895_v8 = vadd.f32 %v1894_v9, %v1682_v5 }
 0x33e   :  { %v2030_v12 = vadd.f32 %v2026_v26, %v2018_v47  ;;  %v2027_v48 = vmul.f32 %v2023_v49, %v4385_v28  ;;  %v1985_v28 = vrot.slane %v1968_v15, %v302_v42 }
 0x340   :  { %2034 = vst [vmem:[%s5607_s7] sm:$0xff] %v2030_v12  ;;  %v2031_v7 = vadd.f32 %v2027_v48, %v2019_v14 }
 0x342   :  { %2035 = vst [vmem:[%s5607_s7 + $0x8] sm:$0xff] %v2031_v7 }
 0x356   :  { %v1963_v23 = vpop.f32.mrf.mxu1 }
 0x357   :  { %v1964_v6 = vadd.f32 %v1963_v23, %v1893_v55 }
 0x358   :  { %v1965_v50 = vpop.f32.mrf.mxu1 }
 0x359   :  { %v1992_v51 = vadd.f32 %v1981_v29, %v1964_v6  ;;  %v1966_v52 = vadd.f32 %v1965_v50, %v1895_v8 }
 0x35b   :  { %v2044_v53 = vmul.f32 -1.442695, %v1992_v51  ;;  %v1993_v54 = vadd.f32 %v1985_v28, %v1966_v52 }
 0x35d   :  { %2054 = vpow2.f32 %v2044_v53  ;;  %v2045_v56 = vmul.f32 -1.442695, %v1993_v54 }
 0x35f   :  { %2056 = vpow2.f32 %v2045_v56 }
 0x36a   :  { %v2055_v57 = vpop.eup %2054 }
 0x36b   :  { %v2008_v58 = vadd.f32 1.0, %v2055_v57 }
 0x36c   :  { %v2057_v59 = vpop.eup %2056 }
 0x36d   :  { %2058 = vrcp.f32 %v2008_v58  ;;  %v2009_v61 = vadd.f32 1.0, %v2057_v59 }
 0x36f   :  { %2060 = vrcp.f32 %v2009_v61 }
 0x37a   :  { %v2059_v37 = vpop.eup %2058 }
 0x37b   :  { %v2024_v62 = vsub.f32 1.0, %v2059_v37  ;;  %v2020_v1 = vmul.f32 %v2059_v37, %v5371_v11 }
 0x37c   :  { %v2061_v63 = vpop.eup %2060 }
 0x37d   :  { %v2028_v42 = vmul.f32 %v2024_v62, %v4601_v20  ;;  %v2025_v0 = vsub.f32 1.0, %v2061_v63  ;;  %v2021_v3 = vmul.f32 %v2061_v63, %v4990_v24 }
 0x37f   :  { %v2032_v2 = vadd.f32 %v2028_v42, %v2020_v1  ;;  %v2029_v4 = vmul.f32 %v2025_v0, %v4595_v18 }
 0x381   :  { %2036 = vst [vmem:[%s5607_s7 + $0x10] sm:$0xff] %v2032_v2  ;;  %v2033_v5 = vadd.f32 %v2029_v4, %v2021_v3 }
 0x383   :  { %2037 = vst [vmem:[%s5607_s7 + $0x18] sm:$0xff] %v2033_v5 }

</bundles_post_ra>
